<compile_context>
chip_gen: v7x
topology: tpu7x:2x2x1
jax: 0.10.0
libtpu: 0.0.40
codegen_flags: <defaults>
</compile_context>

<pallas_src>
import functools

import numpy as np
import jax
import jax.numpy as jnp
from jax.experimental import pallas as pl
from jax.experimental.pallas import tpu as pltpu

EDGE_TILE = 1024     # per-edge row tile (K dim of the one-hot scatter matmul)
NODE_TILE = 4096     # per-node row tile for the scatter output / accumulator
ROW_TILE = 256       # row tile for the node-level linear kernels

REL_KEYS = ["00", "01", "10", "11"]
TIME_KEYS = ["morning", "midday", "night", "late-night"]


def _round_up(x, m):
    return ((x + m - 1) // m) * m


@functools.lru_cache(maxsize=None)
def _vmem_limit_bytes():
    # Generation-aware scoped-VMEM budget: ~3/4 of physical (48 MiB on v7x),
    # capped at 100 MiB on v5e / v6e (128 MiB physical).
    try:
        cap = int(pltpu.get_tpu_info().vmem_capacity_bytes)
        return int(min(cap * 3 // 4, 100 * 1024 * 1024))
    except Exception:
        return 48 * 1024 * 1024


def _compiler_params(sem):
    return pltpu.CompilerParams(dimension_semantics=sem,
                                vmem_limit_bytes=_vmem_limit_bytes())


# ------------------------------ Pallas kernels ------------------------------

def _linear_kernel(x_ref, w_ref, b_ref, o_ref):
    # y = x @ w + b   (bf16 operands, f32 accumulate, out dtype selectable)
    acc = jnp.dot(x_ref[...], w_ref[...],
                  preferred_element_type=jnp.float32) + b_ref[...]
    o_ref[...] = acc.astype(o_ref.dtype)


def pallas_linear(x, w, b=None, out_dtype=jnp.float32):
    """y = x @ w (+ b).  x: [M, K], w: [K, N]; bf16 MXU inputs."""
    M, K = x.shape
    N = w.shape[1]
    tm = min(ROW_TILE, _round_up(M, 8))
    Mp = _round_up(M, tm)
    xb = x.astype(jnp.bfloat16)
    if Mp != M:
        xb = jnp.concatenate([xb, jnp.zeros((Mp - M, K), jnp.bfloat16)], axis=0)
    bb = (jnp.zeros((1, N), jnp.float32) if b is None
          else b.reshape(1, N).astype(jnp.float32))
    out = pl.pallas_call(
        _linear_kernel,
        out_shape=jax.ShapeDtypeStruct((Mp, N), out_dtype),
        grid=(Mp // tm,),
        in_specs=[pl.BlockSpec((tm, K), lambda i: (i, 0)),
                  pl.BlockSpec((K, N), lambda i: (0, 0)),
                  pl.BlockSpec((1, N), lambda i: (0, 0))],
        out_specs=pl.BlockSpec((tm, N), lambda i: (i, 0)),
        compiler_params=_compiler_params(("parallel",)),
    )(xb, w.astype(jnp.bfloat16), bb)
    return out[:M] if Mp != M else out


def _twohop_edge_kernel(out_feats, cat_ref, dd_ref, a_ref, he_ref):
    # TwoHopConv.msg_function per edge (folded fc_w1/fc_w2/vec_a gate), runs ONCE
    # per edge tile (outside the node-tile product grid).
    # cat = [h2_dst | dist_embed | h1_e | h2_src]  (bf16, lane-dense)
    cat = cat_ref[0]                                            # [te, 4*out] bf16
    # scores = cat @ (stack(fc_w1, fc_w2) @ vec_a^T): bf16 multiply, f32 reduce.
    scores = jnp.sum((cat * a_ref[...]).astype(jnp.float32),
                     axis=-1, keepdims=True)                    # [te, 1] f32
    beta = jax.nn.sigmoid(scores).astype(jnp.bfloat16)
    h1_e = cat[:, 2 * out_feats:3 * out_feats]
    h2_s = cat[:, 3 * out_feats:]
    # dd already carries d2[src] * valid; d0[dst] is applied after the scatter.
    he = (beta * h2_s + h1_e) * dd_ref[0].astype(jnp.bfloat16)
    he_ref[...] = he[None]


def twohop_edge_pallas(cat, dd, a_row, out_feats):
    T, Ep, four_out = cat.shape
    te = min(EDGE_TILE, Ep)
    kernel = functools.partial(_twohop_edge_kernel, out_feats)
    return pl.pallas_call(
        kernel,
        out_shape=jax.ShapeDtypeStruct((T, Ep, out_feats), jnp.bfloat16),
        grid=(T, Ep // te),
        in_specs=[pl.BlockSpec((1, te, four_out), lambda t, e: (t, e, 0)),
                  pl.BlockSpec((1, te, 1), lambda t, e: (t, e, 0)),
                  pl.BlockSpec((1, four_out), lambda t, e: (0, 0))],
        out_specs=pl.BlockSpec((1, te, out_feats), lambda t, e: (t, e, 0)),
        compiler_params=_compiler_params(("parallel", "parallel")),
    )(cat, dd, a_row)


def _seprop_edge_kernel(left_ref, right_ref, dd_ref, w_ref, b_ref, h_ref):
    # SpatialEvoProp.combine_double_dist per edge.  The neighbour MEAN + agg_fc are
    # folded into a single K=(1+num)*out stacked-weight matmul.
    prod = left_ref[0] * right_ref[0]                           # bf16 [te, K]
    h = jnp.dot(prod, w_ref[...],
                preferred_element_type=jnp.float32) + b_ref[...]  # [te, out] f32
    h = h * dd_ref[0]                                           # d2[src] * valid
    h_ref[...] = h.astype(jnp.bfloat16)[None]


def seprop_edge_pallas(left, right, dd, w_stack, bias, out_feats):
    T, Ep, kdim = left.shape
    te = min(EDGE_TILE, Ep)
    return pl.pallas_call(
        _seprop_edge_kernel,
        out_shape=jax.ShapeDtypeStruct((T, Ep, out_feats), jnp.bfloat16),
        grid=(T, Ep // te),
        in_specs=[pl.BlockSpec((1, te, kdim), lambda t, e: (t, e, 0)),
                  pl.BlockSpec((1, te, kdim), lambda t, e: (t, e, 0)),
                  pl.BlockSpec((1, te, 1), lambda t, e: (t, e, 0)),
                  pl.BlockSpec((kdim, out_feats), lambda t, e: (0, 0)),
                  pl.BlockSpec((1, out_feats), lambda t, e: (0, 0))],
        out_specs=pl.BlockSpec((1, te, out_feats), lambda t, e: (t, e, 0)),
        compiler_params=_compiler_params(("parallel", "parallel")),
    )(left, right, dd, w_stack, bias)


def _scatter_kernel(node_tile, dst_ref, msg_ref, o_ref):
    # fn.sum reducer: scatter-add of per-edge bf16 messages via a one-hot MXU matmul.
    # Only 32 message lanes are re-streamed per node tile.
    e = pl.program_id(2)

    @pl.when(e == 0)
    def _():
        o_ref[...] = jnp.zeros_like(o_ref)

    base = pl.program_id(1) * node_tile
    rows = jax.lax.broadcasted_iota(jnp.int32, (node_tile, 1), 0) + base  # thin column
    onehot = (rows == dst_ref[0]).astype(jnp.bfloat16)          # [tn, te]
    o_ref[...] += jnp.dot(onehot, msg_ref[0],
                          preferred_element_type=jnp.float32)[None]


def scatter_sum_pallas(dst_row, msgs, n_nodes):
    """dst_row: [T, 1, Ep] int32 (-1 = padded); msgs: [T, Ep, out] bf16 -> [T, n, out] f32."""
    T, Ep, out_feats = msgs.shape
    te = min(EDGE_TILE, Ep)
    tn = min(NODE_TILE, _round_up(n_nodes, 8))
    Np = _round_up(n_nodes, tn)
    kernel = functools.partial(_scatter_kernel, tn)
    res = pl.pallas_call(
        kernel,
        out_shape=jax.ShapeDtypeStruct((T, Np, out_feats), jnp.float32),
        grid=(T, Np // tn, Ep // te),
        in_specs=[pl.BlockSpec((1, 1, te), lambda t, n, e: (t, 0, e)),
                  pl.BlockSpec((1, te, out_feats), lambda t, n, e: (t, e, 0))],
        out_specs=pl.BlockSpec((1, tn, out_feats), lambda t, n, e: (t, n, 0)),
        compiler_params=_compiler_params(("parallel", "parallel", "arbitrary")),
    )(dst_row, msgs)
    return res[:, :n_nodes]


# --------------------------------- JAX glue ---------------------------------

def degree_scales(src, dst, N, w):
    in_deg = jnp.zeros((N,), jnp.float32).at[dst].add(w)
    out_deg = jnp.zeros((N,), jnp.float32).at[src].add(w)
    return jnp.maximum(in_deg, 1.0) ** -0.5, jnp.maximum(out_deg, 1.0) ** -0.5


def _pad_stack_edges(idx_lists):
    """idx_lists: per-time list of same-length int32 index arrays.

    Pads every time key to a common edge count Ep (multiple of the edge tile) and
    stacks along a leading time axis.  Only the small int32 arrays are padded."""
    T = len(idx_lists)
    Es = [arrs[0].shape[0] for arrs in idx_lists]
    Emax = max(max(Es), 1)
    te = min(EDGE_TILE, _round_up(Emax, 128))
    Ep = _round_up(Emax, te)
    stacked = []
    for j in range(len(idx_lists[0])):
        rows = []
        for t in range(T):
            a = idx_lists[t][j]
            pad = Ep - a.shape[0]
            if pad:
                a = jnp.concatenate(
                    [a, jnp.zeros((pad,) + a.shape[1:], a.dtype)], axis=0)
            rows.append(a)
        stacked.append(jnp.stack(rows, axis=0))
    valid = jnp.arange(Ep)[None, :] < jnp.array(Es, jnp.int32)[:, None]
    return stacked, valid, Ep


def twohop_precompute(prm, feat, embed_table):
    # Per-relation, time-independent work (shared across the 4 time keys).
    out = prm["fc2_w"].shape[1]
    h2 = pallas_linear(feat, prm["fc2_w"], out_dtype=jnp.bfloat16)          # fc2; hop1_fc=False
    fused_fcd = pallas_linear(embed_table, prm["fcd_w"], out_dtype=jnp.bfloat16)
    a_row = (jnp.concatenate([prm["w1a"], prm["w1b"], prm["w2a"], prm["w2b"]], axis=0)
             @ prm["a"].T).reshape(1, 4 * out).astype(jnp.bfloat16)          # fold fc_w1/fc_w2/vec_a
    return h2, fused_fcd, a_row


def twohop_conv_all_times(pre, loc, edges_per_time, boundaries, N):
    # TwoHopConv.forward (hop1_fc=False, elem_gate=False, feat_drop=0, activation=None),
    # all 4 time keys of one relation batched into one edge kernel + one scatter kernel.
    h2, fused_fcd, a_row = pre
    out = h2.shape[1]
    T = len(edges_per_time)
    (src_s, dst_s, mid_s), valid, Ep = _pad_stack_edges(
        [list(e) for e in edges_per_time])
    validf = valid.astype(jnp.float32)
    d0_s, d2_s = jax.vmap(lambda s, d, v: degree_scales(s, d, N, v))(src_s, dst_s, validf)

    # torch.bucketize(right=False) == searchsorted(side='left'); embedding folded through fcd.
    dist = jnp.linalg.norm(loc[dst_s] - loc[src_s], axis=-1)                 # [T, Ep]
    dist_e = fused_fcd[jnp.searchsorted(boundaries, dist, side="left")]      # [T, Ep, out] bf16
    cat = jnp.concatenate([h2[dst_s], dist_e, h2[mid_s], h2[src_s]], axis=-1)  # [T, Ep, 4*out]
    dd = (jnp.take_along_axis(d2_s, src_s, axis=1) * validf)[..., None]      # d2[src]*valid
    dst_row = jnp.where(valid, dst_s, -1).astype(jnp.int32)[:, None, :]      # -1 never matches

    he = twohop_edge_pallas(cat, dd, a_row, out)                             # [T, Ep, out] bf16
    hr = scatter_sum_pallas(dst_row, he, N)                                  # [T, N, out] f32
    return hr * d0_s[..., None]                                              # d0[dst] post-scale


def seprop_precompute(prm, embed_table, num):
    out = prm["fc_w"].shape[1]
    fused_G = pallas_linear(embed_table, prm["G_w"], out_dtype=jnp.bfloat16)  # bucket -> G(embed)
    w_stack = jnp.concatenate([prm["agg_w1"]] + [prm["agg_w2"] * (1.0 / num)] * num,
                              axis=0).astype(jnp.bfloat16)                   # mean folded into K
    bias = prm["agg_b"].reshape(1, out).astype(jnp.float32)
    return fused_G, w_stack, bias


def se_prop_all_times(prm, pre, h_t_stack, loc, edges_per_time, boundaries, N):
    # SpatialEvoProp.forward (transform=True, dropouts=0, residual=False, activation=None),
    # all 4 time keys batched into one edge kernel + one scatter kernel.
    fused_G, w_stack, bias = pre
    out = prm["fc_w"].shape[1]
    T = len(edges_per_time)
    num = edges_per_time[0][2].shape[1]

    feat_s = pallas_linear(h_t_stack.reshape(T * h_t_stack.shape[1], out),
                           prm["fc_w"], out_dtype=jnp.bfloat16
                           ).reshape(T, h_t_stack.shape[1], out)            # self.fc per time

    (src_s, dst_s, inter_s), valid, Ep = _pad_stack_edges(
        [list(e) for e in edges_per_time])
    validf = valid.astype(jnp.float32)
    d0_s, d2_s = jax.vmap(lambda s, d, v: degree_scales(s, d, N, v))(src_s, dst_s, validf)

    dist1 = jnp.linalg.norm(loc[dst_s] - loc[src_s], axis=-1)                # [T, Ep]
    de1 = fused_G[jnp.searchsorted(boundaries, dist1, side="left")]          # [T, Ep, out]
    inter_pos = loc[inter_s]                                                 # [T, Ep, num, 2]
    dist_ = jnp.linalg.norm(loc[src_s][:, :, None, :] - inter_pos, axis=-1)  # [T, Ep, num]
    de_ = fused_G[jnp.searchsorted(boundaries, dist_, side="left")]          # [T, Ep, num, out]
    h_src = jax.vmap(lambda f, idx: f[idx])(feat_s, src_s)                   # [T, Ep, out]
    inter_h = jax.vmap(lambda f, idx: f[idx])(feat_s, inter_s)               # [T, Ep, num, out]

    left = jnp.concatenate([de1, de_.reshape(T, Ep, num * out)], axis=-1)    # bf16 lane-dense
    right = jnp.concatenate([h_src, inter_h.reshape(T, Ep, num * out)], axis=-1)
    dd = (jnp.take_along_axis(d2_s, src_s, axis=1) * validf)[..., None]
    dst_row = jnp.where(valid, dst_s, -1).astype(jnp.int32)[:, None, :]

    hmsg = seprop_edge_pallas(left, right, dd, w_stack, bias, out)           # [T, Ep, out] bf16
    h_out = scatter_sum_pallas(dst_row, hmsg, N)                             # [T, N, out] f32
    return h_out * d0_s[..., None]


def spatial_evo_conv_forward(params, graph, feat):
    loc = graph["loc"]
    boundaries = graph["boundaries"]
    embed_table = params["dist_embed"]
    N = feat.shape[0]
    T = 4

    # Stage 1: HeteroGraphConv('sum') over the 4 relation TwoHopConvs, with the
    # 4 time keys of each relation batched into a single kernel pair.
    h_stack = None
    for r in REL_KEYS:
        pre = twohop_precompute(params["twohop"][r], feat, embed_table)
        edges_per_time = [graph["rel_edges"][(t, r)] for t in range(T)]
        hr = twohop_conv_all_times(pre, loc, edges_per_time, boundaries, N)  # [T, N, out]
        h_stack = hr if h_stack is None else h_stack + hr                    # aggregate='sum'

    # Stage 2: temporal merge ('sum') + SpatialEvoProp on the (i-1, i, i+1) edge union.
    num = graph["inter_ids"][0].shape[1]
    se_pre = seprop_precompute(params["seprop"], embed_table, num)
    h_t_stack = h_stack + jnp.roll(h_stack, 1, axis=0) + jnp.roll(h_stack, -1, axis=0)

    edges_per_time = []
    for i in range(T):
        i1, i2 = (i - 1) % T, (i + 1) % T
        src = jnp.concatenate([graph["time_edges"][j][0] for j in (i, i1, i2)])
        dst = jnp.concatenate([graph["time_edges"][j][1] for j in (i, i1, i2)])
        edges_per_time.append((src, dst, graph["inter_ids"][i]))
    h_out = se_prop_all_times(params["seprop"], se_pre, h_t_stack, loc,
                              edges_per_time, boundaries, N)                 # [T, N, out]
    return [h_out[i] for i in range(T)]


# ----------------------- parameters & synthetic graph -----------------------

def init_params(key, in_feats, out_feats, dist_dim, n_buckets):
    keys = iter(jax.random.split(key, 40))

    def w(shape):
        return jax.random.normal(next(keys), shape, jnp.float32) * 0.1

    twohop = {}
    for r in REL_KEYS:
        twohop[r] = {
            "fc2_w": w((in_feats, out_feats)),
            "fcd_w": w((dist_dim, out_feats)),
            "w1a": w((out_feats, out_feats)),   # fc_w1 acting on h2_dst
            "w1b": w((out_feats, out_feats)),   # fc_w1 acting on dist
            "w2a": w((out_feats, out_feats)),   # fc_w2 acting on h1_e
            "w2b": w((out_feats, out_feats)),   # fc_w2 acting on h2_src
            "a": w((1, out_feats)),             # vec_a
        }
    seprop = {
        "fc_w": w((out_feats, out_feats)),
        "agg_w1": w((out_feats, out_feats)),    # agg_fc acting on de1*h_src
        "agg_w2": w((out_feats, out_feats)),    # agg_fc acting on mean(de_*inter_h)
        "agg_b": w((out_feats,)),
        "G_w": w((dist_dim, out_feats)),
    }
    return {"twohop": twohop, "seprop": seprop,
            "dist_embed": w((n_buckets, dist_dim))}


def deterministic_inter_ids(src_np, dst_np, N, num):
    # TODO(synk): dgl.sampling.sample_neighbors (random, replace=True) has no clean
    # deterministic Pallas/JAX equivalent; replaced by a cyclic pick of each dst
    # node's in-neighbours.
    in_nbrs = [[] for _ in range(N)]
    for s, d in zip(src_np.tolist(), dst_np.tolist()):
        in_nbrs[int(d)].append(int(s))
    rows = []
    for d in dst_np.tolist():
        nb = in_nbrs[int(d)] or [int(d)]
        rows.append([nb[j % len(nb)] for j in range(num)])
    return jnp.array(rows, jnp.int32)


def build_graph(rng, N, E_rel, E_time, num_neighbor, loc, boundaries):
    rel_edges = {}
    for t in range(4):
        for r in REL_KEYS:
            src = rng.integers(0, N, E_rel)
            dst = rng.integers(0, N, E_rel)
            mid = rng.integers(0, N, E_rel)
            rel_edges[(t, r)] = (jnp.array(src, jnp.int32),
                                 jnp.array(dst, jnp.int32),
                                 jnp.array(mid, jnp.int32))
    time_edges_np = []
    for t in range(4):
        ring_src = (np.arange(N) + 1) % N          # guarantee every node has an in-neighbour
        ring_dst = np.arange(N)
        extra = E_time - N
        src = np.concatenate([ring_src, rng.integers(0, N, extra)])
        dst = np.concatenate([ring_dst, rng.integers(0, N, extra)])
        time_edges_np.append((src.astype(np.int32), dst.astype(np.int32)))
    time_edges = [(jnp.array(s), jnp.array(d)) for s, d in time_edges_np]
    inter_ids = []
    for i in range(4):
        i1, i2 = (i - 1) % 4, (i + 1) % 4
        usrc = np.concatenate([time_edges_np[j][0] for j in (i, i1, i2)])
        udst = np.concatenate([time_edges_np[j][1] for j in (i, i1, i2)])
        inter_ids.append(deterministic_inter_ids(usrc, udst, N, num_neighbor))
    return {"rel_edges": rel_edges, "time_edges": time_edges,
            "inter_ids": inter_ids, "loc": loc, "boundaries": boundaries}


# ----------------------------------- main ------------------------------------

if __name__ == "__main__":
    N, in_feats, out_feats, dist_dim, num_nb = 16, 16, 32, 8, 4
    n_boundaries = 8
    key = jax.random.PRNGKey(0)
    kp, kf, kl = jax.random.split(key, 3)

    params = init_params(kp, in_feats, out_feats, dist_dim, n_buckets=n_boundaries + 1)
    feat = jax.random.normal(kf, (N, in_feats), jnp.float32)
    loc = jax.random.uniform(kl, (N, 2), jnp.float32)
    boundaries = jnp.linspace(0.1, 1.5, n_boundaries)

    rng = np.random.default_rng(0)
    graph = build_graph(rng, N=N, E_rel=32, E_time=32,
                        num_neighbor=num_nb, loc=loc, boundaries=boundaries)

    forward = jax.jit(spatial_evo_conv_forward)
    outs = forward(params, graph, feat)
    outs = jax.block_until_ready(outs)

    assert len(outs) == 4
    assert all(o.shape == (N, out_feats) for o in outs)
    assert all(bool(jnp.all(jnp.isfinite(o))) for o in outs)
    print("KERNEL_OK")
</pallas_src>

<mosaic_0001>
module attributes {stable_mosaic.version = 11 : i64} {
  func.func private @main(%arg0: i32) attributes {dimension_semantics = [#tpu.dimension_semantics<core_parallel>], iteration_bounds = array<i64: 2>, tpu.core_type = #tpu.core_type<sc_scalar_subcore>, window_params = []} {
    return
  }
}

module attributes {stable_mosaic.version = 11 : i64} {
  func.func private @main(%arg0: i32) attributes {dimension_semantics = [#tpu.dimension_semantics<core_parallel>], iteration_bounds = array<i64: 2>, tpu.core_type = #tpu.core_type<sc_scalar_subcore>, window_params = []} {
    return
  }
}

module attributes {stable_mosaic.version = 11 : i64} {
  func.func @_linear_kernel(%arg0: i32, %arg1: memref<16x16xbf16, #tpu.memory_space<vmem>>, %arg2: memref<16x32xbf16, #tpu.memory_space<vmem>>, %arg3: memref<1x32xf32, #tpu.memory_space<vmem>>, %arg4: memref<16x32xbf16, #tpu.memory_space<vmem>>) attributes {dimension_semantics = [#tpu.dimension_semantics<parallel>], iteration_bounds = array<i64: 1>, scalar_prefetch = 0 : i64, scratch_operands = 0 : i64, tpu.core_type = #tpu.core_type<tc>, window_params = [{transform_indices = @transform_0, window_bounds = array<i64: 16, 16>}, {pipeline_mode = #tpu.pipeline_mode<synchronous>, transform_indices = @transform_1, window_bounds = array<i64: 16, 32>}, {pipeline_mode = #tpu.pipeline_mode<synchronous>, transform_indices = @transform_2, window_bounds = array<i64: 1, 32>}, {transform_indices = @transform_3, window_bounds = array<i64: 16, 32>}]} {
    %c0 = arith.constant 0 : index
    %c0_0 = arith.constant 0 : index
    %0 = vector.load %arg1[%c0, %c0_0] : memref<16x16xbf16, #tpu.memory_space<vmem>>, vector<16x16xbf16>
    %c0_1 = arith.constant 0 : index
    %c0_2 = arith.constant 0 : index
    %1 = vector.load %arg2[%c0_1, %c0_2] : memref<16x32xbf16, #tpu.memory_space<vmem>>, vector<16x32xbf16>
    %cst = arith.constant dense<0.000000e+00> : vector<16x32xf32>
    %2 = tpu.matmul %0, %1, %cst {dimension_numbers = #tpu.dot_dimension_numbers<[1], [0], [0], [1], [0, 0, 1, 1], [], []>} : vector<16x16xbf16>, vector<16x32xbf16>, vector<16x32xf32> -> vector<16x32xf32>
    %c0_3 = arith.constant 0 : index
    %c0_4 = arith.constant 0 : index
    %3 = vector.load %arg3[%c0_3, %c0_4] : memref<1x32xf32, #tpu.memory_space<vmem>>, vector<1x32xf32>
    %4 = vector.broadcast %3 : vector<1x32xf32> to vector<16x32xf32>
    %5 = arith.addf %2, %4 : vector<16x32xf32>
    %6 = arith.truncf %5 : vector<16x32xf32> to vector<16x32xbf16>
    %c0_5 = arith.constant 0 : index
    %c0_6 = arith.constant 0 : index
    %7 = vector.load %arg4[%c0_5, %c0_6] : memref<16x32xbf16, #tpu.memory_space<vmem>>, vector<16x32xbf16>
    tpu.vector_store %arg4[%c0_5, %c0_6], %6 {strides = array<i32>} : memref<16x32xbf16, #tpu.memory_space<vmem>>, vector<16x32xbf16>,
    return
  }
  func.func @transform_0(%arg0: i32) -> (i32, i32) {
    %c0_i32 = arith.constant 0 : i32
    %c0_i32_0 = arith.constant 0 : i32
    return %arg0, %c0_i32 : i32, i32
  }
  func.func @transform_1(%arg0: i32) -> (i32, i32) {
    %c0_i32 = arith.constant 0 : i32
    %c0_i32_0 = arith.constant 0 : i32
    %c0_i32_1 = arith.constant 0 : i32
    return %c0_i32, %c0_i32_0 : i32, i32
  }
  func.func @transform_2(%arg0: i32) -> (i32, i32) {
    %c0_i32 = arith.constant 0 : i32
    %c0_i32_0 = arith.constant 0 : i32
    %c0_i32_1 = arith.constant 0 : i32
    return %c0_i32, %c0_i32_0 : i32, i32
  }
  func.func @transform_3(%arg0: i32) -> (i32, i32) {
    %c0_i32 = arith.constant 0 : i32
    %c0_i32_0 = arith.constant 0 : i32
    return %arg0, %c0_i32 : i32, i32
  }
}

module attributes {stable_mosaic.version = 11 : i64} {
  func.func @_linear_kernel(%arg0: i32, %arg1: memref<16x8xbf16, #tpu.memory_space<vmem>>, %arg2: memref<8x32xbf16, #tpu.memory_space<vmem>>, %arg3: memref<1x32xf32, #tpu.memory_space<vmem>>, %arg4: memref<16x32xbf16, #tpu.memory_space<vmem>>) attributes {dimension_semantics = [#tpu.dimension_semantics<parallel>], iteration_bounds = array<i64: 1>, scalar_prefetch = 0 : i64, scratch_operands = 0 : i64, tpu.core_type = #tpu.core_type<tc>, window_params = [{transform_indices = @transform_0, window_bounds = array<i64: 16, 8>}, {pipeline_mode = #tpu.pipeline_mode<synchronous>, transform_indices = @transform_1, window_bounds = array<i64: 8, 32>}, {pipeline_mode = #tpu.pipeline_mode<synchronous>, transform_indices = @transform_2, window_bounds = array<i64: 1, 32>}, {transform_indices = @transform_3, window_bounds = array<i64: 16, 32>}]} {
    %c0 = arith.constant 0 : index
    %c0_0 = arith.constant 0 : index
    %0 = vector.load %arg1[%c0, %c0_0] : memref<16x8xbf16, #tpu.memory_space<vmem>>, vector<16x8xbf16>
    %c0_1 = arith.constant 0 : index
    %c0_2 = arith.constant 0 : index
    %1 = vector.load %arg2[%c0_1, %c0_2] : memref<8x32xbf16, #tpu.memory_space<vmem>>, vector<8x32xbf16>
    %cst = arith.constant dense<0.000000e+00> : vector<16x32xf32>
    %2 = tpu.matmul %0, %1, %cst {dimension_numbers = #tpu.dot_dimension_numbers<[1], [0], [0], [1], [0, 0, 1, 1], [], []>} : vector<16x8xbf16>, vector<8x32xbf16>, vector<16x32xf32> -> vector<16x32xf32>
    %c0_3 = arith.constant 0 : index
    %c0_4 = arith.constant 0 : index
    %3 = vector.load %arg3[%c0_3, %c0_4] : memref<1x32xf32, #tpu.memory_space<vmem>>, vector<1x32xf32>
    %4 = vector.broadcast %3 : vector<1x32xf32> to vector<16x32xf32>
    %5 = arith.addf %2, %4 : vector<16x32xf32>
    %6 = arith.truncf %5 : vector<16x32xf32> to vector<16x32xbf16>
    %c0_5 = arith.constant 0 : index
    %c0_6 = arith.constant 0 : index
    %7 = vector.load %arg4[%c0_5, %c0_6] : memref<16x32xbf16, #tpu.memory_space<vmem>>, vector<16x32xbf16>
    tpu.vector_store %arg4[%c0_5, %c0_6], %6 {strides = array<i32>} : memref<16x32xbf16, #tpu.memory_space<vmem>>, vector<16x32xbf16>,
    return
  }
  func.func @transform_0(%arg0: i32) -> (i32, i32) {
    %c0_i32 = arith.constant 0 : i32
    %c0_i32_0 = arith.constant 0 : i32
    return %arg0, %c0_i32 : i32, i32
  }
  func.func @transform_1(%arg0: i32) -> (i32, i32) {
    %c0_i32 = arith.constant 0 : i32
    %c0_i32_0 = arith.constant 0 : i32
    %c0_i32_1 = arith.constant 0 : i32
    return %c0_i32, %c0_i32_0 : i32, i32
  }
  func.func @transform_2(%arg0: i32) -> (i32, i32) {
    %c0_i32 = arith.constant 0 : i32
    %c0_i32_0 = arith.constant 0 : i32
    %c0_i32_1 = arith.constant 0 : i32
    return %c0_i32, %c0_i32_0 : i32, i32
  }
  func.func @transform_3(%arg0: i32) -> (i32, i32) {
    %c0_i32 = arith.constant 0 : i32
    %c0_i32_0 = arith.constant 0 : i32
    return %arg0, %c0_i32 : i32, i32
  }
}

module attributes {stable_mosaic.version = 11 : i64} {
  func.func @_twohop_edge_kernel(%arg0: i32, %arg1: i32, %arg2: memref<1x128x128xbf16, #tpu.memory_space<vmem>>, %arg3: memref<1x128x1xf32, #tpu.memory_space<vmem>>, %arg4: memref<1x128xbf16, #tpu.memory_space<vmem>>, %arg5: memref<1x128x32xbf16, #tpu.memory_space<vmem>>) attributes {dimension_semantics = [#tpu.dimension_semantics<parallel>, #tpu.dimension_semantics<parallel>], iteration_bounds = array<i64: 4, 1>, scalar_prefetch = 0 : i64, scratch_operands = 0 : i64, tpu.core_type = #tpu.core_type<tc>, window_params = [{transform_indices = @transform_0, window_bounds = array<i64: 1, 128, 128>}, {transform_indices = @transform_1, window_bounds = array<i64: 1, 128, 1>}, {pipeline_mode = #tpu.pipeline_mode<synchronous>, transform_indices = @transform_2, window_bounds = array<i64: 1, 128>}, {transform_indices = @transform_3, window_bounds = array<i64: 1, 128, 32>}]} {
    %c0 = arith.constant 0 : index
    %c0_0 = arith.constant 0 : index
    %c0_1 = arith.constant 0 : index
    %0 = vector.load %arg2[%c0, %c0_0, %c0_1] : memref<1x128x128xbf16, #tpu.memory_space<vmem>>, vector<1x128x128xbf16>
    %1 = vector.shape_cast %0 : vector<1x128x128xbf16> to vector<128x128xbf16>
    %c0_2 = arith.constant 0 : index
    %c0_3 = arith.constant 0 : index
    %2 = vector.load %arg4[%c0_2, %c0_3] : memref<1x128xbf16, #tpu.memory_space<vmem>>, vector<1x128xbf16>
    %3 = vector.broadcast %2 : vector<1x128xbf16> to vector<128x128xbf16>
    %4 = arith.mulf %1, %3 : vector<128x128xbf16>
    %5 = arith.extf %4 : vector<128x128xbf16> to vector<128x128xf32>
    %cst = arith.constant dense<0.000000e+00> : vector<128xf32>
    %6 = vector.multi_reduction <add>, %5, %cst [1] : vector<128x128xf32> to vector<128xf32>
    %7 = vector.shape_cast %6 : vector<128xf32> to vector<128x1xf32>
    %8 = arith.negf %7 : vector<128x1xf32>
    %9 = math.exp %8 : vector<128x1xf32>
    %cst_4 = arith.constant 1.000000e+00 : f32
    %10 = vector.broadcast %cst_4 : f32 to vector<128x1xf32>
    %11 = arith.addf %10, %9 : vector<128x1xf32>
    %12 = arith.divf %10, %11 : vector<128x1xf32>
    %13 = arith.truncf %12 : vector<128x1xf32> to vector<128x1xbf16>
    %14 = vector.extract_strided_slice %1 {offsets = [0, 64], sizes = [128, 32], strides = [1, 1]} : vector<128x128xbf16> to vector<128x32xbf16>
    %15 = vector.extract_strided_slice %1 {offsets = [0, 96], sizes = [128, 32], strides = [1, 1]} : vector<128x128xbf16> to vector<128x32xbf16>
    %16 = vector.broadcast %13 : vector<128x1xbf16> to vector<128x32xbf16>
    %17 = arith.mulf %16, %15 : vector<128x32xbf16>
    %18 = arith.addf %17, %14 : vector<128x32xbf16>
    %c0_5 = arith.constant 0 : index
    %c0_6 = arith.constant 0 : index
    %c0_7 = arith.constant 0 : index
    %19 = vector.load %arg3[%c0_5, %c0_6, %c0_7] : memref<1x128x1xf32, #tpu.memory_space<vmem>>, vector<1x128x1xf32>
    %20 = vector.shape_cast %19 : vector<1x128x1xf32> to vector<128x1xf32>
    %21 = arith.truncf %20 : vector<128x1xf32> to vector<128x1xbf16>
    %22 = vector.broadcast %21 : vector<128x1xbf16> to vector<128x32xbf16>
    %23 = arith.mulf %18, %22 : vector<128x32xbf16>
    %24 = vector.shape_cast %23 : vector<128x32xbf16> to vector<1x128x32xbf16>
    %c0_8 = arith.constant 0 : index
    %c0_9 = arith.constant 0 : index
    %c0_10 = arith.constant 0 : index
    %25 = vector.load %arg5[%c0_8, %c0_9, %c0_10] : memref<1x128x32xbf16, #tpu.memory_space<vmem>>, vector<1x128x32xbf16>
    tpu.vector_store %arg5[%c0_8, %c0_9, %c0_10], %24 {strides = array<i32>} : memref<1x128x32xbf16, #tpu.memory_space<vmem>>, vector<1x128x32xbf16>,
    return
  }
  func.func @transform_0(%arg0: i32, %arg1: i32) -> (i32, i32, i32) {
    %c0_i32 = arith.constant 0 : i32
    %c0_i32_0 = arith.constant 0 : i32
    return %arg0, %arg1, %c0_i32 : i32, i32, i32
  }
  func.func @transform_1(%arg0: i32, %arg1: i32) -> (i32, i32, i32) {
    %c0_i32 = arith.constant 0 : i32
    %c0_i32_0 = arith.constant 0 : i32
    return %arg0, %arg1, %c0_i32 : i32, i32, i32
  }
  func.func @transform_2(%arg0: i32, %arg1: i32) -> (i32, i32) {
    %c0_i32 = arith.constant 0 : i32
    %c0_i32_0 = arith.constant 0 : i32
    %c0_i32_1 = arith.constant 0 : i32
    return %c0_i32, %c0_i32_0 : i32, i32
  }
  func.func @transform_3(%arg0: i32, %arg1: i32) -> (i32, i32, i32) {
    %c0_i32 = arith.constant 0 : i32
    %c0_i32_0 = arith.constant 0 : i32
    return %arg0, %arg1, %c0_i32 : i32, i32, i32
  }
}

module attributes {stable_mosaic.version = 11 : i64} {
  func.func @_scatter_kernel(%arg0: i32, %arg1: i32, %arg2: i32, %arg3: memref<1x1x128xi32, #tpu.memory_space<vmem>>, %arg4: memref<1x128x32xbf16, #tpu.memory_space<vmem>>, %arg5: memref<1x16x32xf32, #tpu.memory_space<vmem>>) attributes {dimension_semantics = [#tpu.dimension_semantics<parallel>, #tpu.dimension_semantics<parallel>, #tpu.dimension_semantics<arbitrary>], iteration_bounds = array<i64: 4, 1, 1>, scalar_prefetch = 0 : i64, scratch_operands = 0 : i64, tpu.core_type = #tpu.core_type<tc>, window_params = [{transform_indices = @transform_0, window_bounds = array<i64: 1, 1, 128>}, {transform_indices = @transform_1, window_bounds = array<i64: 1, 128, 32>}, {transform_indices = @transform_2, window_bounds = array<i64: 1, 16, 32>}]} {
    %c0_i32 = arith.constant 0 : i32
    %0 = arith.cmpi eq, %arg2, %c0_i32 : i32
    %1 = arith.extui %0 : i1 to i32
    %c0_i32_0 = arith.constant 0 : i32
    %2 = arith.cmpi ne, %1, %c0_i32_0 : i32
    scf.if %2 {
      %cst_12 = arith.constant 0.000000e+00 : f32
      %22 = vector.broadcast %cst_12 : f32 to vector<1x16x32xf32>
      %c0_13 = arith.constant 0 : index
      %c0_14 = arith.constant 0 : index
      %c0_15 = arith.constant 0 : index
      %23 = vector.load %arg5[%c0_13, %c0_14, %c0_15] : memref<1x16x32xf32, #tpu.memory_space<vmem>>, vector<1x16x32xf32>
      tpu.vector_store %arg5[%c0_13, %c0_14, %c0_15], %22 {strides = array<i32>} : memref<1x16x32xf32, #tpu.memory_space<vmem>>, vector<1x16x32xf32>,
    } else {
    }
    %c16_i32 = arith.constant 16 : i32
    %3 = arith.muli %arg1, %c16_i32 : i32
    %4 = tpu.iota {dimensions = array<i32: 0>} : vector<16x1xi32>
    %5 = vector.broadcast %3 : i32 to vector<16x1xi32>
    %6 = arith.addi %4, %5 : vector<16x1xi32>
    %c0 = arith.constant 0 : index
    %c0_1 = arith.constant 0 : index
    %c0_2 = arith.constant 0 : index
    %7 = vector.load %arg3[%c0, %c0_1, %c0_2] : memref<1x1x128xi32, #tpu.memory_space<vmem>>, vector<1x1x128xi32>
    %8 = vector.shape_cast %7 : vector<1x1x128xi32> to vector<1x128xi32>
    %9 = vector.broadcast %6 : vector<16x1xi32> to vector<16x128xi32>
    %10 = vector.broadcast %8 : vector<1x128xi32> to vector<16x128xi32>
    %11 = arith.cmpi eq, %9, %10 : vector<16x128xi32>
    %12 = arith.extui %11 : vector<16x128xi1> to vector<16x128xi32>
    %13 = arith.sitofp %12 : vector<16x128xi32> to vector<16x128xf32>
    %14 = arith.truncf %13 : vector<16x128xf32> to vector<16x128xbf16>
    %c0_3 = arith.constant 0 : index
    %c0_4 = arith.constant 0 : index
    %c0_5 = arith.constant 0 : index
    %15 = vector.load %arg5[%c0_3, %c0_4, %c0_5] : memref<1x16x32xf32, #tpu.memory_space<vmem>>, vector<1x16x32xf32>
    %c0_6 = arith.constant 0 : index
    %c0_7 = arith.constant 0 : index
    %c0_8 = arith.constant 0 : index
    %16 = vector.load %arg4[%c0_6, %c0_7, %c0_8] : memref<1x128x32xbf16, #tpu.memory_space<vmem>>, vector<1x128x32xbf16>
    %17 = vector.shape_cast %16 : vector<1x128x32xbf16> to vector<128x32xbf16>
    %cst = arith.constant dense<0.000000e+00> : vector<16x32xf32>
    %18 = tpu.matmul %14, %17, %cst {dimension_numbers = #tpu.dot_dimension_numbers<[1], [0], [0], [1], [0, 0, 1, 1], [], []>} : vector<16x128xbf16>, vector<128x32xbf16>, vector<16x32xf32> -> vector<16x32xf32>
    %19 = vector.shape_cast %18 : vector<16x32xf32> to vector<1x16x32xf32>
    %20 = arith.addf %15, %19 : vector<1x16x32xf32>
    %c0_9 = arith.constant 0 : index
    %c0_10 = arith.constant 0 : index
    %c0_11 = arith.constant 0 : index
    %21 = vector.load %arg5[%c0_9, %c0_10, %c0_11] : memref<1x16x32xf32, #tpu.memory_space<vmem>>, vector<1x16x32xf32>
    tpu.vector_store %arg5[%c0_9, %c0_10, %c0_11], %20 {strides = array<i32>} : memref<1x16x32xf32, #tpu.memory_space<vmem>>, vector<1x16x32xf32>,
    return
  }
  func.func @transform_0(%arg0: i32, %arg1: i32, %arg2: i32) -> (i32, i32, i32) {
    %c0_i32 = arith.constant 0 : i32
    %c0_i32_0 = arith.constant 0 : i32
    return %arg0, %c0_i32, %arg2 : i32, i32, i32
  }
  func.func @transform_1(%arg0: i32, %arg1: i32, %arg2: i32) -> (i32, i32, i32) {
    %c0_i32 = arith.constant 0 : i32
    %c0_i32_0 = arith.constant 0 : i32
    return %arg0, %arg2, %c0_i32 : i32, i32, i32
  }
  func.func @transform_2(%arg0: i32, %arg1: i32, %arg2: i32) -> (i32, i32, i32) {
    %c0_i32 = arith.constant 0 : i32
    %c0_i32_0 = arith.constant 0 : i32
    return %arg0, %arg1, %c0_i32 : i32, i32, i32
  }
}

module attributes {stable_mosaic.version = 11 : i64} {
  func.func @_linear_kernel(%arg0: i32, %arg1: memref<64x32xbf16, #tpu.memory_space<vmem>>, %arg2: memref<32x32xbf16, #tpu.memory_space<vmem>>, %arg3: memref<1x32xf32, #tpu.memory_space<vmem>>, %arg4: memref<64x32xbf16, #tpu.memory_space<vmem>>) attributes {dimension_semantics = [#tpu.dimension_semantics<parallel>], iteration_bounds = array<i64: 1>, scalar_prefetch = 0 : i64, scratch_operands = 0 : i64, tpu.core_type = #tpu.core_type<tc>, window_params = [{transform_indices = @transform_0, window_bounds = array<i64: 64, 32>}, {pipeline_mode = #tpu.pipeline_mode<synchronous>, transform_indices = @transform_1, window_bounds = array<i64: 32, 32>}, {pipeline_mode = #tpu.pipeline_mode<synchronous>, transform_indices = @transform_2, window_bounds = array<i64: 1, 32>}, {transform_indices = @transform_3, window_bounds = array<i64: 64, 32>}]} {
    %c0 = arith.constant 0 : index
    %c0_0 = arith.constant 0 : index
    %0 = vector.load %arg1[%c0, %c0_0] : memref<64x32xbf16, #tpu.memory_space<vmem>>, vector<64x32xbf16>
    %c0_1 = arith.constant 0 : index
    %c0_2 = arith.constant 0 : index
    %1 = vector.load %arg2[%c0_1, %c0_2] : memref<32x32xbf16, #tpu.memory_space<vmem>>, vector<32x32xbf16>
    %cst = arith.constant dense<0.000000e+00> : vector<64x32xf32>
    %2 = tpu.matmul %0, %1, %cst {dimension_numbers = #tpu.dot_dimension_numbers<[1], [0], [0], [1], [0, 0, 1, 1], [], []>} : vector<64x32xbf16>, vector<32x32xbf16>, vector<64x32xf32> -> vector<64x32xf32>
    %c0_3 = arith.constant 0 : index
    %c0_4 = arith.constant 0 : index
    %3 = vector.load %arg3[%c0_3, %c0_4] : memref<1x32xf32, #tpu.memory_space<vmem>>, vector<1x32xf32>
    %4 = vector.broadcast %3 : vector<1x32xf32> to vector<64x32xf32>
    %5 = arith.addf %2, %4 : vector<64x32xf32>
    %6 = arith.truncf %5 : vector<64x32xf32> to vector<64x32xbf16>
    %c0_5 = arith.constant 0 : index
    %c0_6 = arith.constant 0 : index
    %7 = vector.load %arg4[%c0_5, %c0_6] : memref<64x32xbf16, #tpu.memory_space<vmem>>, vector<64x32xbf16>
    tpu.vector_store %arg4[%c0_5, %c0_6], %6 {strides = array<i32>} : memref<64x32xbf16, #tpu.memory_space<vmem>>, vector<64x32xbf16>,
    return
  }
  func.func @transform_0(%arg0: i32) -> (i32, i32) {
    %c0_i32 = arith.constant 0 : i32
    %c0_i32_0 = arith.constant 0 : i32
    return %arg0, %c0_i32 : i32, i32
  }
  func.func @transform_1(%arg0: i32) -> (i32, i32) {
    %c0_i32 = arith.constant 0 : i32
    %c0_i32_0 = arith.constant 0 : i32
    %c0_i32_1 = arith.constant 0 : i32
    return %c0_i32, %c0_i32_0 : i32, i32
  }
  func.func @transform_2(%arg0: i32) -> (i32, i32) {
    %c0_i32 = arith.constant 0 : i32
    %c0_i32_0 = arith.constant 0 : i32
    %c0_i32_1 = arith.constant 0 : i32
    return %c0_i32, %c0_i32_0 : i32, i32
  }
  func.func @transform_3(%arg0: i32) -> (i32, i32) {
    %c0_i32 = arith.constant 0 : i32
    %c0_i32_0 = arith.constant 0 : i32
    return %arg0, %c0_i32 : i32, i32
  }
}

module attributes {stable_mosaic.version = 11 : i64} {
  func.func @_seprop_edge_kernel(%arg0: i32, %arg1: i32, %arg2: memref<1x128x160xbf16, #tpu.memory_space<vmem>>, %arg3: memref<1x128x160xbf16, #tpu.memory_space<vmem>>, %arg4: memref<1x128x1xf32, #tpu.memory_space<vmem>>, %arg5: memref<160x32xbf16, #tpu.memory_space<vmem>>, %arg6: memref<1x32xf32, #tpu.memory_space<vmem>>, %arg7: memref<1x128x32xbf16, #tpu.memory_space<vmem>>) attributes {dimension_semantics = [#tpu.dimension_semantics<parallel>, #tpu.dimension_semantics<parallel>], iteration_bounds = array<i64: 4, 1>, scalar_prefetch = 0 : i64, scratch_operands = 0 : i64, tpu.core_type = #tpu.core_type<tc>, window_params = [{transform_indices = @transform_0, window_bounds = array<i64: 1, 128, 160>}, {transform_indices = @transform_1, window_bounds = array<i64: 1, 128, 160>}, {transform_indices = @transform_2, window_bounds = array<i64: 1, 128, 1>}, {pipeline_mode = #tpu.pipeline_mode<synchronous>, transform_indices = @transform_3, window_bounds = array<i64: 160, 32>}, {pipeline_mode = #tpu.pipeline_mode<synchronous>, transform_indices = @transform_4, window_bounds = array<i64: 1, 32>}, {transform_indices = @transform_5, window_bounds = array<i64: 1, 128, 32>}]} {
    %c0 = arith.constant 0 : index
    %c0_0 = arith.constant 0 : index
    %c0_1 = arith.constant 0 : index
    %0 = vector.load %arg2[%c0, %c0_0, %c0_1] : memref<1x128x160xbf16, #tpu.memory_space<vmem>>, vector<1x128x160xbf16>
    %1 = vector.shape_cast %0 : vector<1x128x160xbf16> to vector<128x160xbf16>
    %c0_2 = arith.constant 0 : index
    %c0_3 = arith.constant 0 : index
    %c0_4 = arith.constant 0 : index
    %2 = vector.load %arg3[%c0_2, %c0_3, %c0_4] : memref<1x128x160xbf16, #tpu.memory_space<vmem>>, vector<1x128x160xbf16>
    %3 = vector.shape_cast %2 : vector<1x128x160xbf16> to vector<128x160xbf16>
    %4 = arith.mulf %1, %3 : vector<128x160xbf16>
    %c0_5 = arith.constant 0 : index
    %c0_6 = arith.constant 0 : index
    %5 = vector.load %arg5[%c0_5, %c0_6] : memref<160x32xbf16, #tpu.memory_space<vmem>>, vector<160x32xbf16>
    %cst = arith.constant dense<0.000000e+00> : vector<128x32xf32>
    %6 = tpu.matmul %4, %5, %cst {dimension_numbers = #tpu.dot_dimension_numbers<[1], [0], [0], [1], [0, 0, 1, 1], [], []>} : vector<128x160xbf16>, vector<160x32xbf16>, vector<128x32xf32> -> vector<128x32xf32>
    %c0_7 = arith.constant 0 : index
    %c0_8 = arith.constant 0 : index
    %7 = vector.load %arg6[%c0_7, %c0_8] : memref<1x32xf32, #tpu.memory_space<vmem>>, vector<1x32xf32>
    %8 = vector.broadcast %7 : vector<1x32xf32> to vector<128x32xf32>
    %9 = arith.addf %6, %8 : vector<128x32xf32>
    %c0_9 = arith.constant 0 : index
    %c0_10 = arith.constant 0 : index
    %c0_11 = arith.constant 0 : index
    %10 = vector.load %arg4[%c0_9, %c0_10, %c0_11] : memref<1x128x1xf32, #tpu.memory_space<vmem>>, vector<1x128x1xf32>
    %11 = vector.shape_cast %10 : vector<1x128x1xf32> to vector<128x1xf32>
    %12 = vector.broadcast %11 : vector<128x1xf32> to vector<128x32xf32>
    %13 = arith.mulf %9, %12 : vector<128x32xf32>
    %14 = arith.truncf %13 : vector<128x32xf32> to vector<128x32xbf16>
    %15 = vector.shape_cast %14 : vector<128x32xbf16> to vector<1x128x32xbf16>
    %c0_12 = arith.constant 0 : index
    %c0_13 = arith.constant 0 : index
    %c0_14 = arith.constant 0 : index
    %16 = vector.load %arg7[%c0_12, %c0_13, %c0_14] : memref<1x128x32xbf16, #tpu.memory_space<vmem>>, vector<1x128x32xbf16>
    tpu.vector_store %arg7[%c0_12, %c0_13, %c0_14], %15 {strides = array<i32>} : memref<1x128x32xbf16, #tpu.memory_space<vmem>>, vector<1x128x32xbf16>,
    return
  }
  func.func @transform_0(%arg0: i32, %arg1: i32) -> (i32, i32, i32) {
    %c0_i32 = arith.constant 0 : i32
    %c0_i32_0 = arith.constant 0 : i32
    return %arg0, %arg1, %c0_i32 : i32, i32, i32
  }
  func.func @transform_1(%arg0: i32, %arg1: i32) -> (i32, i32, i32) {
    %c0_i32 = arith.constant 0 : i32
    %c0_i32_0 = arith.constant 0 : i32
    return %arg0, %arg1, %c0_i32 : i32, i32, i32
  }
  func.func @transform_2(%arg0: i32, %arg1: i32) -> (i32, i32, i32) {
    %c0_i32 = arith.constant 0 : i32
    %c0_i32_0 = arith.constant 0 : i32
    return %arg0, %arg1, %c0_i32 : i32, i32, i32
  }
  func.func @transform_3(%arg0: i32, %arg1: i32) -> (i32, i32) {
    %c0_i32 = arith.constant 0 : i32
    %c0_i32_0 = arith.constant 0 : i32
    %c0_i32_1 = arith.constant 0 : i32
    return %c0_i32, %c0_i32_0 : i32, i32
  }
  func.func @transform_4(%arg0: i32, %arg1: i32) -> (i32, i32) {
    %c0_i32 = arith.constant 0 : i32
    %c0_i32_0 = arith.constant 0 : i32
    %c0_i32_1 = arith.constant 0 : i32
    return %c0_i32, %c0_i32_0 : i32, i32
  }
  func.func @transform_5(%arg0: i32, %arg1: i32) -> (i32, i32, i32) {
    %c0_i32 = arith.constant 0 : i32
    %c0_i32_0 = arith.constant 0 : i32
    return %arg0, %arg1, %c0_i32 : i32, i32, i32
  }
}

</mosaic_0001>

<bundles_post_ra>
// kernel: custom-call.42
= control target key start
LH: loop header
LB: loop body
LE: loop exit
PB: predicated region body
PF: predicated region fallthrough
CT: control target
= control target key end

     0   :  { %s6_s0 = inlined_call_operand.vmem [shape: u32[4,128], index: 0, kind: output, shape index: {}]  }

// kernel: spatial_evo_conv_forward.28
= control target key start
LH: loop header
LB: loop body
LE: loop exit
PB: predicated region body
PF: predicated region fallthrough
CT: control target
= control target key end

     0   :  { %v117_v0 = vmov 0.0   ;;  %vm118_vm0 = vmmov 0   ;;  %vm37_vm1 = vcmask 130048   ;;  %vm90_vm2 = vcmask 257024   ;;  %s154_s1 = inlined_call_operand.vmem [shape: bf16[16,32], index: 1, kind: input, shape index: {}]   ;;  %s155_s0 = inlined_call_operand.vmem [shape: bf16[16,16], index: 0, kind: input, shape index: {}]   ;;  %s156_s2 = inlined_call_operand.vmem [shape: f32[1,32], index: 2, kind: input, shape index: {}]   ;;  %s157_s3 = inlined_call_operand.vmem [shape: bf16[16,32], index: 3, kind: output, shape index: {}]  }
   0x1   :  { %107 = vmatprep.subr.bf16.mxu0 %v117_v0  ;;  %v115_v1 = vld [vmem:[%s154_s1] sm:$0xff]   ;;  %109 = vmatprep.mubr.msk.bf16.mxu0 %vm118_vm0, %v117_v0 }
   0x2   :  { %v116_v2 = vld [vmem:[%s155_s0] sm:$0xff]   ;;  %108 = vmatpush3.bf16.msra.mxu0 %v115_v1 }
   0x3   :  { %v97_v3 = vld [vmem:[%s156_s2] ss:$0 sm:$0xff] }
   0x5   :  { %110 = vmatmul.mubr.msk.bf16.vlgmr.msra.gmra.mrb[0].mxu0 %vm37_vm1, %v116_v2 }
  0xd8   :  { %v75_v4 = vpop.f32.mrb[0].mxu0 }
  0xd9   :  { %v76_v5 = vadd.f32 %v97_v3, %v75_v4  ;;  %v111_v6 = vpop.f32.mrb[1].mxu0 }
  0xda   :  { %v78_v7 = vpop.f32.mrb[2].mxu0 }
  0xdb   :  { %v103_v8 = vpack.c.bf16 %v76_v5, %v76_v5  ;;  %v79_v9 = vadd.f32 %v97_v3, %v78_v7  ;;  %v112_v10 = vpop.f32.mrb[3].mxu0 }
  0xdd   :  { %91 = vst.msk [vmem:[%s157_s3] sm:$0xf] %vm90_vm2, %v103_v8  ;;  %v104_v11 = vpack.c.bf16 %v79_v9, %v79_v9 }
  0xdf   :  { %92 = vst.msk [vmem:[%s157_s3 + $0x4] sm:$0xf] %vm90_vm2, %v104_v11 }

// kernel: custom-call.36
= control target key start
LH: loop header
LB: loop body
LE: loop exit
PB: predicated region body
PF: predicated region fallthrough
CT: control target
= control target key end

     0   :  { %s6_s0 = inlined_call_operand.vmem [shape: u32[4,128,4], index: 0, kind: output, shape index: {}]  }

// kernel: spatial_evo_conv_forward.29
= control target key start
LH: loop header
LB: loop body
LE: loop exit
PB: predicated region body
PF: predicated region fallthrough
CT: control target
= control target key end

     0   :  { %vm35_vm0 = vcmask 1043456   ;;  %v152_v1 = vmov 0.0   ;;  %vm153_vm1 = vmmov 0   ;;  %vm31_vm2 = vcmask 64512   ;;  %s198_s0 = inlined_call_operand.vmem [shape: bf16[16,8], index: 0, kind: input, shape index: {}]   ;;  %s199_s1 = inlined_call_operand.vmem [shape: bf16[8,32], index: 1, kind: input, shape index: {}]   ;;  %s200_s2 = inlined_call_operand.vmem [shape: f32[1,32], index: 2, kind: input, shape index: {}]   ;;  %s201_s3 = inlined_call_operand.hbm [shape: bf16[16,32], index: 3, kind: output, shape index: {}]  }
   0x1   :  { %v18_v0 = vld [vmem:[%s199_s1] sm:$0xf]  ;;  %116 = vmatprep.subr.bf16.mxu0 %v152_v1  ;;  %118 = vmatprep.mubr.msk.bf16.mxu0 %vm153_vm1, %v152_v1 }
   0x2   :  { %v37_v2 = vsel %vm35_vm0, %v18_v0, 0  ;;  %v127_v3 = vld [vmem:[%s198_s0] sm:$0xff]  }
   0x3   :  { %117 = vmatpush3.bf16.msra.mxu0 %v37_v2 }
   0x4   :  { %8 = vsyncpa [#allocation3], 0  ;;  %v107_v4 = vld [vmem:[%s200_s2] ss:$0 sm:$0xff]  ;;  %s154_s1 = smov [#allocation2]   ;;  %vm88_vm3 = vcmask 257024  }
   0x5   :  { %s96_s18 = sshll.u32 %s154_s1, 4  ;;  %s97_s18 = int_to_ptr.vmem [resolvable:$true] %s96_s18 }
   0x6   :  { %119 = vmatmul.mubr.msk.bf16.vlgmr.msra.gmra.mrb[0].mxu0 %vm31_vm2, %v127_v3  ;;  %s128_s0 = scalar_lea.vmem %s97_s18, 128  ;;  %p133_p1 = scmp.lt.s32.totalorder %s97_s18, %s97_s18 }
   0x7   :  { %p129_p0 = scmp.ne.s32.totalorder %s97_s18, %s128_s0  ;;  %p134_p2 = scmp.lt.s32.totalorder %s128_s0, %s128_s0 }
   0x9   :  { %p135_p3 = por %p134_p2, %p133_p1 }
   0xb   :  { %p136_p4 = pnand %p135_p3, %p129_p0 }
  0xd9   :  { %v73_v5 = vpop.f32.mrb[0].mxu0 }
  0xda   :  { %v74_v6 = vadd.f32 %v107_v4, %v73_v5  ;;  %v120_v7 = vpop.f32.mrb[1].mxu0 }
  0xdb   :  { %v76_v8 = vpop.f32.mrb[2].mxu0 }
  0xdc   :  { %v112_v9 = vpack.c.bf16 %v74_v6, %v74_v6  ;;  %v77_v10 = vadd.f32 %v107_v4, %v76_v8  ;;  %v121_v11 = vpop.f32.mrb[3].mxu0 }
  0xde   :  { %89 = vst.msk [vmem:[#allocation2] sm:$0xf] %vm88_vm3, %v112_v9  ;;  %v113_v12 = vpack.c.bf16 %v77_v10, %v77_v10 }
  0xe0   :  { %90 = vst.msk [vmem:[#allocation2 + $0x4] sm:$0xf] %vm88_vm3, %v113_v12 }
  0xe1   :  { %139 = shalt.err (!%p136_p4)
}
  0xe2   :  { %s140_s20 = scalar_lea.hbm %s201_s3, 128 }
  0xe3   :  { %p141_p5 = scmp.ne.s32.totalorder %s201_s3, %s140_s20  ;;  %p144_p6 = scmp.lt.u32.totalorder %s140_s20, %s201_s3 }
  0xe5   :  { %p146_p7 = pnand %p144_p6, %p141_p5 }
  0xe7   :  { %149 = shalt.err (!%p146_p7)
}
  0xe8   :  { %s155_s25 = smov 64   ;;  %s156_s26 = smov 4  }
  0xe9   :  { %102 = dma.vmem_to_hbm [thread:$0]  %s97_s18, 128, %s201_s3, [#allocation3], %s155_s25, %s155_s25, %s156_s26  }
  0xea   :  { %150 = dma.done.wait [#allocation3], 128  }
  0xeb   :  { %151 = vsyncadd [#allocation3], 4294967168 }
  0xec   :  { %106 = vsyncpa [#allocation3], 1 }

// kernel: squeeze.33
= control target key start
LH: loop header
LB: loop body
LE: loop exit
PB: predicated region body
PF: predicated region fallthrough
CT: control target
= control target key end

     0   :  { %s1883_s8 = smov 120   ;;  %s1884_s9 = smov 124   ;;  %vm3_vm0 = vcmask 31744   ;;  %s4050_s0 = inlined_call_operand.vmem [shape: f32[2048], index: 0, kind: input, shape index: {}]   ;;  %s4051_s1 = inlined_call_operand.vmem [shape: f32[4,128,4], index: 1, kind: output, shape index: {}]  }
   0x1   :  { %v1927_v0 = vld [vmem:[%s4050_s0] sm:$0xff]   ;;  %v1934_v1 = vld [vmem:[%s4050_s0 + $0x8] sm:$0xff]   ;;  %s1885_s12 = smov 116   ;;  %s1886_s13 = smov 112  }
   0x2   :  { %80 = vrot.lane.b32.xlu1 %v1927_v0, %s1883_s8  ;;  %39 = vrot.lane.b32.xlu0 %v1927_v0, %s1884_s9  ;;  %s1887_s14 = smov 108   ;;  %s1888_s15 = smov 104   ;;  %v2_v2 = vld [vmem:[%s4050_s0] sm:$0xff]   ;;  %v1316_v3 = vld [vmem:[%s4050_s0 + $0x8] sm:$0xff]  }
   0x3   :  { %s1889_s16 = smov 100   ;;  %s1890_s17 = smov 96   ;;  %4 = vst.msk [vmem:[%s4051_s1] sm:$0x1] %vm3_vm0, %v2_v2   ;;  %1309 = vst.msk [vmem:[%s4051_s1 + $0x1f] sm:$0x2] %vm3_vm0, %v2_v2  }
   0x4   :  { %s1891_s18 = smov 92   ;;  %s1892_s19 = smov 88   ;;  %1310 = vst.msk [vmem:[%s4051_s1 + $0x3e] sm:$0x4] %vm3_vm0, %v2_v2   ;;  %1311 = vst.msk [vmem:[%s4051_s1 + $0x5d] sm:$0x8] %vm3_vm0, %v2_v2  }
   0x5   :  { %s1893_s20 = smov 84   ;;  %s1894_s21 = smov 80   ;;  %1312 = vst.msk [vmem:[%s4051_s1 + $0x7c] sm:$0x10] %vm3_vm0, %v2_v2   ;;  %1313 = vst.msk [vmem:[%s4051_s1 + $0x9b] sm:$0x20] %vm3_vm0, %v2_v2  }
   0x6   :  { %101 = vrot.lane.b32.xlu1 %v1934_v1, %s1883_s8  ;;  %60 = vrot.lane.b32.xlu0 %v1934_v1, %s1884_s9  ;;  %s1895_s22 = smov 76   ;;  %s1896_s23 = smov 72   ;;  %1314 = vst.msk [vmem:[%s4051_s1 + $0xba] sm:$0x40] %vm3_vm0, %v2_v2   ;;  %1315 = vst.msk [vmem:[%s4051_s1 + $0xd9] sm:$0x80] %vm3_vm0, %v2_v2  }
   0x7   :  { %s1897_s24 = smov 68   ;;  %s1898_s25 = smov 64   ;;  %1317 = vst.msk [vmem:[%s4051_s1 + $0x100] sm:$0x1] %vm3_vm0, %v1316_v3   ;;  %1318 = vst.msk [vmem:[%s4051_s1 + $0x11f] sm:$0x2] %vm3_vm0, %v1316_v3  }
   0x8   :  { %s1899_s26 = smov 60   ;;  %s1900_s27 = smov 56   ;;  %1319 = vst.msk [vmem:[%s4051_s1 + $0x13e] sm:$0x4] %vm3_vm0, %v1316_v3   ;;  %1320 = vst.msk [vmem:[%s4051_s1 + $0x15d] sm:$0x8] %vm3_vm0, %v1316_v3  }
   0x9   :  { %s1901_s28 = smov 52   ;;  %s1902_s29 = smov 48   ;;  %1321 = vst.msk [vmem:[%s4051_s1 + $0x17c] sm:$0x10] %vm3_vm0, %v1316_v3   ;;  %1322 = vst.msk [vmem:[%s4051_s1 + $0x19b] sm:$0x20] %vm3_vm0, %v1316_v3  }
   0xa   :  { %142 = vrot.lane.b32.xlu1 %v1934_v1, %s1885_s12  ;;  %121 = vrot.lane.b32.xlu0 %v1927_v0, %s1885_s12  ;;  %s1903_s30 = smov 44   ;;  %s1904_s2 = smov 40   ;;  %1323 = vst.msk [vmem:[%s4051_s1 + $0x1ba] sm:$0x40] %vm3_vm0, %v1316_v3   ;;  %1324 = vst.msk [vmem:[%s4051_s1 + $0x1d9] sm:$0x80] %vm3_vm0, %v1316_v3  }
   0xb   :  { %s1905_s3 = smov 36   ;;  %s1906_s4 = smov 32  }
   0xc   :  { %s1907_s5 = smov 28   ;;  %s1908_s6 = smov 24  }
   0xd   :  { %s1909_s7 = smov 20  }
   0xe   :  { %183 = vrot.lane.b32.xlu1 %v1934_v1, %s1886_s13  ;;  %162 = vrot.lane.b32.xlu0 %v1927_v0, %s1886_s13  ;;  %s1910_s13 = smov 16  }
  0x12   :  { %224 = vrot.lane.b32.xlu1 %v1934_v1, %s1887_s14  ;;  %203 = vrot.lane.b32.xlu0 %v1927_v0, %s1887_s14  ;;  %s1911_s14 = smov 12  }
  0x16   :  { %265 = vrot.lane.b32.xlu1 %v1934_v1, %s1888_s15  ;;  %244 = vrot.lane.b32.xlu0 %v1927_v0, %s1888_s15 }
  0x1a   :  { %306 = vrot.lane.b32.xlu1 %v1934_v1, %s1889_s16  ;;  %285 = vrot.lane.b32.xlu0 %v1927_v0, %s1889_s16 }
  0x1e   :  { %347 = vrot.lane.b32.xlu1 %v1934_v1, %s1890_s17  ;;  %326 = vrot.lane.b32.xlu0 %v1927_v0, %s1890_s17  ;;  %s1912_s17 = smov 8  }
  0x22   :  { %388 = vrot.lane.b32.xlu1 %v1934_v1, %s1891_s18  ;;  %367 = vrot.lane.b32.xlu0 %v1927_v0, %s1891_s18 }
  0x26   :  { %429 = vrot.lane.b32.xlu1 %v1934_v1, %s1892_s19  ;;  %408 = vrot.lane.b32.xlu0 %v1927_v0, %s1892_s19 }
  0x2a   :  { %470 = vrot.lane.b32.xlu1 %v1934_v1, %s1893_s20  ;;  %449 = vrot.lane.b32.xlu0 %v1927_v0, %s1893_s20  ;;  %s1913_s20 = smov 4  }
  0x2e   :  { %511 = vrot.lane.b32.xlu1 %v1934_v1, %s1894_s21  ;;  %490 = vrot.lane.b32.xlu0 %v1927_v0, %s1894_s21 }
  0x32   :  { %552 = vrot.lane.b32.xlu1 %v1934_v1, %s1895_s22  ;;  %531 = vrot.lane.b32.xlu0 %v1927_v0, %s1895_s22 }
  0x36   :  { %593 = vrot.lane.b32.xlu1 %v1934_v1, %s1896_s23  ;;  %572 = vrot.lane.b32.xlu0 %v1927_v0, %s1896_s23 }
  0x3a   :  { %634 = vrot.lane.b32.xlu1 %v1934_v1, %s1897_s24  ;;  %613 = vrot.lane.b32.xlu0 %v1927_v0, %s1897_s24 }
  0x3e   :  { %675 = vrot.lane.b32.xlu1 %v1934_v1, %s1898_s25  ;;  %654 = vrot.lane.b32.xlu0 %v1927_v0, %s1898_s25 }
  0x42   :  { %716 = vrot.lane.b32.xlu1 %v1934_v1, %s1899_s26  ;;  %695 = vrot.lane.b32.xlu0 %v1927_v0, %s1899_s26 }
  0x46   :  { %757 = vrot.lane.b32.xlu1 %v1934_v1, %s1900_s27  ;;  %736 = vrot.lane.b32.xlu0 %v1927_v0, %s1900_s27 }
  0x4a   :  { %798 = vrot.lane.b32.xlu1 %v1934_v1, %s1901_s28  ;;  %777 = vrot.lane.b32.xlu0 %v1927_v0, %s1901_s28 }
  0x4e   :  { %839 = vrot.lane.b32.xlu1 %v1934_v1, %s1902_s29  ;;  %818 = vrot.lane.b32.xlu0 %v1927_v0, %s1902_s29 }
  0x52   :  { %880 = vrot.lane.b32.xlu1 %v1934_v1, %s1903_s30  ;;  %859 = vrot.lane.b32.xlu0 %v1927_v0, %s1903_s30 }
  0x56   :  { %921 = vrot.lane.b32.xlu1 %v1934_v1, %s1904_s2  ;;  %900 = vrot.lane.b32.xlu0 %v1927_v0, %s1904_s2 }
  0x5a   :  { %962 = vrot.lane.b32.xlu1 %v1934_v1, %s1905_s3  ;;  %941 = vrot.lane.b32.xlu0 %v1927_v0, %s1905_s3 }
  0x5e   :  { %1003 = vrot.lane.b32.xlu1 %v1934_v1, %s1906_s4  ;;  %982 = vrot.lane.b32.xlu0 %v1927_v0, %s1906_s4 }
  0x62   :  { %1044 = vrot.lane.b32.xlu1 %v1934_v1, %s1907_s5  ;;  %1023 = vrot.lane.b32.xlu0 %v1927_v0, %s1907_s5 }
  0x66   :  { %1085 = vrot.lane.b32.xlu1 %v1934_v1, %s1908_s6  ;;  %1064 = vrot.lane.b32.xlu0 %v1927_v0, %s1908_s6 }
  0x6a   :  { %1126 = vrot.lane.b32.xlu1 %v1934_v1, %s1909_s7  ;;  %1105 = vrot.lane.b32.xlu0 %v1927_v0, %s1909_s7 }
  0x6e   :  { %1167 = vrot.lane.b32.xlu1 %v1934_v1, %s1910_s13  ;;  %1146 = vrot.lane.b32.xlu0 %v1927_v0, %s1910_s13 }
  0x72   :  { %1208 = vrot.lane.b32.xlu1 %v1934_v1, %s1911_s14  ;;  %1187 = vrot.lane.b32.xlu0 %v1927_v0, %s1911_s14 }
  0x74   :  { %v81_v4 = vpop.permute.xlu1 %80   ;;  %v40_v5 = vpop.permute.xlu0 %39  }
  0x75   :  { %1342 = vst.msk [vmem:[%s4051_s1 + $0x2] sm:$0x1] %vm3_vm0, %v81_v4   ;;  %1343 = vst.msk [vmem:[%s4051_s1 + $0x21] sm:$0x2] %vm3_vm0, %v81_v4  }
  0x76   :  { %1344 = vst.msk [vmem:[%s4051_s1 + $0x40] sm:$0x4] %vm3_vm0, %v81_v4   ;;  %1345 = vst.msk [vmem:[%s4051_s1 + $0x5f] sm:$0x8] %vm3_vm0, %v81_v4   ;;  %1249 = vrot.lane.b32.xlu1 %v1934_v1, %s1912_s17  ;;  %1228 = vrot.lane.b32.xlu0 %v1927_v0, %s1912_s17 }
  0x77   :  { %1346 = vst.msk [vmem:[%s4051_s1 + $0x7e] sm:$0x10] %vm3_vm0, %v81_v4   ;;  %1347 = vst.msk [vmem:[%s4051_s1 + $0x9d] sm:$0x20] %vm3_vm0, %v81_v4  }
  0x78   :  { %1348 = vst.msk [vmem:[%s4051_s1 + $0xbc] sm:$0x40] %vm3_vm0, %v81_v4   ;;  %1349 = vst.msk [vmem:[%s4051_s1 + $0xdb] sm:$0x80] %vm3_vm0, %v81_v4   ;;  %v102_v6 = vpop.permute.xlu1 %101   ;;  %v61_v7 = vpop.permute.xlu0 %60  }
  0x79   :  { %1325 = vst.msk [vmem:[%s4051_s1 + $0x1] sm:$0x1] %vm3_vm0, %v40_v5   ;;  %1326 = vst.msk [vmem:[%s4051_s1 + $0x20] sm:$0x2] %vm3_vm0, %v40_v5  }
  0x7a   :  { %1327 = vst.msk [vmem:[%s4051_s1 + $0x3f] sm:$0x4] %vm3_vm0, %v40_v5   ;;  %1328 = vst.msk [vmem:[%s4051_s1 + $0x5e] sm:$0x8] %vm3_vm0, %v40_v5   ;;  %1290 = vrot.lane.b32.xlu1 %v1934_v1, %s1913_s20  ;;  %1269 = vrot.lane.b32.xlu0 %v1927_v0, %s1913_s20 }
  0x7b   :  { %1329 = vst.msk [vmem:[%s4051_s1 + $0x7d] sm:$0x10] %vm3_vm0, %v40_v5   ;;  %1330 = vst.msk [vmem:[%s4051_s1 + $0x9c] sm:$0x20] %vm3_vm0, %v40_v5  }
  0x7c   :  { %1331 = vst.msk [vmem:[%s4051_s1 + $0xbb] sm:$0x40] %vm3_vm0, %v40_v5   ;;  %1332 = vst.msk [vmem:[%s4051_s1 + $0xda] sm:$0x80] %vm3_vm0, %v40_v5   ;;  %v143_v8 = vpop.permute.xlu1 %142   ;;  %v122_v9 = vpop.permute.xlu0 %121  }
  0x7d   :  { %1351 = vst.msk [vmem:[%s4051_s1 + $0x102] sm:$0x1] %vm3_vm0, %v102_v6   ;;  %1352 = vst.msk [vmem:[%s4051_s1 + $0x121] sm:$0x2] %vm3_vm0, %v102_v6  }
  0x7e   :  { %1353 = vst.msk [vmem:[%s4051_s1 + $0x140] sm:$0x4] %vm3_vm0, %v102_v6   ;;  %1354 = vst.msk [vmem:[%s4051_s1 + $0x15f] sm:$0x8] %vm3_vm0, %v102_v6  }
  0x7f   :  { %1355 = vst.msk [vmem:[%s4051_s1 + $0x17e] sm:$0x10] %vm3_vm0, %v102_v6   ;;  %1356 = vst.msk [vmem:[%s4051_s1 + $0x19d] sm:$0x20] %vm3_vm0, %v102_v6  }
  0x80   :  { %1357 = vst.msk [vmem:[%s4051_s1 + $0x1bc] sm:$0x40] %vm3_vm0, %v102_v6   ;;  %1358 = vst.msk [vmem:[%s4051_s1 + $0x1db] sm:$0x80] %vm3_vm0, %v102_v6   ;;  %v184_v10 = vpop.permute.xlu1 %183   ;;  %v163_v11 = vpop.permute.xlu0 %162  }
  0x81   :  { %1334 = vst.msk [vmem:[%s4051_s1 + $0x101] sm:$0x1] %vm3_vm0, %v61_v7   ;;  %1335 = vst.msk [vmem:[%s4051_s1 + $0x120] sm:$0x2] %vm3_vm0, %v61_v7  }
  0x82   :  { %1336 = vst.msk [vmem:[%s4051_s1 + $0x13f] sm:$0x4] %vm3_vm0, %v61_v7   ;;  %1337 = vst.msk [vmem:[%s4051_s1 + $0x15e] sm:$0x8] %vm3_vm0, %v61_v7  }
  0x83   :  { %1338 = vst.msk [vmem:[%s4051_s1 + $0x17d] sm:$0x10] %vm3_vm0, %v61_v7   ;;  %1339 = vst.msk [vmem:[%s4051_s1 + $0x19c] sm:$0x20] %vm3_vm0, %v61_v7  }
  0x84   :  { %1340 = vst.msk [vmem:[%s4051_s1 + $0x1bb] sm:$0x40] %vm3_vm0, %v61_v7   ;;  %1341 = vst.msk [vmem:[%s4051_s1 + $0x1da] sm:$0x80] %vm3_vm0, %v61_v7   ;;  %v225_v12 = vpop.permute.xlu1 %224   ;;  %v204_v13 = vpop.permute.xlu0 %203  }
  0x85   :  { %1368 = vst.msk [vmem:[%s4051_s1 + $0x103] sm:$0x1] %vm3_vm0, %v143_v8   ;;  %1369 = vst.msk [vmem:[%s4051_s1 + $0x122] sm:$0x2] %vm3_vm0, %v143_v8  }
  0x86   :  { %1370 = vst.msk [vmem:[%s4051_s1 + $0x141] sm:$0x4] %vm3_vm0, %v143_v8   ;;  %1371 = vst.msk [vmem:[%s4051_s1 + $0x160] sm:$0x8] %vm3_vm0, %v143_v8  }
  0x87   :  { %1372 = vst.msk [vmem:[%s4051_s1 + $0x17f] sm:$0x10] %vm3_vm0, %v143_v8   ;;  %1373 = vst.msk [vmem:[%s4051_s1 + $0x19e] sm:$0x20] %vm3_vm0, %v143_v8  }
  0x88   :  { %1374 = vst.msk [vmem:[%s4051_s1 + $0x1bd] sm:$0x40] %vm3_vm0, %v143_v8   ;;  %1375 = vst.msk [vmem:[%s4051_s1 + $0x1dc] sm:$0x80] %vm3_vm0, %v143_v8   ;;  %v266_v14 = vpop.permute.xlu1 %265   ;;  %v245_v15 = vpop.permute.xlu0 %244  }
  0x89   :  { %1359 = vst.msk [vmem:[%s4051_s1 + $0x3] sm:$0x1] %vm3_vm0, %v122_v9   ;;  %1360 = vst.msk [vmem:[%s4051_s1 + $0x22] sm:$0x2] %vm3_vm0, %v122_v9  }
  0x8a   :  { %1361 = vst.msk [vmem:[%s4051_s1 + $0x41] sm:$0x4] %vm3_vm0, %v122_v9   ;;  %1362 = vst.msk [vmem:[%s4051_s1 + $0x60] sm:$0x8] %vm3_vm0, %v122_v9  }
  0x8b   :  { %1363 = vst.msk [vmem:[%s4051_s1 + $0x7f] sm:$0x10] %vm3_vm0, %v122_v9   ;;  %1364 = vst.msk [vmem:[%s4051_s1 + $0x9e] sm:$0x20] %vm3_vm0, %v122_v9  }
  0x8c   :  { %1365 = vst.msk [vmem:[%s4051_s1 + $0xbd] sm:$0x40] %vm3_vm0, %v122_v9   ;;  %1366 = vst.msk [vmem:[%s4051_s1 + $0xdc] sm:$0x80] %vm3_vm0, %v122_v9   ;;  %v307_v16 = vpop.permute.xlu1 %306   ;;  %v286_v17 = vpop.permute.xlu0 %285  }
  0x8d   :  { %1385 = vst.msk [vmem:[%s4051_s1 + $0x104] sm:$0x1] %vm3_vm0, %v184_v10   ;;  %1386 = vst.msk [vmem:[%s4051_s1 + $0x123] sm:$0x2] %vm3_vm0, %v184_v10  }
  0x8e   :  { %1387 = vst.msk [vmem:[%s4051_s1 + $0x142] sm:$0x4] %vm3_vm0, %v184_v10   ;;  %1388 = vst.msk [vmem:[%s4051_s1 + $0x161] sm:$0x8] %vm3_vm0, %v184_v10  }
  0x8f   :  { %1389 = vst.msk [vmem:[%s4051_s1 + $0x180] sm:$0x10] %vm3_vm0, %v184_v10   ;;  %1390 = vst.msk [vmem:[%s4051_s1 + $0x19f] sm:$0x20] %vm3_vm0, %v184_v10  }
  0x90   :  { %1391 = vst.msk [vmem:[%s4051_s1 + $0x1be] sm:$0x40] %vm3_vm0, %v184_v10   ;;  %1392 = vst.msk [vmem:[%s4051_s1 + $0x1dd] sm:$0x80] %vm3_vm0, %v184_v10   ;;  %v348_v18 = vpop.permute.xlu1 %347   ;;  %v327_v19 = vpop.permute.xlu0 %326  }
  0x91   :  { %1376 = vst.msk [vmem:[%s4051_s1 + $0x4] sm:$0x1] %vm3_vm0, %v163_v11   ;;  %1377 = vst.msk [vmem:[%s4051_s1 + $0x23] sm:$0x2] %vm3_vm0, %v163_v11  }
  0x92   :  { %1378 = vst.msk [vmem:[%s4051_s1 + $0x42] sm:$0x4] %vm3_vm0, %v163_v11   ;;  %1379 = vst.msk [vmem:[%s4051_s1 + $0x61] sm:$0x8] %vm3_vm0, %v163_v11  }
  0x93   :  { %1380 = vst.msk [vmem:[%s4051_s1 + $0x80] sm:$0x10] %vm3_vm0, %v163_v11   ;;  %1381 = vst.msk [vmem:[%s4051_s1 + $0x9f] sm:$0x20] %vm3_vm0, %v163_v11  }
  0x94   :  { %1382 = vst.msk [vmem:[%s4051_s1 + $0xbe] sm:$0x40] %vm3_vm0, %v163_v11   ;;  %1383 = vst.msk [vmem:[%s4051_s1 + $0xdd] sm:$0x80] %vm3_vm0, %v163_v11   ;;  %v389_v20 = vpop.permute.xlu1 %388   ;;  %v368_v21 = vpop.permute.xlu0 %367  }
  0x95   :  { %1402 = vst.msk [vmem:[%s4051_s1 + $0x105] sm:$0x1] %vm3_vm0, %v225_v12   ;;  %1403 = vst.msk [vmem:[%s4051_s1 + $0x124] sm:$0x2] %vm3_vm0, %v225_v12  }
  0x96   :  { %1404 = vst.msk [vmem:[%s4051_s1 + $0x143] sm:$0x4] %vm3_vm0, %v225_v12   ;;  %1405 = vst.msk [vmem:[%s4051_s1 + $0x162] sm:$0x8] %vm3_vm0, %v225_v12  }
  0x97   :  { %1406 = vst.msk [vmem:[%s4051_s1 + $0x181] sm:$0x10] %vm3_vm0, %v225_v12   ;;  %1407 = vst.msk [vmem:[%s4051_s1 + $0x1a0] sm:$0x20] %vm3_vm0, %v225_v12  }
  0x98   :  { %1408 = vst.msk [vmem:[%s4051_s1 + $0x1bf] sm:$0x40] %vm3_vm0, %v225_v12   ;;  %1409 = vst.msk [vmem:[%s4051_s1 + $0x1de] sm:$0x80] %vm3_vm0, %v225_v12   ;;  %v430_v22 = vpop.permute.xlu1 %429   ;;  %v409_v23 = vpop.permute.xlu0 %408  }
  0x99   :  { %1393 = vst.msk [vmem:[%s4051_s1 + $0x5] sm:$0x1] %vm3_vm0, %v204_v13   ;;  %1394 = vst.msk [vmem:[%s4051_s1 + $0x24] sm:$0x2] %vm3_vm0, %v204_v13  }
  0x9a   :  { %1395 = vst.msk [vmem:[%s4051_s1 + $0x43] sm:$0x4] %vm3_vm0, %v204_v13   ;;  %1396 = vst.msk [vmem:[%s4051_s1 + $0x62] sm:$0x8] %vm3_vm0, %v204_v13  }
  0x9b   :  { %1397 = vst.msk [vmem:[%s4051_s1 + $0x81] sm:$0x10] %vm3_vm0, %v204_v13   ;;  %1398 = vst.msk [vmem:[%s4051_s1 + $0xa0] sm:$0x20] %vm3_vm0, %v204_v13  }
  0x9c   :  { %1399 = vst.msk [vmem:[%s4051_s1 + $0xbf] sm:$0x40] %vm3_vm0, %v204_v13   ;;  %1400 = vst.msk [vmem:[%s4051_s1 + $0xde] sm:$0x80] %vm3_vm0, %v204_v13   ;;  %v471_v24 = vpop.permute.xlu1 %470   ;;  %v450_v25 = vpop.permute.xlu0 %449  }
  0x9d   :  { %1419 = vst.msk [vmem:[%s4051_s1 + $0x106] sm:$0x1] %vm3_vm0, %v266_v14   ;;  %1420 = vst.msk [vmem:[%s4051_s1 + $0x125] sm:$0x2] %vm3_vm0, %v266_v14  }
  0x9e   :  { %1421 = vst.msk [vmem:[%s4051_s1 + $0x144] sm:$0x4] %vm3_vm0, %v266_v14   ;;  %1422 = vst.msk [vmem:[%s4051_s1 + $0x163] sm:$0x8] %vm3_vm0, %v266_v14  }
  0x9f   :  { %1423 = vst.msk [vmem:[%s4051_s1 + $0x182] sm:$0x10] %vm3_vm0, %v266_v14   ;;  %1424 = vst.msk [vmem:[%s4051_s1 + $0x1a1] sm:$0x20] %vm3_vm0, %v266_v14  }
  0xa0   :  { %1425 = vst.msk [vmem:[%s4051_s1 + $0x1c0] sm:$0x40] %vm3_vm0, %v266_v14   ;;  %1426 = vst.msk [vmem:[%s4051_s1 + $0x1df] sm:$0x80] %vm3_vm0, %v266_v14   ;;  %v512_v26 = vpop.permute.xlu1 %511   ;;  %v491_v27 = vpop.permute.xlu0 %490  }
  0xa1   :  { %1410 = vst.msk [vmem:[%s4051_s1 + $0x6] sm:$0x1] %vm3_vm0, %v245_v15   ;;  %1411 = vst.msk [vmem:[%s4051_s1 + $0x25] sm:$0x2] %vm3_vm0, %v245_v15  }
  0xa2   :  { %1412 = vst.msk [vmem:[%s4051_s1 + $0x44] sm:$0x4] %vm3_vm0, %v245_v15   ;;  %1413 = vst.msk [vmem:[%s4051_s1 + $0x63] sm:$0x8] %vm3_vm0, %v245_v15  }
  0xa3   :  { %1414 = vst.msk [vmem:[%s4051_s1 + $0x82] sm:$0x10] %vm3_vm0, %v245_v15   ;;  %1415 = vst.msk [vmem:[%s4051_s1 + $0xa1] sm:$0x20] %vm3_vm0, %v245_v15  }
  0xa4   :  { %1416 = vst.msk [vmem:[%s4051_s1 + $0xc0] sm:$0x40] %vm3_vm0, %v245_v15   ;;  %1417 = vst.msk [vmem:[%s4051_s1 + $0xdf] sm:$0x80] %vm3_vm0, %v245_v15   ;;  %v553_v28 = vpop.permute.xlu1 %552   ;;  %v532_v29 = vpop.permute.xlu0 %531  }
  0xa5   :  { %1436 = vst.msk [vmem:[%s4051_s1 + $0x107] sm:$0x1] %vm3_vm0, %v307_v16   ;;  %1437 = vst.msk [vmem:[%s4051_s1 + $0x126] sm:$0x2] %vm3_vm0, %v307_v16  }
  0xa6   :  { %1438 = vst.msk [vmem:[%s4051_s1 + $0x145] sm:$0x4] %vm3_vm0, %v307_v16   ;;  %1439 = vst.msk [vmem:[%s4051_s1 + $0x164] sm:$0x8] %vm3_vm0, %v307_v16  }
  0xa7   :  { %1440 = vst.msk [vmem:[%s4051_s1 + $0x183] sm:$0x10] %vm3_vm0, %v307_v16   ;;  %1441 = vst.msk [vmem:[%s4051_s1 + $0x1a2] sm:$0x20] %vm3_vm0, %v307_v16  }
  0xa8   :  { %1442 = vst.msk [vmem:[%s4051_s1 + $0x1c1] sm:$0x40] %vm3_vm0, %v307_v16   ;;  %1443 = vst.msk [vmem:[%s4051_s1 + $0x1e0] sm:$0x80] %vm3_vm0, %v307_v16   ;;  %v594_v30 = vpop.permute.xlu1 %593   ;;  %v573_v31 = vpop.permute.xlu0 %572  }
  0xa9   :  { %1427 = vst.msk [vmem:[%s4051_s1 + $0x7] sm:$0x1] %vm3_vm0, %v286_v17   ;;  %1428 = vst.msk [vmem:[%s4051_s1 + $0x26] sm:$0x2] %vm3_vm0, %v286_v17  }
  0xaa   :  { %1429 = vst.msk [vmem:[%s4051_s1 + $0x45] sm:$0x4] %vm3_vm0, %v286_v17   ;;  %1430 = vst.msk [vmem:[%s4051_s1 + $0x64] sm:$0x8] %vm3_vm0, %v286_v17  }
  0xab   :  { %1431 = vst.msk [vmem:[%s4051_s1 + $0x83] sm:$0x10] %vm3_vm0, %v286_v17   ;;  %1432 = vst.msk [vmem:[%s4051_s1 + $0xa2] sm:$0x20] %vm3_vm0, %v286_v17  }
  0xac   :  { %1433 = vst.msk [vmem:[%s4051_s1 + $0xc1] sm:$0x40] %vm3_vm0, %v286_v17   ;;  %1434 = vst.msk [vmem:[%s4051_s1 + $0xe0] sm:$0x80] %vm3_vm0, %v286_v17   ;;  %v635_v32 = vpop.permute.xlu1 %634   ;;  %v614_v33 = vpop.permute.xlu0 %613  }
  0xad   :  { %1453 = vst.msk [vmem:[%s4051_s1 + $0x108] sm:$0x1] %vm3_vm0, %v348_v18   ;;  %1454 = vst.msk [vmem:[%s4051_s1 + $0x127] sm:$0x2] %vm3_vm0, %v348_v18  }
  0xae   :  { %1455 = vst.msk [vmem:[%s4051_s1 + $0x146] sm:$0x4] %vm3_vm0, %v348_v18   ;;  %1456 = vst.msk [vmem:[%s4051_s1 + $0x165] sm:$0x8] %vm3_vm0, %v348_v18  }
  0xaf   :  { %1457 = vst.msk [vmem:[%s4051_s1 + $0x184] sm:$0x10] %vm3_vm0, %v348_v18   ;;  %1458 = vst.msk [vmem:[%s4051_s1 + $0x1a3] sm:$0x20] %vm3_vm0, %v348_v18  }
  0xb0   :  { %1459 = vst.msk [vmem:[%s4051_s1 + $0x1c2] sm:$0x40] %vm3_vm0, %v348_v18   ;;  %1460 = vst.msk [vmem:[%s4051_s1 + $0x1e1] sm:$0x80] %vm3_vm0, %v348_v18   ;;  %v676_v34 = vpop.permute.xlu1 %675   ;;  %v655_v35 = vpop.permute.xlu0 %654  }
  0xb1   :  { %1444 = vst.msk [vmem:[%s4051_s1 + $0x8] sm:$0x1] %vm3_vm0, %v327_v19   ;;  %1445 = vst.msk [vmem:[%s4051_s1 + $0x27] sm:$0x2] %vm3_vm0, %v327_v19  }
  0xb2   :  { %1446 = vst.msk [vmem:[%s4051_s1 + $0x46] sm:$0x4] %vm3_vm0, %v327_v19   ;;  %1447 = vst.msk [vmem:[%s4051_s1 + $0x65] sm:$0x8] %vm3_vm0, %v327_v19  }
  0xb3   :  { %1448 = vst.msk [vmem:[%s4051_s1 + $0x84] sm:$0x10] %vm3_vm0, %v327_v19   ;;  %1449 = vst.msk [vmem:[%s4051_s1 + $0xa3] sm:$0x20] %vm3_vm0, %v327_v19  }
  0xb4   :  { %1450 = vst.msk [vmem:[%s4051_s1 + $0xc2] sm:$0x40] %vm3_vm0, %v327_v19   ;;  %1451 = vst.msk [vmem:[%s4051_s1 + $0xe1] sm:$0x80] %vm3_vm0, %v327_v19   ;;  %v717_v36 = vpop.permute.xlu1 %716   ;;  %v696_v37 = vpop.permute.xlu0 %695  }
  0xb5   :  { %1470 = vst.msk [vmem:[%s4051_s1 + $0x109] sm:$0x1] %vm3_vm0, %v389_v20   ;;  %1471 = vst.msk [vmem:[%s4051_s1 + $0x128] sm:$0x2] %vm3_vm0, %v389_v20  }
  0xb6   :  { %1472 = vst.msk [vmem:[%s4051_s1 + $0x147] sm:$0x4] %vm3_vm0, %v389_v20   ;;  %1473 = vst.msk [vmem:[%s4051_s1 + $0x166] sm:$0x8] %vm3_vm0, %v389_v20  }
  0xb7   :  { %1474 = vst.msk [vmem:[%s4051_s1 + $0x185] sm:$0x10] %vm3_vm0, %v389_v20   ;;  %1475 = vst.msk [vmem:[%s4051_s1 + $0x1a4] sm:$0x20] %vm3_vm0, %v389_v20  }
  0xb8   :  { %1476 = vst.msk [vmem:[%s4051_s1 + $0x1c3] sm:$0x40] %vm3_vm0, %v389_v20   ;;  %1477 = vst.msk [vmem:[%s4051_s1 + $0x1e2] sm:$0x80] %vm3_vm0, %v389_v20   ;;  %v758_v38 = vpop.permute.xlu1 %757   ;;  %v737_v39 = vpop.permute.xlu0 %736  }
  0xb9   :  { %1461 = vst.msk [vmem:[%s4051_s1 + $0x9] sm:$0x1] %vm3_vm0, %v368_v21   ;;  %1462 = vst.msk [vmem:[%s4051_s1 + $0x28] sm:$0x2] %vm3_vm0, %v368_v21  }
  0xba   :  { %1463 = vst.msk [vmem:[%s4051_s1 + $0x47] sm:$0x4] %vm3_vm0, %v368_v21   ;;  %1464 = vst.msk [vmem:[%s4051_s1 + $0x66] sm:$0x8] %vm3_vm0, %v368_v21  }
  0xbb   :  { %1465 = vst.msk [vmem:[%s4051_s1 + $0x85] sm:$0x10] %vm3_vm0, %v368_v21   ;;  %1466 = vst.msk [vmem:[%s4051_s1 + $0xa4] sm:$0x20] %vm3_vm0, %v368_v21  }
  0xbc   :  { %1467 = vst.msk [vmem:[%s4051_s1 + $0xc3] sm:$0x40] %vm3_vm0, %v368_v21   ;;  %1468 = vst.msk [vmem:[%s4051_s1 + $0xe2] sm:$0x80] %vm3_vm0, %v368_v21   ;;  %v799_v40 = vpop.permute.xlu1 %798   ;;  %v778_v41 = vpop.permute.xlu0 %777  }
  0xbd   :  { %1487 = vst.msk [vmem:[%s4051_s1 + $0x10a] sm:$0x1] %vm3_vm0, %v430_v22   ;;  %1488 = vst.msk [vmem:[%s4051_s1 + $0x129] sm:$0x2] %vm3_vm0, %v430_v22  }
  0xbe   :  { %1489 = vst.msk [vmem:[%s4051_s1 + $0x148] sm:$0x4] %vm3_vm0, %v430_v22   ;;  %1490 = vst.msk [vmem:[%s4051_s1 + $0x167] sm:$0x8] %vm3_vm0, %v430_v22  }
  0xbf   :  { %1491 = vst.msk [vmem:[%s4051_s1 + $0x186] sm:$0x10] %vm3_vm0, %v430_v22   ;;  %1492 = vst.msk [vmem:[%s4051_s1 + $0x1a5] sm:$0x20] %vm3_vm0, %v430_v22  }
  0xc0   :  { %1493 = vst.msk [vmem:[%s4051_s1 + $0x1c4] sm:$0x40] %vm3_vm0, %v430_v22   ;;  %1494 = vst.msk [vmem:[%s4051_s1 + $0x1e3] sm:$0x80] %vm3_vm0, %v430_v22   ;;  %v840_v42 = vpop.permute.xlu1 %839   ;;  %v819_v43 = vpop.permute.xlu0 %818  }
  0xc1   :  { %1478 = vst.msk [vmem:[%s4051_s1 + $0xa] sm:$0x1] %vm3_vm0, %v409_v23   ;;  %1479 = vst.msk [vmem:[%s4051_s1 + $0x29] sm:$0x2] %vm3_vm0, %v409_v23  }
  0xc2   :  { %1480 = vst.msk [vmem:[%s4051_s1 + $0x48] sm:$0x4] %vm3_vm0, %v409_v23   ;;  %1481 = vst.msk [vmem:[%s4051_s1 + $0x67] sm:$0x8] %vm3_vm0, %v409_v23  }
  0xc3   :  { %1482 = vst.msk [vmem:[%s4051_s1 + $0x86] sm:$0x10] %vm3_vm0, %v409_v23   ;;  %1483 = vst.msk [vmem:[%s4051_s1 + $0xa5] sm:$0x20] %vm3_vm0, %v409_v23  }
  0xc4   :  { %1484 = vst.msk [vmem:[%s4051_s1 + $0xc4] sm:$0x40] %vm3_vm0, %v409_v23   ;;  %1485 = vst.msk [vmem:[%s4051_s1 + $0xe3] sm:$0x80] %vm3_vm0, %v409_v23   ;;  %v881_v44 = vpop.permute.xlu1 %880   ;;  %v860_v45 = vpop.permute.xlu0 %859  }
  0xc5   :  { %1504 = vst.msk [vmem:[%s4051_s1 + $0x10b] sm:$0x1] %vm3_vm0, %v471_v24   ;;  %1505 = vst.msk [vmem:[%s4051_s1 + $0x12a] sm:$0x2] %vm3_vm0, %v471_v24  }
  0xc6   :  { %1506 = vst.msk [vmem:[%s4051_s1 + $0x149] sm:$0x4] %vm3_vm0, %v471_v24   ;;  %1507 = vst.msk [vmem:[%s4051_s1 + $0x168] sm:$0x8] %vm3_vm0, %v471_v24  }
  0xc7   :  { %1508 = vst.msk [vmem:[%s4051_s1 + $0x187] sm:$0x10] %vm3_vm0, %v471_v24   ;;  %1509 = vst.msk [vmem:[%s4051_s1 + $0x1a6] sm:$0x20] %vm3_vm0, %v471_v24  }
  0xc8   :  { %1510 = vst.msk [vmem:[%s4051_s1 + $0x1c5] sm:$0x40] %vm3_vm0, %v471_v24   ;;  %1511 = vst.msk [vmem:[%s4051_s1 + $0x1e4] sm:$0x80] %vm3_vm0, %v471_v24   ;;  %v922_v46 = vpop.permute.xlu1 %921   ;;  %v901_v47 = vpop.permute.xlu0 %900  }
  0xc9   :  { %1495 = vst.msk [vmem:[%s4051_s1 + $0xb] sm:$0x1] %vm3_vm0, %v450_v25   ;;  %1496 = vst.msk [vmem:[%s4051_s1 + $0x2a] sm:$0x2] %vm3_vm0, %v450_v25  }
  0xca   :  { %1497 = vst.msk [vmem:[%s4051_s1 + $0x49] sm:$0x4] %vm3_vm0, %v450_v25   ;;  %1498 = vst.msk [vmem:[%s4051_s1 + $0x68] sm:$0x8] %vm3_vm0, %v450_v25  }
  0xcb   :  { %1499 = vst.msk [vmem:[%s4051_s1 + $0x87] sm:$0x10] %vm3_vm0, %v450_v25   ;;  %1500 = vst.msk [vmem:[%s4051_s1 + $0xa6] sm:$0x20] %vm3_vm0, %v450_v25  }
  0xcc   :  { %1501 = vst.msk [vmem:[%s4051_s1 + $0xc5] sm:$0x40] %vm3_vm0, %v450_v25   ;;  %1502 = vst.msk [vmem:[%s4051_s1 + $0xe4] sm:$0x80] %vm3_vm0, %v450_v25   ;;  %v963_v48 = vpop.permute.xlu1 %962   ;;  %v942_v49 = vpop.permute.xlu0 %941  }
  0xcd   :  { %1521 = vst.msk [vmem:[%s4051_s1 + $0x10c] sm:$0x1] %vm3_vm0, %v512_v26   ;;  %1522 = vst.msk [vmem:[%s4051_s1 + $0x12b] sm:$0x2] %vm3_vm0, %v512_v26  }
  0xce   :  { %1523 = vst.msk [vmem:[%s4051_s1 + $0x14a] sm:$0x4] %vm3_vm0, %v512_v26   ;;  %1524 = vst.msk [vmem:[%s4051_s1 + $0x169] sm:$0x8] %vm3_vm0, %v512_v26  }
  0xcf   :  { %1525 = vst.msk [vmem:[%s4051_s1 + $0x188] sm:$0x10] %vm3_vm0, %v512_v26   ;;  %1526 = vst.msk [vmem:[%s4051_s1 + $0x1a7] sm:$0x20] %vm3_vm0, %v512_v26  }
  0xd0   :  { %1527 = vst.msk [vmem:[%s4051_s1 + $0x1c6] sm:$0x40] %vm3_vm0, %v512_v26   ;;  %1528 = vst.msk [vmem:[%s4051_s1 + $0x1e5] sm:$0x80] %vm3_vm0, %v512_v26   ;;  %v1004_v50 = vpop.permute.xlu1 %1003   ;;  %v983_v51 = vpop.permute.xlu0 %982  }
  0xd1   :  { %1512 = vst.msk [vmem:[%s4051_s1 + $0xc] sm:$0x1] %vm3_vm0, %v491_v27   ;;  %1513 = vst.msk [vmem:[%s4051_s1 + $0x2b] sm:$0x2] %vm3_vm0, %v491_v27  }
  0xd2   :  { %1514 = vst.msk [vmem:[%s4051_s1 + $0x4a] sm:$0x4] %vm3_vm0, %v491_v27   ;;  %1515 = vst.msk [vmem:[%s4051_s1 + $0x69] sm:$0x8] %vm3_vm0, %v491_v27  }
  0xd3   :  { %1516 = vst.msk [vmem:[%s4051_s1 + $0x88] sm:$0x10] %vm3_vm0, %v491_v27   ;;  %1517 = vst.msk [vmem:[%s4051_s1 + $0xa7] sm:$0x20] %vm3_vm0, %v491_v27  }
  0xd4   :  { %1518 = vst.msk [vmem:[%s4051_s1 + $0xc6] sm:$0x40] %vm3_vm0, %v491_v27   ;;  %1519 = vst.msk [vmem:[%s4051_s1 + $0xe5] sm:$0x80] %vm3_vm0, %v491_v27   ;;  %v1045_v52 = vpop.permute.xlu1 %1044   ;;  %v1024_v53 = vpop.permute.xlu0 %1023  }
  0xd5   :  { %1538 = vst.msk [vmem:[%s4051_s1 + $0x10d] sm:$0x1] %vm3_vm0, %v553_v28   ;;  %1539 = vst.msk [vmem:[%s4051_s1 + $0x12c] sm:$0x2] %vm3_vm0, %v553_v28  }
  0xd6   :  { %1540 = vst.msk [vmem:[%s4051_s1 + $0x14b] sm:$0x4] %vm3_vm0, %v553_v28   ;;  %1541 = vst.msk [vmem:[%s4051_s1 + $0x16a] sm:$0x8] %vm3_vm0, %v553_v28  }
  0xd7   :  { %1542 = vst.msk [vmem:[%s4051_s1 + $0x189] sm:$0x10] %vm3_vm0, %v553_v28   ;;  %1543 = vst.msk [vmem:[%s4051_s1 + $0x1a8] sm:$0x20] %vm3_vm0, %v553_v28  }
  0xd8   :  { %1544 = vst.msk [vmem:[%s4051_s1 + $0x1c7] sm:$0x40] %vm3_vm0, %v553_v28   ;;  %1545 = vst.msk [vmem:[%s4051_s1 + $0x1e6] sm:$0x80] %vm3_vm0, %v553_v28   ;;  %v1086_v54 = vpop.permute.xlu1 %1085   ;;  %v1065_v55 = vpop.permute.xlu0 %1064  }
  0xd9   :  { %1529 = vst.msk [vmem:[%s4051_s1 + $0xd] sm:$0x1] %vm3_vm0, %v532_v29   ;;  %1530 = vst.msk [vmem:[%s4051_s1 + $0x2c] sm:$0x2] %vm3_vm0, %v532_v29  }
  0xda   :  { %1531 = vst.msk [vmem:[%s4051_s1 + $0x4b] sm:$0x4] %vm3_vm0, %v532_v29   ;;  %1532 = vst.msk [vmem:[%s4051_s1 + $0x6a] sm:$0x8] %vm3_vm0, %v532_v29  }
  0xdb   :  { %1533 = vst.msk [vmem:[%s4051_s1 + $0x89] sm:$0x10] %vm3_vm0, %v532_v29   ;;  %1534 = vst.msk [vmem:[%s4051_s1 + $0xa8] sm:$0x20] %vm3_vm0, %v532_v29  }
  0xdc   :  { %1535 = vst.msk [vmem:[%s4051_s1 + $0xc7] sm:$0x40] %vm3_vm0, %v532_v29   ;;  %1536 = vst.msk [vmem:[%s4051_s1 + $0xe6] sm:$0x80] %vm3_vm0, %v532_v29   ;;  %v1127_v56 = vpop.permute.xlu1 %1126   ;;  %v1106_v57 = vpop.permute.xlu0 %1105  }
  0xdd   :  { %1555 = vst.msk [vmem:[%s4051_s1 + $0x10e] sm:$0x1] %vm3_vm0, %v594_v30   ;;  %1556 = vst.msk [vmem:[%s4051_s1 + $0x12d] sm:$0x2] %vm3_vm0, %v594_v30  }
  0xde   :  { %1557 = vst.msk [vmem:[%s4051_s1 + $0x14c] sm:$0x4] %vm3_vm0, %v594_v30   ;;  %1558 = vst.msk [vmem:[%s4051_s1 + $0x16b] sm:$0x8] %vm3_vm0, %v594_v30  }
  0xdf   :  { %1559 = vst.msk [vmem:[%s4051_s1 + $0x18a] sm:$0x10] %vm3_vm0, %v594_v30   ;;  %1560 = vst.msk [vmem:[%s4051_s1 + $0x1a9] sm:$0x20] %vm3_vm0, %v594_v30  }
  0xe0   :  { %1561 = vst.msk [vmem:[%s4051_s1 + $0x1c8] sm:$0x40] %vm3_vm0, %v594_v30   ;;  %1562 = vst.msk [vmem:[%s4051_s1 + $0x1e7] sm:$0x80] %vm3_vm0, %v594_v30   ;;  %v1168_v58 = vpop.permute.xlu1 %1167   ;;  %v1147_v59 = vpop.permute.xlu0 %1146  }
  0xe1   :  { %1546 = vst.msk [vmem:[%s4051_s1 + $0xe] sm:$0x1] %vm3_vm0, %v573_v31   ;;  %1547 = vst.msk [vmem:[%s4051_s1 + $0x2d] sm:$0x2] %vm3_vm0, %v573_v31  }
  0xe2   :  { %1548 = vst.msk [vmem:[%s4051_s1 + $0x4c] sm:$0x4] %vm3_vm0, %v573_v31   ;;  %1549 = vst.msk [vmem:[%s4051_s1 + $0x6b] sm:$0x8] %vm3_vm0, %v573_v31  }
  0xe3   :  { %1550 = vst.msk [vmem:[%s4051_s1 + $0x8a] sm:$0x10] %vm3_vm0, %v573_v31   ;;  %1551 = vst.msk [vmem:[%s4051_s1 + $0xa9] sm:$0x20] %vm3_vm0, %v573_v31  }
  0xe4   :  { %1552 = vst.msk [vmem:[%s4051_s1 + $0xc8] sm:$0x40] %vm3_vm0, %v573_v31   ;;  %1553 = vst.msk [vmem:[%s4051_s1 + $0xe7] sm:$0x80] %vm3_vm0, %v573_v31   ;;  %v1209_v60 = vpop.permute.xlu1 %1208   ;;  %v1188_v61 = vpop.permute.xlu0 %1187  }
  0xe5   :  { %1572 = vst.msk [vmem:[%s4051_s1 + $0x10f] sm:$0x1] %vm3_vm0, %v635_v32   ;;  %1573 = vst.msk [vmem:[%s4051_s1 + $0x12e] sm:$0x2] %vm3_vm0, %v635_v32  }
  0xe6   :  { %1574 = vst.msk [vmem:[%s4051_s1 + $0x14d] sm:$0x4] %vm3_vm0, %v635_v32   ;;  %1575 = vst.msk [vmem:[%s4051_s1 + $0x16c] sm:$0x8] %vm3_vm0, %v635_v32  }
  0xe7   :  { %1576 = vst.msk [vmem:[%s4051_s1 + $0x18b] sm:$0x10] %vm3_vm0, %v635_v32   ;;  %1577 = vst.msk [vmem:[%s4051_s1 + $0x1aa] sm:$0x20] %vm3_vm0, %v635_v32  }
  0xe8   :  { %1578 = vst.msk [vmem:[%s4051_s1 + $0x1c9] sm:$0x40] %vm3_vm0, %v635_v32   ;;  %1579 = vst.msk [vmem:[%s4051_s1 + $0x1e8] sm:$0x80] %vm3_vm0, %v635_v32   ;;  %v1250_v62 = vpop.permute.xlu1 %1249   ;;  %v1229_v63 = vpop.permute.xlu0 %1228  }
  0xe9   :  { %1563 = vst.msk [vmem:[%s4051_s1 + $0xf] sm:$0x1] %vm3_vm0, %v614_v33   ;;  %1564 = vst.msk [vmem:[%s4051_s1 + $0x2e] sm:$0x2] %vm3_vm0, %v614_v33  }
  0xea   :  { %1565 = vst.msk [vmem:[%s4051_s1 + $0x4d] sm:$0x4] %vm3_vm0, %v614_v33   ;;  %1566 = vst.msk [vmem:[%s4051_s1 + $0x6c] sm:$0x8] %vm3_vm0, %v614_v33  }
  0xeb   :  { %1567 = vst.msk [vmem:[%s4051_s1 + $0x8b] sm:$0x10] %vm3_vm0, %v614_v33   ;;  %1568 = vst.msk [vmem:[%s4051_s1 + $0xaa] sm:$0x20] %vm3_vm0, %v614_v33  }
  0xec   :  { %1569 = vst.msk [vmem:[%s4051_s1 + $0xc9] sm:$0x40] %vm3_vm0, %v614_v33   ;;  %1570 = vst.msk [vmem:[%s4051_s1 + $0xe8] sm:$0x80] %vm3_vm0, %v614_v33   ;;  %v1291_v0 = vpop.permute.xlu1 %1290   ;;  %v1270_v1 = vpop.permute.xlu0 %1269  }
  0xed   :  { %1589 = vst.msk [vmem:[%s4051_s1 + $0x110] sm:$0x1] %vm3_vm0, %v676_v34   ;;  %1590 = vst.msk [vmem:[%s4051_s1 + $0x12f] sm:$0x2] %vm3_vm0, %v676_v34  }
  0xee   :  { %1591 = vst.msk [vmem:[%s4051_s1 + $0x14e] sm:$0x4] %vm3_vm0, %v676_v34   ;;  %1592 = vst.msk [vmem:[%s4051_s1 + $0x16d] sm:$0x8] %vm3_vm0, %v676_v34  }
  0xef   :  { %1593 = vst.msk [vmem:[%s4051_s1 + $0x18c] sm:$0x10] %vm3_vm0, %v676_v34   ;;  %1594 = vst.msk [vmem:[%s4051_s1 + $0x1ab] sm:$0x20] %vm3_vm0, %v676_v34  }
  0xf0   :  { %1595 = vst.msk [vmem:[%s4051_s1 + $0x1ca] sm:$0x40] %vm3_vm0, %v676_v34   ;;  %1596 = vst.msk [vmem:[%s4051_s1 + $0x1e9] sm:$0x80] %vm3_vm0, %v676_v34  }
  0xf1   :  { %1580 = vst.msk [vmem:[%s4051_s1 + $0x10] sm:$0x1] %vm3_vm0, %v655_v35   ;;  %1581 = vst.msk [vmem:[%s4051_s1 + $0x2f] sm:$0x2] %vm3_vm0, %v655_v35  }
  0xf2   :  { %1582 = vst.msk [vmem:[%s4051_s1 + $0x4e] sm:$0x4] %vm3_vm0, %v655_v35   ;;  %1583 = vst.msk [vmem:[%s4051_s1 + $0x6d] sm:$0x8] %vm3_vm0, %v655_v35  }
  0xf3   :  { %1584 = vst.msk [vmem:[%s4051_s1 + $0x8c] sm:$0x10] %vm3_vm0, %v655_v35   ;;  %1585 = vst.msk [vmem:[%s4051_s1 + $0xab] sm:$0x20] %vm3_vm0, %v655_v35  }
  0xf4   :  { %1586 = vst.msk [vmem:[%s4051_s1 + $0xca] sm:$0x40] %vm3_vm0, %v655_v35   ;;  %1587 = vst.msk [vmem:[%s4051_s1 + $0xe9] sm:$0x80] %vm3_vm0, %v655_v35  }
  0xf5   :  { %1606 = vst.msk [vmem:[%s4051_s1 + $0x111] sm:$0x1] %vm3_vm0, %v717_v36   ;;  %1607 = vst.msk [vmem:[%s4051_s1 + $0x130] sm:$0x2] %vm3_vm0, %v717_v36  }
  0xf6   :  { %1608 = vst.msk [vmem:[%s4051_s1 + $0x14f] sm:$0x4] %vm3_vm0, %v717_v36   ;;  %1609 = vst.msk [vmem:[%s4051_s1 + $0x16e] sm:$0x8] %vm3_vm0, %v717_v36  }
  0xf7   :  { %1610 = vst.msk [vmem:[%s4051_s1 + $0x18d] sm:$0x10] %vm3_vm0, %v717_v36   ;;  %1611 = vst.msk [vmem:[%s4051_s1 + $0x1ac] sm:$0x20] %vm3_vm0, %v717_v36  }
  0xf8   :  { %1612 = vst.msk [vmem:[%s4051_s1 + $0x1cb] sm:$0x40] %vm3_vm0, %v717_v36   ;;  %1613 = vst.msk [vmem:[%s4051_s1 + $0x1ea] sm:$0x80] %vm3_vm0, %v717_v36  }
  0xf9   :  { %1597 = vst.msk [vmem:[%s4051_s1 + $0x11] sm:$0x1] %vm3_vm0, %v696_v37   ;;  %1598 = vst.msk [vmem:[%s4051_s1 + $0x30] sm:$0x2] %vm3_vm0, %v696_v37  }
  0xfa   :  { %1599 = vst.msk [vmem:[%s4051_s1 + $0x4f] sm:$0x4] %vm3_vm0, %v696_v37   ;;  %1600 = vst.msk [vmem:[%s4051_s1 + $0x6e] sm:$0x8] %vm3_vm0, %v696_v37  }
  0xfb   :  { %1601 = vst.msk [vmem:[%s4051_s1 + $0x8d] sm:$0x10] %vm3_vm0, %v696_v37   ;;  %1602 = vst.msk [vmem:[%s4051_s1 + $0xac] sm:$0x20] %vm3_vm0, %v696_v37  }
  0xfc   :  { %1603 = vst.msk [vmem:[%s4051_s1 + $0xcb] sm:$0x40] %vm3_vm0, %v696_v37   ;;  %1604 = vst.msk [vmem:[%s4051_s1 + $0xea] sm:$0x80] %vm3_vm0, %v696_v37  }
  0xfd   :  { %1623 = vst.msk [vmem:[%s4051_s1 + $0x112] sm:$0x1] %vm3_vm0, %v758_v38   ;;  %1624 = vst.msk [vmem:[%s4051_s1 + $0x131] sm:$0x2] %vm3_vm0, %v758_v38  }
  0xfe   :  { %1625 = vst.msk [vmem:[%s4051_s1 + $0x150] sm:$0x4] %vm3_vm0, %v758_v38   ;;  %1626 = vst.msk [vmem:[%s4051_s1 + $0x16f] sm:$0x8] %vm3_vm0, %v758_v38  }
  0xff   :  { %1627 = vst.msk [vmem:[%s4051_s1 + $0x18e] sm:$0x10] %vm3_vm0, %v758_v38   ;;  %1628 = vst.msk [vmem:[%s4051_s1 + $0x1ad] sm:$0x20] %vm3_vm0, %v758_v38  }
 0x100   :  { %1629 = vst.msk [vmem:[%s4051_s1 + $0x1cc] sm:$0x40] %vm3_vm0, %v758_v38   ;;  %1630 = vst.msk [vmem:[%s4051_s1 + $0x1eb] sm:$0x80] %vm3_vm0, %v758_v38  }
 0x101   :  { %1614 = vst.msk [vmem:[%s4051_s1 + $0x12] sm:$0x1] %vm3_vm0, %v737_v39   ;;  %1615 = vst.msk [vmem:[%s4051_s1 + $0x31] sm:$0x2] %vm3_vm0, %v737_v39  }
 0x102   :  { %1616 = vst.msk [vmem:[%s4051_s1 + $0x50] sm:$0x4] %vm3_vm0, %v737_v39   ;;  %1617 = vst.msk [vmem:[%s4051_s1 + $0x6f] sm:$0x8] %vm3_vm0, %v737_v39  }
 0x103   :  { %1618 = vst.msk [vmem:[%s4051_s1 + $0x8e] sm:$0x10] %vm3_vm0, %v737_v39   ;;  %1619 = vst.msk [vmem:[%s4051_s1 + $0xad] sm:$0x20] %vm3_vm0, %v737_v39  }
 0x104   :  { %1620 = vst.msk [vmem:[%s4051_s1 + $0xcc] sm:$0x40] %vm3_vm0, %v737_v39   ;;  %1621 = vst.msk [vmem:[%s4051_s1 + $0xeb] sm:$0x80] %vm3_vm0, %v737_v39  }
 0x105   :  { %1640 = vst.msk [vmem:[%s4051_s1 + $0x113] sm:$0x1] %vm3_vm0, %v799_v40   ;;  %1641 = vst.msk [vmem:[%s4051_s1 + $0x132] sm:$0x2] %vm3_vm0, %v799_v40  }
 0x106   :  { %1642 = vst.msk [vmem:[%s4051_s1 + $0x151] sm:$0x4] %vm3_vm0, %v799_v40   ;;  %1643 = vst.msk [vmem:[%s4051_s1 + $0x170] sm:$0x8] %vm3_vm0, %v799_v40  }
 0x107   :  { %1644 = vst.msk [vmem:[%s4051_s1 + $0x18f] sm:$0x10] %vm3_vm0, %v799_v40   ;;  %1645 = vst.msk [vmem:[%s4051_s1 + $0x1ae] sm:$0x20] %vm3_vm0, %v799_v40  }
 0x108   :  { %1646 = vst.msk [vmem:[%s4051_s1 + $0x1cd] sm:$0x40] %vm3_vm0, %v799_v40   ;;  %1647 = vst.msk [vmem:[%s4051_s1 + $0x1ec] sm:$0x80] %vm3_vm0, %v799_v40  }
 0x109   :  { %1631 = vst.msk [vmem:[%s4051_s1 + $0x13] sm:$0x1] %vm3_vm0, %v778_v41   ;;  %1632 = vst.msk [vmem:[%s4051_s1 + $0x32] sm:$0x2] %vm3_vm0, %v778_v41  }
 0x10a   :  { %1633 = vst.msk [vmem:[%s4051_s1 + $0x51] sm:$0x4] %vm3_vm0, %v778_v41   ;;  %1634 = vst.msk [vmem:[%s4051_s1 + $0x70] sm:$0x8] %vm3_vm0, %v778_v41  }
 0x10b   :  { %1635 = vst.msk [vmem:[%s4051_s1 + $0x8f] sm:$0x10] %vm3_vm0, %v778_v41   ;;  %1636 = vst.msk [vmem:[%s4051_s1 + $0xae] sm:$0x20] %vm3_vm0, %v778_v41  }
 0x10c   :  { %1637 = vst.msk [vmem:[%s4051_s1 + $0xcd] sm:$0x40] %vm3_vm0, %v778_v41   ;;  %1638 = vst.msk [vmem:[%s4051_s1 + $0xec] sm:$0x80] %vm3_vm0, %v778_v41  }
 0x10d   :  { %1657 = vst.msk [vmem:[%s4051_s1 + $0x114] sm:$0x1] %vm3_vm0, %v840_v42   ;;  %1658 = vst.msk [vmem:[%s4051_s1 + $0x133] sm:$0x2] %vm3_vm0, %v840_v42  }
 0x10e   :  { %1659 = vst.msk [vmem:[%s4051_s1 + $0x152] sm:$0x4] %vm3_vm0, %v840_v42   ;;  %1660 = vst.msk [vmem:[%s4051_s1 + $0x171] sm:$0x8] %vm3_vm0, %v840_v42  }
 0x10f   :  { %1661 = vst.msk [vmem:[%s4051_s1 + $0x190] sm:$0x10] %vm3_vm0, %v840_v42   ;;  %1662 = vst.msk [vmem:[%s4051_s1 + $0x1af] sm:$0x20] %vm3_vm0, %v840_v42  }
 0x110   :  { %1663 = vst.msk [vmem:[%s4051_s1 + $0x1ce] sm:$0x40] %vm3_vm0, %v840_v42   ;;  %1664 = vst.msk [vmem:[%s4051_s1 + $0x1ed] sm:$0x80] %vm3_vm0, %v840_v42  }
 0x111   :  { %1648 = vst.msk [vmem:[%s4051_s1 + $0x14] sm:$0x1] %vm3_vm0, %v819_v43   ;;  %1649 = vst.msk [vmem:[%s4051_s1 + $0x33] sm:$0x2] %vm3_vm0, %v819_v43  }
 0x112   :  { %1650 = vst.msk [vmem:[%s4051_s1 + $0x52] sm:$0x4] %vm3_vm0, %v819_v43   ;;  %1651 = vst.msk [vmem:[%s4051_s1 + $0x71] sm:$0x8] %vm3_vm0, %v819_v43  }
 0x113   :  { %1652 = vst.msk [vmem:[%s4051_s1 + $0x90] sm:$0x10] %vm3_vm0, %v819_v43   ;;  %1653 = vst.msk [vmem:[%s4051_s1 + $0xaf] sm:$0x20] %vm3_vm0, %v819_v43  }
 0x114   :  { %1654 = vst.msk [vmem:[%s4051_s1 + $0xce] sm:$0x40] %vm3_vm0, %v819_v43   ;;  %1655 = vst.msk [vmem:[%s4051_s1 + $0xed] sm:$0x80] %vm3_vm0, %v819_v43  }
 0x115   :  { %1674 = vst.msk [vmem:[%s4051_s1 + $0x115] sm:$0x1] %vm3_vm0, %v881_v44   ;;  %1675 = vst.msk [vmem:[%s4051_s1 + $0x134] sm:$0x2] %vm3_vm0, %v881_v44  }
 0x116   :  { %1676 = vst.msk [vmem:[%s4051_s1 + $0x153] sm:$0x4] %vm3_vm0, %v881_v44   ;;  %1677 = vst.msk [vmem:[%s4051_s1 + $0x172] sm:$0x8] %vm3_vm0, %v881_v44  }
 0x117   :  { %1678 = vst.msk [vmem:[%s4051_s1 + $0x191] sm:$0x10] %vm3_vm0, %v881_v44   ;;  %1679 = vst.msk [vmem:[%s4051_s1 + $0x1b0] sm:$0x20] %vm3_vm0, %v881_v44  }
 0x118   :  { %1680 = vst.msk [vmem:[%s4051_s1 + $0x1cf] sm:$0x40] %vm3_vm0, %v881_v44   ;;  %1681 = vst.msk [vmem:[%s4051_s1 + $0x1ee] sm:$0x80] %vm3_vm0, %v881_v44  }
 0x119   :  { %1665 = vst.msk [vmem:[%s4051_s1 + $0x15] sm:$0x1] %vm3_vm0, %v860_v45   ;;  %1666 = vst.msk [vmem:[%s4051_s1 + $0x34] sm:$0x2] %vm3_vm0, %v860_v45  }
 0x11a   :  { %1667 = vst.msk [vmem:[%s4051_s1 + $0x53] sm:$0x4] %vm3_vm0, %v860_v45   ;;  %1668 = vst.msk [vmem:[%s4051_s1 + $0x72] sm:$0x8] %vm3_vm0, %v860_v45  }
 0x11b   :  { %1669 = vst.msk [vmem:[%s4051_s1 + $0x91] sm:$0x10] %vm3_vm0, %v860_v45   ;;  %1670 = vst.msk [vmem:[%s4051_s1 + $0xb0] sm:$0x20] %vm3_vm0, %v860_v45  }
 0x11c   :  { %1671 = vst.msk [vmem:[%s4051_s1 + $0xcf] sm:$0x40] %vm3_vm0, %v860_v45   ;;  %1672 = vst.msk [vmem:[%s4051_s1 + $0xee] sm:$0x80] %vm3_vm0, %v860_v45  }
 0x11d   :  { %1691 = vst.msk [vmem:[%s4051_s1 + $0x116] sm:$0x1] %vm3_vm0, %v922_v46   ;;  %1692 = vst.msk [vmem:[%s4051_s1 + $0x135] sm:$0x2] %vm3_vm0, %v922_v46  }
 0x11e   :  { %1693 = vst.msk [vmem:[%s4051_s1 + $0x154] sm:$0x4] %vm3_vm0, %v922_v46   ;;  %1694 = vst.msk [vmem:[%s4051_s1 + $0x173] sm:$0x8] %vm3_vm0, %v922_v46  }
 0x11f   :  { %1695 = vst.msk [vmem:[%s4051_s1 + $0x192] sm:$0x10] %vm3_vm0, %v922_v46   ;;  %1696 = vst.msk [vmem:[%s4051_s1 + $0x1b1] sm:$0x20] %vm3_vm0, %v922_v46  }
 0x120   :  { %1697 = vst.msk [vmem:[%s4051_s1 + $0x1d0] sm:$0x40] %vm3_vm0, %v922_v46   ;;  %1698 = vst.msk [vmem:[%s4051_s1 + $0x1ef] sm:$0x80] %vm3_vm0, %v922_v46  }
 0x121   :  { %1682 = vst.msk [vmem:[%s4051_s1 + $0x16] sm:$0x1] %vm3_vm0, %v901_v47   ;;  %1683 = vst.msk [vmem:[%s4051_s1 + $0x35] sm:$0x2] %vm3_vm0, %v901_v47  }
 0x122   :  { %1684 = vst.msk [vmem:[%s4051_s1 + $0x54] sm:$0x4] %vm3_vm0, %v901_v47   ;;  %1685 = vst.msk [vmem:[%s4051_s1 + $0x73] sm:$0x8] %vm3_vm0, %v901_v47  }
 0x123   :  { %1686 = vst.msk [vmem:[%s4051_s1 + $0x92] sm:$0x10] %vm3_vm0, %v901_v47   ;;  %1687 = vst.msk [vmem:[%s4051_s1 + $0xb1] sm:$0x20] %vm3_vm0, %v901_v47  }
 0x124   :  { %1688 = vst.msk [vmem:[%s4051_s1 + $0xd0] sm:$0x40] %vm3_vm0, %v901_v47   ;;  %1689 = vst.msk [vmem:[%s4051_s1 + $0xef] sm:$0x80] %vm3_vm0, %v901_v47  }
 0x125   :  { %1708 = vst.msk [vmem:[%s4051_s1 + $0x117] sm:$0x1] %vm3_vm0, %v963_v48   ;;  %1709 = vst.msk [vmem:[%s4051_s1 + $0x136] sm:$0x2] %vm3_vm0, %v963_v48  }
 0x126   :  { %1710 = vst.msk [vmem:[%s4051_s1 + $0x155] sm:$0x4] %vm3_vm0, %v963_v48   ;;  %1711 = vst.msk [vmem:[%s4051_s1 + $0x174] sm:$0x8] %vm3_vm0, %v963_v48  }
 0x127   :  { %1712 = vst.msk [vmem:[%s4051_s1 + $0x193] sm:$0x10] %vm3_vm0, %v963_v48   ;;  %1713 = vst.msk [vmem:[%s4051_s1 + $0x1b2] sm:$0x20] %vm3_vm0, %v963_v48  }
 0x128   :  { %1714 = vst.msk [vmem:[%s4051_s1 + $0x1d1] sm:$0x40] %vm3_vm0, %v963_v48   ;;  %1715 = vst.msk [vmem:[%s4051_s1 + $0x1f0] sm:$0x80] %vm3_vm0, %v963_v48  }
 0x129   :  { %1699 = vst.msk [vmem:[%s4051_s1 + $0x17] sm:$0x1] %vm3_vm0, %v942_v49   ;;  %1700 = vst.msk [vmem:[%s4051_s1 + $0x36] sm:$0x2] %vm3_vm0, %v942_v49  }
 0x12a   :  { %1701 = vst.msk [vmem:[%s4051_s1 + $0x55] sm:$0x4] %vm3_vm0, %v942_v49   ;;  %1702 = vst.msk [vmem:[%s4051_s1 + $0x74] sm:$0x8] %vm3_vm0, %v942_v49  }
 0x12b   :  { %1703 = vst.msk [vmem:[%s4051_s1 + $0x93] sm:$0x10] %vm3_vm0, %v942_v49   ;;  %1704 = vst.msk [vmem:[%s4051_s1 + $0xb2] sm:$0x20] %vm3_vm0, %v942_v49  }
 0x12c   :  { %1705 = vst.msk [vmem:[%s4051_s1 + $0xd1] sm:$0x40] %vm3_vm0, %v942_v49   ;;  %1706 = vst.msk [vmem:[%s4051_s1 + $0xf0] sm:$0x80] %vm3_vm0, %v942_v49  }
 0x12d   :  { %1725 = vst.msk [vmem:[%s4051_s1 + $0x118] sm:$0x1] %vm3_vm0, %v1004_v50   ;;  %1726 = vst.msk [vmem:[%s4051_s1 + $0x137] sm:$0x2] %vm3_vm0, %v1004_v50  }
 0x12e   :  { %1727 = vst.msk [vmem:[%s4051_s1 + $0x156] sm:$0x4] %vm3_vm0, %v1004_v50   ;;  %1728 = vst.msk [vmem:[%s4051_s1 + $0x175] sm:$0x8] %vm3_vm0, %v1004_v50  }
 0x12f   :  { %1729 = vst.msk [vmem:[%s4051_s1 + $0x194] sm:$0x10] %vm3_vm0, %v1004_v50   ;;  %1730 = vst.msk [vmem:[%s4051_s1 + $0x1b3] sm:$0x20] %vm3_vm0, %v1004_v50  }
 0x130   :  { %1731 = vst.msk [vmem:[%s4051_s1 + $0x1d2] sm:$0x40] %vm3_vm0, %v1004_v50   ;;  %1732 = vst.msk [vmem:[%s4051_s1 + $0x1f1] sm:$0x80] %vm3_vm0, %v1004_v50  }
 0x131   :  { %1716 = vst.msk [vmem:[%s4051_s1 + $0x18] sm:$0x1] %vm3_vm0, %v983_v51   ;;  %1717 = vst.msk [vmem:[%s4051_s1 + $0x37] sm:$0x2] %vm3_vm0, %v983_v51  }
 0x132   :  { %1718 = vst.msk [vmem:[%s4051_s1 + $0x56] sm:$0x4] %vm3_vm0, %v983_v51   ;;  %1719 = vst.msk [vmem:[%s4051_s1 + $0x75] sm:$0x8] %vm3_vm0, %v983_v51  }
 0x133   :  { %1720 = vst.msk [vmem:[%s4051_s1 + $0x94] sm:$0x10] %vm3_vm0, %v983_v51   ;;  %1721 = vst.msk [vmem:[%s4051_s1 + $0xb3] sm:$0x20] %vm3_vm0, %v983_v51  }
 0x134   :  { %1722 = vst.msk [vmem:[%s4051_s1 + $0xd2] sm:$0x40] %vm3_vm0, %v983_v51   ;;  %1723 = vst.msk [vmem:[%s4051_s1 + $0xf1] sm:$0x80] %vm3_vm0, %v983_v51  }
 0x135   :  { %1742 = vst.msk [vmem:[%s4051_s1 + $0x119] sm:$0x1] %vm3_vm0, %v1045_v52   ;;  %1743 = vst.msk [vmem:[%s4051_s1 + $0x138] sm:$0x2] %vm3_vm0, %v1045_v52  }
 0x136   :  { %1744 = vst.msk [vmem:[%s4051_s1 + $0x157] sm:$0x4] %vm3_vm0, %v1045_v52   ;;  %1745 = vst.msk [vmem:[%s4051_s1 + $0x176] sm:$0x8] %vm3_vm0, %v1045_v52  }
 0x137   :  { %1746 = vst.msk [vmem:[%s4051_s1 + $0x195] sm:$0x10] %vm3_vm0, %v1045_v52   ;;  %1747 = vst.msk [vmem:[%s4051_s1 + $0x1b4] sm:$0x20] %vm3_vm0, %v1045_v52  }
 0x138   :  { %1748 = vst.msk [vmem:[%s4051_s1 + $0x1d3] sm:$0x40] %vm3_vm0, %v1045_v52   ;;  %1749 = vst.msk [vmem:[%s4051_s1 + $0x1f2] sm:$0x80] %vm3_vm0, %v1045_v52  }
 0x139   :  { %1733 = vst.msk [vmem:[%s4051_s1 + $0x19] sm:$0x1] %vm3_vm0, %v1024_v53   ;;  %1734 = vst.msk [vmem:[%s4051_s1 + $0x38] sm:$0x2] %vm3_vm0, %v1024_v53  }
 0x13a   :  { %1735 = vst.msk [vmem:[%s4051_s1 + $0x57] sm:$0x4] %vm3_vm0, %v1024_v53   ;;  %1736 = vst.msk [vmem:[%s4051_s1 + $0x76] sm:$0x8] %vm3_vm0, %v1024_v53  }
 0x13b   :  { %1737 = vst.msk [vmem:[%s4051_s1 + $0x95] sm:$0x10] %vm3_vm0, %v1024_v53   ;;  %1738 = vst.msk [vmem:[%s4051_s1 + $0xb4] sm:$0x20] %vm3_vm0, %v1024_v53  }
 0x13c   :  { %1739 = vst.msk [vmem:[%s4051_s1 + $0xd3] sm:$0x40] %vm3_vm0, %v1024_v53   ;;  %1740 = vst.msk [vmem:[%s4051_s1 + $0xf2] sm:$0x80] %vm3_vm0, %v1024_v53  }
 0x13d   :  { %1759 = vst.msk [vmem:[%s4051_s1 + $0x11a] sm:$0x1] %vm3_vm0, %v1086_v54   ;;  %1760 = vst.msk [vmem:[%s4051_s1 + $0x139] sm:$0x2] %vm3_vm0, %v1086_v54  }
 0x13e   :  { %1761 = vst.msk [vmem:[%s4051_s1 + $0x158] sm:$0x4] %vm3_vm0, %v1086_v54   ;;  %1762 = vst.msk [vmem:[%s4051_s1 + $0x177] sm:$0x8] %vm3_vm0, %v1086_v54  }
 0x13f   :  { %1763 = vst.msk [vmem:[%s4051_s1 + $0x196] sm:$0x10] %vm3_vm0, %v1086_v54   ;;  %1764 = vst.msk [vmem:[%s4051_s1 + $0x1b5] sm:$0x20] %vm3_vm0, %v1086_v54  }
 0x140   :  { %1765 = vst.msk [vmem:[%s4051_s1 + $0x1d4] sm:$0x40] %vm3_vm0, %v1086_v54   ;;  %1766 = vst.msk [vmem:[%s4051_s1 + $0x1f3] sm:$0x80] %vm3_vm0, %v1086_v54  }
 0x141   :  { %1750 = vst.msk [vmem:[%s4051_s1 + $0x1a] sm:$0x1] %vm3_vm0, %v1065_v55   ;;  %1751 = vst.msk [vmem:[%s4051_s1 + $0x39] sm:$0x2] %vm3_vm0, %v1065_v55  }
 0x142   :  { %1752 = vst.msk [vmem:[%s4051_s1 + $0x58] sm:$0x4] %vm3_vm0, %v1065_v55   ;;  %1753 = vst.msk [vmem:[%s4051_s1 + $0x77] sm:$0x8] %vm3_vm0, %v1065_v55  }
 0x143   :  { %1754 = vst.msk [vmem:[%s4051_s1 + $0x96] sm:$0x10] %vm3_vm0, %v1065_v55   ;;  %1755 = vst.msk [vmem:[%s4051_s1 + $0xb5] sm:$0x20] %vm3_vm0, %v1065_v55  }
 0x144   :  { %1756 = vst.msk [vmem:[%s4051_s1 + $0xd4] sm:$0x40] %vm3_vm0, %v1065_v55   ;;  %1757 = vst.msk [vmem:[%s4051_s1 + $0xf3] sm:$0x80] %vm3_vm0, %v1065_v55  }
 0x145   :  { %1776 = vst.msk [vmem:[%s4051_s1 + $0x11b] sm:$0x1] %vm3_vm0, %v1127_v56   ;;  %1777 = vst.msk [vmem:[%s4051_s1 + $0x13a] sm:$0x2] %vm3_vm0, %v1127_v56  }
 0x146   :  { %1778 = vst.msk [vmem:[%s4051_s1 + $0x159] sm:$0x4] %vm3_vm0, %v1127_v56   ;;  %1779 = vst.msk [vmem:[%s4051_s1 + $0x178] sm:$0x8] %vm3_vm0, %v1127_v56  }
 0x147   :  { %1780 = vst.msk [vmem:[%s4051_s1 + $0x197] sm:$0x10] %vm3_vm0, %v1127_v56   ;;  %1781 = vst.msk [vmem:[%s4051_s1 + $0x1b6] sm:$0x20] %vm3_vm0, %v1127_v56  }
 0x148   :  { %1782 = vst.msk [vmem:[%s4051_s1 + $0x1d5] sm:$0x40] %vm3_vm0, %v1127_v56   ;;  %1783 = vst.msk [vmem:[%s4051_s1 + $0x1f4] sm:$0x80] %vm3_vm0, %v1127_v56  }
 0x149   :  { %1767 = vst.msk [vmem:[%s4051_s1 + $0x1b] sm:$0x1] %vm3_vm0, %v1106_v57   ;;  %1768 = vst.msk [vmem:[%s4051_s1 + $0x3a] sm:$0x2] %vm3_vm0, %v1106_v57  }
 0x14a   :  { %1769 = vst.msk [vmem:[%s4051_s1 + $0x59] sm:$0x4] %vm3_vm0, %v1106_v57   ;;  %1770 = vst.msk [vmem:[%s4051_s1 + $0x78] sm:$0x8] %vm3_vm0, %v1106_v57  }
 0x14b   :  { %1771 = vst.msk [vmem:[%s4051_s1 + $0x97] sm:$0x10] %vm3_vm0, %v1106_v57   ;;  %1772 = vst.msk [vmem:[%s4051_s1 + $0xb6] sm:$0x20] %vm3_vm0, %v1106_v57  }
 0x14c   :  { %1773 = vst.msk [vmem:[%s4051_s1 + $0xd5] sm:$0x40] %vm3_vm0, %v1106_v57   ;;  %1774 = vst.msk [vmem:[%s4051_s1 + $0xf4] sm:$0x80] %vm3_vm0, %v1106_v57  }
 0x14d   :  { %1793 = vst.msk [vmem:[%s4051_s1 + $0x11c] sm:$0x1] %vm3_vm0, %v1168_v58   ;;  %1794 = vst.msk [vmem:[%s4051_s1 + $0x13b] sm:$0x2] %vm3_vm0, %v1168_v58  }
 0x14e   :  { %1795 = vst.msk [vmem:[%s4051_s1 + $0x15a] sm:$0x4] %vm3_vm0, %v1168_v58   ;;  %1796 = vst.msk [vmem:[%s4051_s1 + $0x179] sm:$0x8] %vm3_vm0, %v1168_v58  }
 0x14f   :  { %1797 = vst.msk [vmem:[%s4051_s1 + $0x198] sm:$0x10] %vm3_vm0, %v1168_v58   ;;  %1798 = vst.msk [vmem:[%s4051_s1 + $0x1b7] sm:$0x20] %vm3_vm0, %v1168_v58  }
 0x150   :  { %1799 = vst.msk [vmem:[%s4051_s1 + $0x1d6] sm:$0x40] %vm3_vm0, %v1168_v58   ;;  %1800 = vst.msk [vmem:[%s4051_s1 + $0x1f5] sm:$0x80] %vm3_vm0, %v1168_v58  }
 0x151   :  { %1784 = vst.msk [vmem:[%s4051_s1 + $0x1c] sm:$0x1] %vm3_vm0, %v1147_v59   ;;  %1785 = vst.msk [vmem:[%s4051_s1 + $0x3b] sm:$0x2] %vm3_vm0, %v1147_v59  }
 0x152   :  { %1786 = vst.msk [vmem:[%s4051_s1 + $0x5a] sm:$0x4] %vm3_vm0, %v1147_v59   ;;  %1787 = vst.msk [vmem:[%s4051_s1 + $0x79] sm:$0x8] %vm3_vm0, %v1147_v59  }
 0x153   :  { %1788 = vst.msk [vmem:[%s4051_s1 + $0x98] sm:$0x10] %vm3_vm0, %v1147_v59   ;;  %1789 = vst.msk [vmem:[%s4051_s1 + $0xb7] sm:$0x20] %vm3_vm0, %v1147_v59  }
 0x154   :  { %1790 = vst.msk [vmem:[%s4051_s1 + $0xd6] sm:$0x40] %vm3_vm0, %v1147_v59   ;;  %1791 = vst.msk [vmem:[%s4051_s1 + $0xf5] sm:$0x80] %vm3_vm0, %v1147_v59  }
 0x155   :  { %1810 = vst.msk [vmem:[%s4051_s1 + $0x11d] sm:$0x1] %vm3_vm0, %v1209_v60   ;;  %1811 = vst.msk [vmem:[%s4051_s1 + $0x13c] sm:$0x2] %vm3_vm0, %v1209_v60  }
 0x156   :  { %1812 = vst.msk [vmem:[%s4051_s1 + $0x15b] sm:$0x4] %vm3_vm0, %v1209_v60   ;;  %1813 = vst.msk [vmem:[%s4051_s1 + $0x17a] sm:$0x8] %vm3_vm0, %v1209_v60  }
 0x157   :  { %1814 = vst.msk [vmem:[%s4051_s1 + $0x199] sm:$0x10] %vm3_vm0, %v1209_v60   ;;  %1815 = vst.msk [vmem:[%s4051_s1 + $0x1b8] sm:$0x20] %vm3_vm0, %v1209_v60  }
 0x158   :  { %1816 = vst.msk [vmem:[%s4051_s1 + $0x1d7] sm:$0x40] %vm3_vm0, %v1209_v60   ;;  %1817 = vst.msk [vmem:[%s4051_s1 + $0x1f6] sm:$0x80] %vm3_vm0, %v1209_v60  }
 0x159   :  { %1801 = vst.msk [vmem:[%s4051_s1 + $0x1d] sm:$0x1] %vm3_vm0, %v1188_v61   ;;  %1802 = vst.msk [vmem:[%s4051_s1 + $0x3c] sm:$0x2] %vm3_vm0, %v1188_v61  }
 0x15a   :  { %1803 = vst.msk [vmem:[%s4051_s1 + $0x5b] sm:$0x4] %vm3_vm0, %v1188_v61   ;;  %1804 = vst.msk [vmem:[%s4051_s1 + $0x7a] sm:$0x8] %vm3_vm0, %v1188_v61  }
 0x15b   :  { %1805 = vst.msk [vmem:[%s4051_s1 + $0x99] sm:$0x10] %vm3_vm0, %v1188_v61   ;;  %1806 = vst.msk [vmem:[%s4051_s1 + $0xb8] sm:$0x20] %vm3_vm0, %v1188_v61  }
 0x15c   :  { %1807 = vst.msk [vmem:[%s4051_s1 + $0xd7] sm:$0x40] %vm3_vm0, %v1188_v61   ;;  %1808 = vst.msk [vmem:[%s4051_s1 + $0xf6] sm:$0x80] %vm3_vm0, %v1188_v61  }
 0x15d   :  { %1827 = vst.msk [vmem:[%s4051_s1 + $0x11e] sm:$0x1] %vm3_vm0, %v1250_v62   ;;  %1828 = vst.msk [vmem:[%s4051_s1 + $0x13d] sm:$0x2] %vm3_vm0, %v1250_v62  }
 0x15e   :  { %1829 = vst.msk [vmem:[%s4051_s1 + $0x15c] sm:$0x4] %vm3_vm0, %v1250_v62   ;;  %1830 = vst.msk [vmem:[%s4051_s1 + $0x17b] sm:$0x8] %vm3_vm0, %v1250_v62  }
 0x15f   :  { %1831 = vst.msk [vmem:[%s4051_s1 + $0x19a] sm:$0x10] %vm3_vm0, %v1250_v62   ;;  %1832 = vst.msk [vmem:[%s4051_s1 + $0x1b9] sm:$0x20] %vm3_vm0, %v1250_v62  }
 0x160   :  { %1833 = vst.msk [vmem:[%s4051_s1 + $0x1d8] sm:$0x40] %vm3_vm0, %v1250_v62   ;;  %1834 = vst.msk [vmem:[%s4051_s1 + $0x1f7] sm:$0x80] %vm3_vm0, %v1250_v62  }
 0x161   :  { %1818 = vst.msk [vmem:[%s4051_s1 + $0x1e] sm:$0x1] %vm3_vm0, %v1229_v63   ;;  %1819 = vst.msk [vmem:[%s4051_s1 + $0x3d] sm:$0x2] %vm3_vm0, %v1229_v63  }
 0x162   :  { %1820 = vst.msk [vmem:[%s4051_s1 + $0x5c] sm:$0x4] %vm3_vm0, %v1229_v63   ;;  %1821 = vst.msk [vmem:[%s4051_s1 + $0x7b] sm:$0x8] %vm3_vm0, %v1229_v63  }
 0x163   :  { %1822 = vst.msk [vmem:[%s4051_s1 + $0x9a] sm:$0x10] %vm3_vm0, %v1229_v63   ;;  %1823 = vst.msk [vmem:[%s4051_s1 + $0xb9] sm:$0x20] %vm3_vm0, %v1229_v63  }
 0x164   :  { %1824 = vst.msk [vmem:[%s4051_s1 + $0xd8] sm:$0x40] %vm3_vm0, %v1229_v63   ;;  %1825 = vst.msk [vmem:[%s4051_s1 + $0xf7] sm:$0x80] %vm3_vm0, %v1229_v63  }
 0x165   :  { %1844 = vst.msk [vmem:[%s4051_s1 + $0x11f] sm:$0x1] %vm3_vm0, %v1291_v0   ;;  %1845 = vst.msk [vmem:[%s4051_s1 + $0x13e] sm:$0x2] %vm3_vm0, %v1291_v0  }
 0x166   :  { %1846 = vst.msk [vmem:[%s4051_s1 + $0x15d] sm:$0x4] %vm3_vm0, %v1291_v0   ;;  %1847 = vst.msk [vmem:[%s4051_s1 + $0x17c] sm:$0x8] %vm3_vm0, %v1291_v0  }
 0x167   :  { %1848 = vst.msk [vmem:[%s4051_s1 + $0x19b] sm:$0x10] %vm3_vm0, %v1291_v0   ;;  %1849 = vst.msk [vmem:[%s4051_s1 + $0x1ba] sm:$0x20] %vm3_vm0, %v1291_v0  }
 0x168   :  { %1850 = vst.msk [vmem:[%s4051_s1 + $0x1d9] sm:$0x40] %vm3_vm0, %v1291_v0   ;;  %1851 = vst.msk [vmem:[%s4051_s1 + $0x1f8] sm:$0x80] %vm3_vm0, %v1291_v0  }
 0x169   :  { %1835 = vst.msk [vmem:[%s4051_s1 + $0x1f] sm:$0x1] %vm3_vm0, %v1270_v1   ;;  %1836 = vst.msk [vmem:[%s4051_s1 + $0x3e] sm:$0x2] %vm3_vm0, %v1270_v1  }
 0x16a   :  { %1837 = vst.msk [vmem:[%s4051_s1 + $0x5d] sm:$0x4] %vm3_vm0, %v1270_v1   ;;  %1838 = vst.msk [vmem:[%s4051_s1 + $0x7c] sm:$0x8] %vm3_vm0, %v1270_v1  }
 0x16b   :  { %1839 = vst.msk [vmem:[%s4051_s1 + $0x9b] sm:$0x10] %vm3_vm0, %v1270_v1   ;;  %1840 = vst.msk [vmem:[%s4051_s1 + $0xba] sm:$0x20] %vm3_vm0, %v1270_v1  }
 0x16c   :  { %1841 = vst.msk [vmem:[%s4051_s1 + $0xd9] sm:$0x40] %vm3_vm0, %v1270_v1   ;;  %1842 = vst.msk [vmem:[%s4051_s1 + $0xf8] sm:$0x80] %vm3_vm0, %v1270_v1  }

// kernel: spatial_evo_conv_forward.30
= control target key start
LH: loop header
LB: loop body
LE: loop exit
PB: predicated region body
PF: predicated region fallthrough
CT: control target
= control target key end

     0   :  { %s1001_s12 = smov 0   ;;  %s1003_s13 = smov 0   ;;  %s1209_s0 = inlined_call_operand.vmem [shape: bf16[4,128,128], index: 0, kind: input, shape index: {}]   ;;  %s1210_s1 = inlined_call_operand.vmem [shape: f32[4,128,1], index: 1, kind: input, shape index: {}]   ;;  %s1211_s2 = inlined_call_operand.vmem [shape: bf16[1,128], index: 2, kind: input, shape index: {}]   ;;  %s1212_s3 = inlined_call_operand.vmem [shape: bf16[4,128,32], index: 3, kind: output, shape index: {}]  }
   0x1   :  { %s1005_s14 = smov 0  }
   0x2 LB: > { %s25_s15 = sadd.s32 1, %s972_s13  ;;  %p800_p0 = scmp.ge.s32.totalorder %s976_s14, 1  ;;  %s976_s14 = sphi %s1005_s14, %s13_s14   ;;  %s972_s13 = sphi %s1003_s13, %s1214_s13   ;;  %s968_s12 = sphi %s1001_s12, %s1213_s12  }
   0x3   : > { %p27_p1 = scmp.ge.s32.totalorder %s25_s15, 4  ;;  %p175_p2 = scmp.lt.s32.totalorder %s976_s14, 5 }
   0x5   : > { %s1216_s15 = smov (%p27_p1, %s25_s15), 0  ;;  %p176_p3 = pnand %p800_p0, %p175_p2 }
   0x6   : > { %p217_p4 = scmp.lt.s32.totalorder (!%p176_p3), %s968_s12, 3  ;;  %v262_v0 = vld [vmem:[%s1211_s2] sm:$0x1] (!%p176_p3)  ;;  %v266_v1 = vlaneseq (!%p176_p3)  ;;  %v978_v2 = vmov (!%p176_p3), 0   ;;  %s979_s26 = smov (!%p176_p3), 32   ;;  %vm674_vm0 = vcmask (!%p176_p3), 257024  }
   0x7   : > { %179 = sbr.rel (%p176_p3) target bundleno = 252 (0xfc), region = 32  ;;  %880 = vset.pattern.permute.xlu1 (!%p176_p3), %v978_v2  ;;  %881 = vset.pattern.permute.xlu0 (!%p176_p3), %v978_v2  ;;  %v264_v3 = vpack.i.b16 (!%p176_p3), %v262_v0, %v262_v0  ;;  %s980_s27 = smov (!%p176_p3), 64  }
   0x8   : > { %v267_v4 = vshrl.u32 (!%p176_p3), %v266_v1, 7 }
   0xa   : > { %v268_v5 = vsub.s32 (!%p176_p3), 0, %v267_v4 }
   0xc   : > { %v269_v7 = vrot.slane (!%p176_p3), %v264_v3, %v268_v5 }
   0xe   : > { %s1218_s12 = smov (!%p217_p4, %s968_s12), 3  ;;  %v807_v11 = vcombine.low %v269_v7, %v269_v7 }
   0xf   : > { %s850_s18 = sshll.u32 %s1218_s12, 6  ;;  %s851_s22 = sshll.u32 %s1218_s12, 7 }
  0x10   : > { %s1030_s21 = scalar_lea.vmem %s1209_s0, %s850_s18  ;;  %s1094_s25 = scalar_lea.vmem %s1210_s1, %s851_s22 }
  0x11   : > { %v1033_v6 = vld [vmem:[%s1030_s21 + $0x8] sm:$0xf]  ;;  %v1036_v8 = vld [vmem:[%s1030_s21 + $0xc] sm:$0xf]  ;;  %v1039_v9 = vld [vmem:[%s1030_s21] sm:$0xf]  ;;  %s1159_s30 = scalar_lea.vmem %s1212_s3, %s850_s18 }
  0x12   : > { %v1042_v10 = vld [vmem:[%s1030_s21 + $0x4] sm:$0xf]  ;;  %v276_v12 = vmul.bf16 %v807_v11, %v1033_v6  ;;  %v274_v13 = vmul.bf16 %v807_v11, %v1039_v9  ;;  %v277_v14 = vmul.bf16 %v807_v11, %v1036_v8  ;;  %v1049_v16 = vld [vmem:[%s1030_s21 + $0x14] sm:$0xf]  ;;  %v1052_v17 = vld [vmem:[%s1030_s21 + $0x10] sm:$0xf] }
  0x13   : > { %v275_v15 = vmul.bf16 %v807_v11, %v1042_v10  ;;  %v279_v22 = vmul.bf16 %v807_v11, %v1049_v16  ;;  %v278_v23 = vmul.bf16 %v807_v11, %v1052_v17  ;;  %v1057_v24 = vld [vmem:[%s1030_s21 + $0x1c] sm:$0xf]  ;;  %v1060_v25 = vld [vmem:[%s1030_s21 + $0x18] sm:$0xf]  ;;  %v1065_v30 = vld [vmem:[%s1030_s21 + $0x24] sm:$0xf]  ;;  %v824_v62 = vcombine.low %v1039_v9, %v1042_v10 }
  0x14   : > { %v292_v18 = vunpack.c.l.bf16 %v276_v12  ;;  %v290_v19 = vunpack.c.l.bf16 %v274_v13  ;;  %v293_v20 = vunpack.c.l.bf16 %v277_v14  ;;  %v281_v28 = vmul.bf16 %v807_v11, %v1057_v24  ;;  %v1068_v31 = vld [vmem:[%s1030_s21 + $0x20] sm:$0xf]  ;;  %v1073_v36 = vld [vmem:[%s1030_s21 + $0x2c] sm:$0xf]  ;;  %v1076_v37 = vld [vmem:[%s1030_s21 + $0x28] sm:$0xf] }
  0x15   : > { %v291_v21 = vunpack.c.l.bf16 %v275_v15  ;;  %v295_v26 = vunpack.c.l.bf16 %v279_v22  ;;  %v294_v27 = vunpack.c.l.bf16 %v278_v23  ;;  %v280_v29 = vmul.bf16 %v807_v11, %v1060_v25  ;;  %v1081_v42 = vld [vmem:[%s1030_s21 + $0x34] sm:$0xf]  ;;  %v1084_v43 = vld [vmem:[%s1030_s21 + $0x30] sm:$0xf]  ;;  %v261_v48 = vld [vmem:[%s1030_s21 + $0x3c] sm:$0xf] }
  0x16   : > { %310 = vadd.xlane.f32.xlu1 %v292_v18  ;;  %306 = vadd.xlane.f32.xlu0 %v290_v19  ;;  %v297_v32 = vunpack.c.l.bf16 %v281_v28  ;;  %v283_v34 = vmul.bf16 %v807_v11, %v1065_v30  ;;  %v282_v35 = vmul.bf16 %v807_v11, %v1068_v31  ;;  %v285_v40 = vmul.bf16 %v807_v11, %v1073_v36  ;;  %v260_v49 = vld [vmem:[%s1030_s21 + $0x38] sm:$0xf]  ;;  %v546_v56 = vld [vmem:[%s1094_s25] sm:$0xff]  ;;  %v547_v57 = vld [vmem:[%s1094_s25 + $0x8] sm:$0xff] }
  0x17   : > { %v296_v33 = vunpack.c.l.bf16 %v280_v29  ;;  %v284_v41 = vmul.bf16 %v807_v11, %v1076_v37  ;;  %v287_v46 = vmul.bf16 %v807_v11, %v1081_v42  ;;  %v286_v47 = vmul.bf16 %v807_v11, %v1084_v43  ;;  %v548_v59 = vld [vmem:[%s1094_s25 + $0x10] sm:$0xff]  ;;  %v549_v60 = vld [vmem:[%s1094_s25 + $0x18] sm:$0xff]  ;;  %v550_v63 = vld [vmem:[%s1094_s25 + $0x20] sm:$0xff] }
  0x18   : > { %v299_v38 = vunpack.c.l.bf16 %v283_v34  ;;  %v298_v39 = vunpack.c.l.bf16 %v282_v35  ;;  %v301_v44 = vunpack.c.l.bf16 %v285_v40  ;;  %v289_v52 = vmul.bf16 %v807_v11, %v261_v48  ;;  %v551_v0 = vld [vmem:[%s1094_s25 + $0x28] sm:$0xff]  ;;  %v552_v1 = vld [vmem:[%s1094_s25 + $0x30] sm:$0xff]  ;;  %v553_v2 = vld [vmem:[%s1094_s25 + $0x38] sm:$0xff] }
  0x19   : > { %v300_v45 = vunpack.c.l.bf16 %v284_v41  ;;  %v303_v50 = vunpack.c.l.bf16 %v287_v46  ;;  %v302_v51 = vunpack.c.l.bf16 %v286_v47  ;;  %v288_v53 = vmul.bf16 %v807_v11, %v260_v49  ;;  %v554_v5 = vld [vmem:[%s1094_s25 + $0x40] sm:$0xff]  ;;  %v555_v7 = vld [vmem:[%s1094_s25 + $0x48] sm:$0xff]  ;;  %v556_v13 = vld [vmem:[%s1094_s25 + $0x50] sm:$0xff] }
  0x1a   : > { %312 = vadd.xlane.f32.xlu1 %v293_v20  ;;  %308 = vadd.xlane.f32.xlu0 %v291_v21  ;;  %v305_v54 = vunpack.c.l.bf16 %v289_v52  ;;  %v562_v58 = vpack.c.bf16 %v547_v57, %v546_v56  ;;  %v563_v61 = vpack.c.bf16 %v549_v60, %v548_v59  ;;  %v564_v3 = vpack.c.bf16 %v551_v0, %v550_v63  ;;  %v558_v11 = vld [vmem:[%s1094_s25 + $0x60] sm:$0xff]  ;;  %v559_v12 = vld [vmem:[%s1094_s25 + $0x68] sm:$0xff]  ;;  %v557_v14 = vld [vmem:[%s1094_s25 + $0x58] sm:$0xff] }
  0x1b   : > { %v304_v55 = vunpack.c.l.bf16 %v288_v53  ;;  %v565_v4 = vpack.c.bf16 %v553_v2, %v552_v1  ;;  %v566_v9 = vpack.c.bf16 %v555_v7, %v554_v5  ;;  %v568_v10 = vpack.c.bf16 %v559_v12, %v558_v11  ;;  %v560_v19 = vld [vmem:[%s1094_s25 + $0x70] sm:$0xff]  ;;  %v561_v20 = vld [vmem:[%s1094_s25 + $0x78] sm:$0xff] }
  0x1c   : > { %v567_v15 = vpack.c.bf16 %v557_v14, %v556_v13  ;;  %v825_v18 = vcombine.low %v1033_v6, %v1036_v8  ;;  %v569_v21 = vpack.c.bf16 %v561_v20, %v560_v19  ;;  %v827_v22 = vcombine.low %v1060_v25, %v1057_v24 }
  0x1d   : > { %v826_v23 = vcombine.low %v1052_v17, %v1049_v16  ;;  %v828_v6 = vcombine.low %v1068_v31, %v1065_v30  ;;  %v831_v8 = vcombine.low %v260_v49, %v261_v48  ;;  %v830_v24 = vcombine.low %v1084_v43, %v1081_v42 }
  0x1e   : > { %316 = vadd.xlane.f32.xlu1 %v295_v26  ;;  %314 = vadd.xlane.f32.xlu0 %v294_v27  ;;  %v829_v26 = vcombine.low %v1076_v37, %v1073_v36 }
  0x22   : > { %320 = vadd.xlane.f32.xlu1 %v297_v32  ;;  %318 = vadd.xlane.f32.xlu0 %v296_v33 }
  0x26   : > { %324 = vadd.xlane.f32.xlu1 %v299_v38  ;;  %322 = vadd.xlane.f32.xlu0 %v298_v39 }
  0x2a   : > { %328 = vadd.xlane.f32.xlu1 %v301_v44  ;;  %326 = vadd.xlane.f32.xlu0 %v300_v45 }
  0x2e   : > { %332 = vadd.xlane.f32.xlu1 %v303_v50  ;;  %330 = vadd.xlane.f32.xlu0 %v302_v51 }
  0x32   : > { %336 = vadd.xlane.f32.xlu1 %v305_v54  ;;  %334 = vadd.xlane.f32.xlu0 %v304_v55 }
  0x43   : > { %572 = vperm.xlu1 %880, %v562_v58  }
  0x47   : > { %577 = vperm.xlu1 %880, %v563_v61  }
  0x48   : > { %482 = vrot.lane.b32.xlu0 %v824_v62, %s979_s26 }
  0x4b   : > { %582 = vperm.xlu1 %880, %v564_v3  }
  0x4c   : > { %587 = vperm.xlu0 %881, %v565_v4  }
  0x4f   : > { %592 = vperm.xlu1 %880, %v566_v9  }
  0x50   : > { %602 = vperm.xlu0 %881, %v568_v10  }
  0x53   : > { %597 = vperm.xlu1 %880, %v567_v15  }
  0x54   : > { %484 = vrot.lane.b32.xlu0 %v825_v18, %s979_s26 }
  0x57   : > { %607 = vperm.xlu1 %880, %v569_v21  }
  0x58   : > { %488 = vrot.lane.b32.xlu0 %v827_v22, %s979_s26 }
  0x5b   : > { %486 = vrot.lane.b32.xlu1 %v826_v23, %s979_s26 }
  0x5c   : > { %492 = vrot.lane.b32.xlu0 %v829_v26, %s979_s26 }
  0x5f   : > { %490 = vrot.lane.b32.xlu1 %v828_v6, %s979_s26 }
  0x60   : > { %496 = vrot.lane.b32.xlu0 %v831_v8, %s979_s26 }
  0x63   : > { %494 = vrot.lane.b32.xlu1 %v830_v24, %s979_s26 }
  0x64   : > { %516 = vrot.lane.b32.xlu0 %v825_v18, %s980_s27 }
  0x67   : > { %514 = vrot.lane.b32.xlu1 %v824_v62, %s980_s27 }
  0x68   : > { %520 = vrot.lane.b32.xlu0 %v827_v22, %s980_s27 }
  0x6b   : > { %518 = vrot.lane.b32.xlu1 %v826_v23, %s980_s27 }
  0x6c   : > { %524 = vrot.lane.b32.xlu0 %v829_v26, %s980_s27 }
  0x6f   : > { %522 = vrot.lane.b32.xlu1 %v828_v6, %s980_s27 }
  0x70   : > { %528 = vrot.lane.b32.xlu0 %v831_v8, %s980_s27 }
  0x73   : > { %526 = vrot.lane.b32.xlu1 %v830_v24, %s980_s27 }
  0xa3   : > { %v311_v16 = vpop.xlane.xlu1 %310  ;;  %v307_v17 = vpop.xlane.xlu0 %306 }
  0xa4   : > { %v810_v36 = vmul.f32 -1.442695, %v311_v16  ;;  %v808_v37 = vmul.f32 -1.442695, %v307_v17 }
  0xa6   : > { %890 = vpow2.f32 %v810_v36 }
  0xa7   : > { %v313_v25 = vpop.xlane.xlu1 %312  ;;  %v309_v27 = vpop.xlane.xlu0 %308  ;;  %892 = vpow2.f32 %v808_v37 }
  0xa8   : > { %v811_v40 = vmul.f32 -1.442695, %v313_v25  ;;  %v809_v41 = vmul.f32 -1.442695, %v309_v27 }
  0xaa   : > { %894 = vpow2.f32 %v811_v40 }
  0xab   : > { %v317_v28 = vpop.xlane.xlu1 %316  ;;  %v315_v29 = vpop.xlane.xlu0 %314  ;;  %896 = vpow2.f32 %v809_v41 }
  0xac   : > { %v813_v43 = vmul.f32 -1.442695, %v317_v28  ;;  %v812_v47 = vmul.f32 -1.442695, %v315_v29 }
  0xae   : > { %898 = vpow2.f32 %v813_v43 }
  0xaf   : > { %v321_v30 = vpop.xlane.xlu1 %320  ;;  %v319_v31 = vpop.xlane.xlu0 %318 }
  0xb0   : > { %v815_v44 = vmul.f32 -1.442695, %v321_v30  ;;  %v814_v46 = vmul.f32 -1.442695, %v319_v31  ;;  %v891_v55 = vpop.eup %890 }
  0xb1   : > { %v893_v57 = vpop.eup %892  ;;  %v388_v59 = vadd.f32 1.0, %v891_v55 }
  0xb2   : > { %900 = vpow2.f32 %v815_v44  ;;  %v386_v63 = vadd.f32 1.0, %v893_v57 }
  0xb3   : > { %v325_v32 = vpop.xlane.xlu1 %324  ;;  %v323_v33 = vpop.xlane.xlu0 %322  ;;  %902 = vpow2.f32 %v814_v46 }
  0xb4   : > { %v817_v49 = vmul.f32 -1.442695, %v325_v32  ;;  %v816_v50 = vmul.f32 -1.442695, %v323_v33  ;;  %904 = vpow2.f32 %v812_v47  ;;  %v895_v62 = vpop.eup %894 }
  0xb5   : > { %v897_v0 = vpop.eup %896  ;;  %v389_v5 = vadd.f32 1.0, %v895_v62 }
  0xb6   : > { %906 = vpow2.f32 %v817_v49  ;;  %v387_v9 = vadd.f32 1.0, %v897_v0 }
  0xb7   : > { %v329_v34 = vpop.xlane.xlu1 %328  ;;  %v327_v35 = vpop.xlane.xlu0 %326  ;;  %908 = vpow2.f32 %v816_v50 }
  0xb8   : > { %v819_v51 = vmul.f32 -1.442695, %v329_v34  ;;  %v818_v52 = vmul.f32 -1.442695, %v327_v35  ;;  %v899_v2 = vpop.eup %898 }
  0xb9   : > { %v391_v13 = vadd.f32 1.0, %v899_v2 }
  0xba   : > { %910 = vpow2.f32 %v819_v51 }
  0xbb   : > { %v333_v38 = vpop.xlane.xlu1 %332  ;;  %v331_v39 = vpop.xlane.xlu0 %330  ;;  %912 = vpow2.f32 %v818_v52 }
  0xbc   : > { %v821_v1 = vmul.f32 -1.442695, %v333_v38  ;;  %v820_v3 = vmul.f32 -1.442695, %v331_v39  ;;  %v901_v4 = vpop.eup %900 }
  0xbd   : > { %v903_v12 = vpop.eup %902  ;;  %v393_v15 = vadd.f32 1.0, %v901_v4 }
  0xbe   : > { %v905_v10 = vpop.eup %904  ;;  %v392_v19 = vadd.f32 1.0, %v903_v12 }
  0xbf   : > { %v337_v42 = vpop.xlane.xlu1 %336  ;;  %v335_v45 = vpop.xlane.xlu0 %334  ;;  %v390_v23 = vadd.f32 1.0, %v905_v10 }
  0xc0   : > { %v823_v56 = vmul.f32 -1.442695, %v337_v42  ;;  %v822_v58 = vmul.f32 -1.442695, %v335_v45  ;;  %v907_v14 = vpop.eup %906 }
  0xc1   : > { %v909_v18 = vpop.eup %908  ;;  %v395_v6 = vadd.f32 1.0, %v907_v14 }
  0xc2   : > { %914 = vpow2.f32 %v823_v56  ;;  %v394_v24 = vadd.f32 1.0, %v909_v18 }
  0xc3   : > { %v1134_v48 = vpop.permute.xlu1 %572  ;;  %v1136_v53 = vpop.permute.xlu0 %482  ;;  %916 = vpow2.f32 %v822_v58 }
  0xc4   : > { %918 = vrcp.f32 %v388_v59  ;;  %v911_v22 = vpop.eup %910 }
  0xc5   : > { %920 = vrcp.f32 %v386_v63  ;;  %v913_v26 = vpop.eup %912  ;;  %v397_v17 = vadd.f32 1.0, %v911_v22 }
  0xc6   : > { %922 = vpow2.f32 %v821_v1  ;;  %v396_v28 = vadd.f32 1.0, %v913_v26 }
  0xc7   : > { %v1138_v54 = vpop.permute.xlu1 %577  ;;  %924 = vpow2.f32 %v820_v3 }
  0xc8   : > { %926 = vrcp.f32 %v389_v5 }
  0xc9   : > { %928 = vrcp.f32 %v387_v9 }
  0xca   : > { %930 = vrcp.f32 %v391_v13 }
  0xcb   : > { %v1140_v60 = vpop.permute.xlu1 %582  ;;  %v1142_v61 = vpop.permute.xlu0 %587  ;;  %932 = vrcp.f32 %v393_v15 }
  0xcc   : > { %v915_v8 = vpop.eup %914  ;;  %934 = vrcp.f32 %v392_v19 }
  0xcd   : > { %v917_v16 = vpop.eup %916  ;;  %936 = vrcp.f32 %v390_v23  ;;  %v401_v30 = vadd.f32 1.0, %v915_v8 }
  0xce   : > { %v919_v29 = vpop.eup %918  ;;  %938 = vrcp.f32 %v395_v6  ;;  %v400_v32 = vadd.f32 1.0, %v917_v16 }
  0xcf   : > { %v1144_v7 = vpop.permute.xlu1 %592  ;;  %v1146_v11 = vpop.permute.xlu0 %602  ;;  %940 = vrcp.f32 %v394_v24 }
  0xd0   : > { %v921_v31 = vpop.eup %920  ;;  %942 = vrcp.f32 %v397_v17 }
  0xd1   : > { %v923_v33 = vpop.eup %922  ;;  %944 = vrcp.f32 %v396_v28 }
  0xd2   : > { %v925_v36 = vpop.eup %924  ;;  %946 = vrcp.f32 %v401_v30  ;;  %v399_v39 = vadd.f32 1.0, %v923_v33 }
  0xd3   : > { %v1148_v20 = vpop.permute.xlu1 %597  ;;  %v485_v21 = vpop.permute.xlu0 %484  ;;  %948 = vrcp.f32 %v400_v32  ;;  %v398_v41 = vadd.f32 1.0, %v925_v36 }
  0xd4   : > { %v927_v37 = vpop.eup %926  ;;  %950 = vrcp.f32 %v399_v39 }
  0xd5   : > { %v929_v38 = vpop.eup %928  ;;  %v435_v45 = vpack.c.bf16 %v927_v37, %v919_v29  ;;  %952 = vrcp.f32 %v398_v41 }
  0xd6   : > { %v931_v40 = vpop.eup %930  ;;  %v434_v49 = vpack.c.bf16 %v929_v38, %v921_v31 }
  0xd7   : > { %v1150_v25 = vpop.permute.xlu1 %607  ;;  %v489_v27 = vpop.permute.xlu0 %488  ;;  %v507_v50 = vmul.bf16 %v485_v21, %v435_v45 }
  0xd8   : > { %v933_v44 = vpop.eup %932  ;;  %v506_v63 = vmul.bf16 %v1136_v53, %v434_v49 }
  0xd9   : > { %v935_v46 = vpop.eup %934 }
  0xda   : > { %v937_v47 = vpop.eup %936  ;;  %v437_v57 = vpack.c.bf16 %v933_v44, %v935_v46 }
  0xdb   : > { %v487_v34 = vpop.permute.xlu1 %486  ;;  %v493_v35 = vpop.permute.xlu0 %492  ;;  %v436_v13 = vpack.c.bf16 %v931_v40, %v937_v47 }
  0xdc   : > { %v939_v51 = vpop.eup %938  ;;  %v509_v0 = vmul.bf16 %v489_v27, %v437_v57 }
  0xdd   : > { %v941_v56 = vpop.eup %940  ;;  %v508_v18 = vmul.bf16 %v487_v34, %v436_v13 }
  0xde   : > { %v943_v59 = vpop.eup %942  ;;  %v438_v21 = vpack.c.bf16 %v939_v51, %v941_v56 }
  0xdf   : > { %v491_v42 = vpop.permute.xlu1 %490  ;;  %v497_v43 = vpop.permute.xlu0 %496 }
  0xe0   : > { %v945_v62 = vpop.eup %944  ;;  %v510_v29 = vmul.bf16 %v491_v42, %v438_v21 }
  0xe1   : > { %v947_v2 = vpop.eup %946  ;;  %v439_v14 = vpack.c.bf16 %v943_v59, %v945_v62 }
  0xe2   : > { %v949_v5 = vpop.eup %948 }
  0xe3   : > { %v495_v52 = vpop.permute.xlu1 %494  ;;  %v517_v55 = vpop.permute.xlu0 %516  ;;  %v511_v19 = vmul.bf16 %v493_v35, %v439_v14  ;;  %v441_v22 = vpack.c.bf16 %v947_v2, %v949_v5 }
  0xe4   : > { %v539_v58 = vadd.bf16 %v517_v55, %v507_v50  ;;  %v951_v6 = vpop.eup %950 }
  0xe5   : > { %v953_v27 = vpop.eup %952 }
  0xe6   : > { %v611_v1 = vmul.bf16 %v1138_v54, %v539_v58  ;;  %v440_v34 = vpack.c.bf16 %v951_v6, %v953_v27 }
  0xe7   : > { %v515_v3 = vpop.permute.xlu1 %514  ;;  %v521_v4 = vpop.permute.xlu0 %520 }
  0xe8   : > { %v834_v12 = vcombine.low %v611_v1, %v611_v1  ;;  %v835_v9 = vcombine.high %v611_v1, %v611_v1  ;;  %v538_v10 = vadd.bf16 %v515_v3, %v506_v63  ;;  %v541_v53 = vadd.bf16 %v521_v4, %v509_v0 }
  0xe9   : > { %v512_v42 = vmul.bf16 %v495_v52, %v440_v34 }
  0xea   : > { %677 = vst.msk [vmem:[%s1159_s30 + $0x8] sm:$0xf] %vm674_vm0, %v834_v12  ;;  %678 = vst.msk [vmem:[%s1159_s30 + $0xc] sm:$0xf] %vm674_vm0, %v835_v9  ;;  %v610_v54 = vmul.bf16 %v1134_v48, %v538_v10  ;;  %v613_v15 = vmul.bf16 %v1142_v61, %v541_v53  ;;  %v513_v61 = vmul.bf16 %v497_v43, %v441_v22 }
  0xeb   : > { %v519_v23 = vpop.permute.xlu1 %518  ;;  %v525_v26 = vpop.permute.xlu0 %524 }
  0xec   : > { %v832_v8 = vcombine.low %v610_v54, %v610_v54  ;;  %v833_v24 = vcombine.high %v610_v54, %v610_v54  ;;  %v838_v16 = vcombine.low %v613_v15, %v613_v15  ;;  %v839_v17 = vcombine.high %v613_v15, %v613_v15 }
  0xed   : > { %v540_v28 = vadd.bf16 %v519_v23, %v508_v18  ;;  %v543_v48 = vadd.bf16 %v525_v26, %v511_v19 }
  0xee   : > { %675 = vst.msk [vmem:[%s1159_s30] sm:$0xf] %vm674_vm0, %v832_v8  ;;  %676 = vst.msk [vmem:[%s1159_s30 + $0x4] sm:$0xf] %vm674_vm0, %v833_v24 }
  0xef   : > { %681 = vst.msk [vmem:[%s1159_s30 + $0x18] sm:$0xf] %vm674_vm0, %v838_v16  ;;  %682 = vst.msk [vmem:[%s1159_s30 + $0x1c] sm:$0xf] %vm674_vm0, %v839_v17  ;;  %v612_v30 = vmul.bf16 %v1140_v60, %v540_v28  ;;  %v615_v31 = vmul.bf16 %v1148_v20, %v543_v48  ;;  %v523_v32 = vpop.permute.xlu1 %522  ;;  %v529_v33 = vpop.permute.xlu0 %528 }
  0xf0   : > { %v542_v35 = vadd.bf16 %v523_v32, %v510_v29  ;;  %v545_v36 = vadd.bf16 %v529_v33, %v513_v61 }
  0xf1   : > { %v836_v37 = vcombine.low %v612_v30, %v612_v30  ;;  %v837_v38 = vcombine.high %v612_v30, %v612_v30  ;;  %v842_v39 = vcombine.low %v615_v31, %v615_v31  ;;  %v843_v40 = vcombine.high %v615_v31, %v615_v31 }
  0xf2   : > { %v614_v41 = vmul.bf16 %v1144_v7, %v542_v35  ;;  %v617_v60 = vmul.bf16 %v1150_v25, %v545_v36 }
  0xf3   : > { %679 = vst.msk [vmem:[%s1159_s30 + $0x10] sm:$0xf] %vm674_vm0, %v836_v37  ;;  %680 = vst.msk [vmem:[%s1159_s30 + $0x14] sm:$0xf] %vm674_vm0, %v837_v38  ;;  %v527_v20 = vpop.permute.xlu1 %526 }
  0xf4   : > { %685 = vst.msk [vmem:[%s1159_s30 + $0x28] sm:$0xf] %vm674_vm0, %v842_v39  ;;  %686 = vst.msk [vmem:[%s1159_s30 + $0x2c] sm:$0xf] %vm674_vm0, %v843_v40  ;;  %v840_v43 = vcombine.low %v614_v41, %v614_v41  ;;  %v841_v44 = vcombine.high %v614_v41, %v614_v41  ;;  %v846_v45 = vcombine.low %v617_v60, %v617_v60 }
  0xf5   : > { %v847_v46 = vcombine.high %v617_v60, %v617_v60  ;;  %v544_v7 = vadd.bf16 %v527_v20, %v512_v42 }
  0xf6   : > { %683 = vst.msk [vmem:[%s1159_s30 + $0x20] sm:$0xf] %vm674_vm0, %v840_v43  ;;  %684 = vst.msk [vmem:[%s1159_s30 + $0x24] sm:$0xf] %vm674_vm0, %v841_v44 }
  0xf7   : > { %689 = vst.msk [vmem:[%s1159_s30 + $0x38] sm:$0xf] %vm674_vm0, %v846_v45  ;;  %690 = vst.msk [vmem:[%s1159_s30 + $0x3c] sm:$0xf] %vm674_vm0, %v847_v46  ;;  %v616_v25 = vmul.bf16 %v1146_v11, %v544_v7 }
  0xf9   : > { %v844_v47 = vcombine.low %v616_v25, %v616_v25  ;;  %v845_v49 = vcombine.high %v616_v25, %v616_v25 }
  0xfb   : > { %687 = vst.msk [vmem:[%s1159_s30 + $0x30] sm:$0xf] %vm674_vm0, %v844_v47  ;;  %688 = vst.msk [vmem:[%s1159_s30 + $0x34] sm:$0xf] %vm674_vm0, %v845_v49 }
  0xfc PF: > { %s13_s14 = sadd.s32 1, %s976_s14   ;;  %s1213_s12 = smov %s972_s13 }
  0xfd   : > { %p10_p5 = scmp.ge.s32.totalorder %s13_s14, 6   ;;  %s1214_s13 = smov %s1216_s15 }
  0xff   :  { %12 = sbr.rel (!%p10_p5) target bundleno = 2 (0x2), region = 65 }

// kernel: spatial_evo_conv_forward.31
= control target key start
LH: loop header
LB: loop body
LE: loop exit
PB: predicated region body
PF: predicated region fallthrough
CT: control target
= control target key end

     0   :  { %s588_s9 = smov 0   ;;  %s590_s10 = smov 0   ;;  %s641_s0 = inlined_call_operand.vmem [shape: s32[4,1,128], index: 0, kind: input, shape index: {}]   ;;  %s642_s1 = inlined_call_operand.vmem [shape: bf16[4,128,32], index: 1, kind: input, shape index: {}]   ;;  %s643_s2 = inlined_call_operand.vmem [shape: f32[4,16,32], index: 2, kind: output, shape index: {}]  }
   0x1   :  { %s592_s11 = smov 0  }
   0x2 LB: > { %s31_s12 = sadd.s32 1, %s564_s10  ;;  %p460_p0 = scmp.ge.s32.totalorder %s568_s11, 1  ;;  %s568_s11 = sphi %s592_s11, %s12_s11   ;;  %s564_s10 = sphi %s590_s10, %s645_s10   ;;  %s560_s9 = sphi %s588_s9, %s644_s9  }
   0x3   : > { %p33_p1 = scmp.ge.s32.totalorder %s31_s12, 4  ;;  %p153_p2 = scmp.lt.s32.totalorder %s568_s11, 5 }
   0x5   : > { %s647_s12 = smov (%p33_p1, %s31_s12), 0  ;;  %p154_p3 = pnand %p460_p0, %p153_p2 }
   0x6   : > { %p189_p4 = scmp.lt.s32.totalorder (!%p154_p3), %s560_s9, 3  ;;  %v570_v0 = vmov (!%p154_p3), 0.0   ;;  %vm571_vm0 = vmmov (!%p154_p3), 0   ;;  %vm220_vm1 = vcmask (!%p154_p3), 261120   ;;  %v224_v6 = vlaneseq (!%p154_p3) }
   0x7   : > { %157 = sbr.rel (%p154_p3) target bundleno = 266 (0x10a), region = 28  ;;  %491 = vmatprep.subr.bf16.mxu0 (!%p154_p3), %v570_v0  ;;  %507 = vmatprep.mubr.msk.bf16.mxu0 (!%p154_p3), %vm571_vm0, %v570_v0  ;;  %v572_v13 = vmov (!%p154_p3), 1.0|1.0  }
   0x8   : > { %v225_v8 = vshrl.u32 (!%p154_p3), %v224_v6, 7 }
   0xa   : > { %v226_v10 = vadd.s32 (!%p154_p3), 8, %v225_v8 }
   0xe   : > { %s649_s9 = smov (!%p189_p4, %s560_s9), 3 }
   0xf   : > { %s480_s13 = sshll.u32 %s649_s9, 6  ;;  %s481_s17 = sshll.u32 %s649_s9, 4 }
  0x10   : > { %s203_s16 = scalar_lea.vmem %s642_s1, %s480_s13  ;;  %s616_s20 = scalar_lea.vmem %s643_s2, %s481_s17 }
  0x11   : > { %v538_v1 = vld [vmem:[%s203_s16] sm:$0xff]   ;;  %221 = vst.msk [vmem:[%s616_s20] sm:$0xff] %vm220_vm1, %v570_v0  ;;  %222 = vst.msk [vmem:[%s616_s20 + $0x8] sm:$0xff] %vm220_vm1, %v570_v0  ;;  %v539_v2 = vld [vmem:[%s203_s16 + $0x8] sm:$0xff]   ;;  %s194_s23 = scalar_lea.vmem %s641_s0, %s649_s9 }
  0x12   : > { %492 = vmatpush3.bf16.msra.mxu0 %v538_v1  ;;  %v540_v3 = vld [vmem:[%s203_s16 + $0x10] sm:$0xff]   ;;  %v541_v4 = vld [vmem:[%s203_s16 + $0x18] sm:$0xff]   ;;  %v542_v5 = vld [vmem:[%s203_s16 + $0x20] sm:$0xff]  }
  0x13   : > { %493 = vmatprep.subr.bf16.mxu0 %v570_v0  ;;  %v543_v7 = vld [vmem:[%s203_s16 + $0x28] sm:$0xff]   ;;  %v544_v9 = vld [vmem:[%s203_s16 + $0x30] sm:$0xff]   ;;  %v465_v11 = vld [vmem:[%s194_s23] ss:$0 sm:$0xff] }
  0x14   : > { %v545_v12 = vld [vmem:[%s203_s16 + $0x38] sm:$0xff]   ;;  %vm235_vm2 = vcmp.eq.s32.totalorder %v225_v8, %v465_v11  ;;  %vm236_vm3 = vcmp.eq.s32.totalorder %v226_v10, %v465_v11 }
  0x15   : > { %vm476_vm4 = vmpackc.low %vm236_vm3, %vm235_vm2 }
  0x16   : > { %494 = vmatpush3.bf16.msra.mxu0 %v539_v2 }
  0x17   : > { %495 = vmatprep.subr.bf16.mxu0 %v570_v0 }
  0x18   : > { %v242_v14 = vld [vmem:[%s616_s20] sm:$0xff]  ;;  %v243_v16 = vld [vmem:[%s616_s20 + $0x8] sm:$0xff] }
  0x1a   : > { %496 = vmatpush3.bf16.msra.mxu0 %v540_v3 }
  0x1b   : > { %497 = vmatprep.subr.bf16.mxu0 %v570_v0 }
  0x1e   : > { %498 = vmatpush3.bf16.msra.mxu0 %v541_v4 }
  0x1f   : > { %499 = vmatprep.subr.bf16.mxu0 %v570_v0 }
  0x22   : > { %500 = vmatpush3.bf16.msra.mxu0 %v542_v5 }
  0x23   : > { %501 = vmatprep.subr.bf16.mxu0 %v570_v0 }
  0x26   : > { %502 = vmatpush3.bf16.msra.mxu0 %v543_v7 }
  0x27   : > { %503 = vmatprep.subr.bf16.mxu0 %v570_v0 }
  0x2a   : > { %504 = vmatpush3.bf16.msra.mxu0 %v544_v9 }
  0x2b   : > { %505 = vmatprep.subr.bf16.mxu0 %v570_v0 }
  0x2e   : > { %506 = vmatpush3.bf16.msra.mxu0 %v545_v12 }
  0x31   : > { %508 = vmatmul.mubr.msk.bf16.vlgmr.msra.gmra.mrb[0].mxu0 %vm476_vm4, %v572_v13 }
 0x104   : > { %v342_v15 = vpop.f32.mrb[0].mxu0 }
 0x105   : > { %v349_v17 = vadd.f32 %v342_v15, %v242_v14  ;;  %v509_v18 = vpop.f32.mrb[1].mxu0 }
 0x106   : > { %v345_v19 = vpop.f32.mrb[2].mxu0 }
 0x107   : > { %352 = vst.msk [vmem:[%s616_s20] sm:$0xff] %vm220_vm1, %v349_v17  ;;  %v350_v20 = vadd.f32 %v345_v19, %v243_v16  ;;  %v510_v21 = vpop.f32.mrb[3].mxu0 }
 0x109   : > { %353 = vst.msk [vmem:[%s616_s20 + $0x8] sm:$0xff] %vm220_vm1, %v350_v20 }
 0x10a PF: > { %s12_s11 = sadd.s32 1, %s568_s11   ;;  %s644_s9 = smov %s564_s10 }
 0x10b   : > { %p9_p5 = scmp.ge.s32.totalorder %s12_s11, 6   ;;  %s645_s10 = smov %s647_s12 }
 0x10d   :  { %11 = sbr.rel (!%p9_p5) target bundleno = 2 (0x2), region = 65 }

// kernel: spatial_evo_conv_forward.37
= control target key start
LH: loop header
LB: loop body
LE: loop exit
PB: predicated region body
PF: predicated region fallthrough
CT: control target
= control target key end

     0   :  { %vm66_vm0 = vcmask 261120   ;;  %vm176_vm1 = vcmask 257024   ;;  %s317_s1 = inlined_call_operand.vmem [shape: bf16[32,32], index: 1, kind: input, shape index: {}]   ;;  %s318_s0 = inlined_call_operand.vmem [shape: bf16[64,32], index: 0, kind: input, shape index: {}]   ;;  %s319_s2 = inlined_call_operand.vmem [shape: f32[1,32], index: 2, kind: input, shape index: {}]   ;;  %s320_s3 = inlined_call_operand.vmem [shape: bf16[64,32], index: 3, kind: output, shape index: {}]  }
   0x1   :  { %v238_v0 = vld [vmem:[%s317_s1] sm:$0xff]   ;;  %v239_v1 = vld [vmem:[%s317_s1 + $0x8] sm:$0xff]   ;;  %v241_v3 = vld [vmem:[%s318_s0 + $0x10] sm:$0xff]  }
   0x2   :  { %222 = vmatprep.subr.bf16.mxu0 %v238_v0  ;;  %234 = vmatprep.subr.bf16.mxu1 %v238_v0  ;;  %v240_v2 = vld [vmem:[%s318_s0] sm:$0xff]   ;;  %v242_v4 = vld [vmem:[%s318_s0 + $0x8] sm:$0xff]   ;;  %v243_v5 = vld [vmem:[%s318_s0 + $0x18] sm:$0xff]  }
   0x3   :  { %223 = vmatpush3.bf16.msra.mxu0 %v238_v0  ;;  %236 = vmatpush3.bf16.msra.mxu1 %v238_v0  ;;  %v189_v6 = vld [vmem:[%s319_s2] ss:$0 sm:$0xff] }
   0x4   :  { %224 = vmatprep.subr.bf16.mxu0 %v239_v1  ;;  %235 = vmatprep.subr.bf16.mxu1 %v239_v1 }
   0x5   :  { %226 = vmatprep.mubr.msk.bf16.mxu0 %vm66_vm0, %v240_v2  ;;  %230 = vmatprep.mubr.msk.bf16.mxu1 %vm66_vm0, %v241_v3 }
   0x7   :  { %225 = vmatpush3.bf16.msra.mxu0 %v239_v1  ;;  %237 = vmatpush3.bf16.msra.mxu1 %v239_v1 }
   0xa   :  { %227 = vmatmul.mubr.msk.bf16.vlgmr.msra.gmra.mrb[0].mxu0 %vm66_vm0, %v242_v4  ;;  %231 = vmatmul.mubr.msk.bf16.vlgmr.msra.gmra.mrb[0].mxu1 %vm66_vm0, %v243_v5 }
  0xdd   :  { %v228_v7 = vpop.f32.mrb[0].mxu0  ;;  %v232_v8 = vpop.f32.mrb[0].mxu1 }
  0xde   :  { %v122_v9 = vadd.f32 %v228_v7, %v189_v6  ;;  %v138_v10 = vadd.f32 %v232_v8, %v189_v6  ;;  %v113_v11 = vpop.f32.mrb[1].mxu0  ;;  %v129_v12 = vpop.f32.mrb[1].mxu1 }
  0xdf   :  { %v114_v13 = vadd.f32 %v189_v6, %v113_v11  ;;  %v130_v14 = vadd.f32 %v189_v6, %v129_v12  ;;  %v229_v15 = vpop.f32.mrb[2].mxu0  ;;  %v233_v16 = vpop.f32.mrb[2].mxu1 }
  0xe0   :  { %v210_v17 = vpack.c.bf16 %v122_v9, %v122_v9  ;;  %v214_v18 = vpack.c.bf16 %v138_v10, %v138_v10  ;;  %v125_v19 = vadd.f32 %v229_v15, %v189_v6  ;;  %v141_v20 = vadd.f32 %v233_v16, %v189_v6  ;;  %v116_v21 = vpop.f32.mrb[3].mxu0  ;;  %v132_v22 = vpop.f32.mrb[3].mxu1 }
  0xe1   :  { %v208_v23 = vpack.c.bf16 %v114_v13, %v114_v13  ;;  %v212_v24 = vpack.c.bf16 %v130_v14, %v130_v14  ;;  %v117_v25 = vadd.f32 %v189_v6, %v116_v21  ;;  %v133_v26 = vadd.f32 %v189_v6, %v132_v22 }
  0xe2   :  { %179 = vst.msk [vmem:[%s320_s3 + $0x8] sm:$0xf] %vm176_vm1, %v210_v17  ;;  %183 = vst.msk [vmem:[%s320_s3 + $0x18] sm:$0xf] %vm176_vm1, %v214_v18  ;;  %v211_v27 = vpack.c.bf16 %v125_v19, %v125_v19  ;;  %v215_v28 = vpack.c.bf16 %v141_v20, %v141_v20 }
  0xe3   :  { %177 = vst.msk [vmem:[%s320_s3] sm:$0xf] %vm176_vm1, %v208_v23  ;;  %181 = vst.msk [vmem:[%s320_s3 + $0x10] sm:$0xf] %vm176_vm1, %v212_v24  ;;  %v209_v29 = vpack.c.bf16 %v117_v25, %v117_v25  ;;  %v213_v30 = vpack.c.bf16 %v133_v26, %v133_v26 }
  0xe4   :  { %180 = vst.msk [vmem:[%s320_s3 + $0xc] sm:$0xf] %vm176_vm1, %v211_v27  ;;  %184 = vst.msk [vmem:[%s320_s3 + $0x1c] sm:$0xf] %vm176_vm1, %v215_v28 }
  0xe5   :  { %178 = vst.msk [vmem:[%s320_s3 + $0x4] sm:$0xf] %vm176_vm1, %v209_v29  ;;  %182 = vst.msk [vmem:[%s320_s3 + $0x14] sm:$0xf] %vm176_vm1, %v213_v30 }

// kernel: spatial_evo_conv_forward.38
= control target key start
LH: loop header
LB: loop body
LE: loop exit
PB: predicated region body
PF: predicated region fallthrough
CT: control target
= control target key end

     0   :  { %s1192_s18 = smov 0   ;;  %s1194_s19 = smov 0   ;;  %s1437_s0 = inlined_call_operand.vmem [shape: bf16[4,128,160], index: 0, kind: input, shape index: {}]   ;;  %s1438_s1 = inlined_call_operand.vmem [shape: bf16[4,128,160], index: 1, kind: input, shape index: {}]   ;;  %s1439_s2 = inlined_call_operand.vmem [shape: f32[4,128,1], index: 2, kind: input, shape index: {}]   ;;  %s1440_s3 = inlined_call_operand.vmem [shape: bf16[160,32], index: 3, kind: input, shape index: {}]   ;;  %s1441_s4 = inlined_call_operand.vmem [shape: f32[1,32], index: 4, kind: input, shape index: {}]   ;;  %s1442_s5 = inlined_call_operand.vmem [shape: bf16[4,128,32], index: 5, kind: output, shape index: {}]  }
   0x1   :  { %s1196_s20 = smov 0  }
   0x2 LB: > { %s27_s21 = sadd.s32 1, %s1155_s19  ;;  %p998_p0 = scmp.ge.s32.totalorder %s1159_s20, 1  ;;  %s1159_s20 = sphi %s1196_s20, %s15_s20   ;;  %s1155_s19 = sphi %s1194_s19, %s1444_s19   ;;  %s1151_s18 = sphi %s1192_s18, %s1443_s18  }
   0x3   : > { %p29_p1 = scmp.ge.s32.totalorder %s27_s21, 4  ;;  %p244_p2 = scmp.lt.s32.totalorder %s1159_s20, 5 }
   0x5   : > { %s1446_s21 = smov (%p29_p1, %s27_s21), 0  ;;  %p245_p3 = pnand %p998_p0, %p244_p2 }
   0x6   : > { %v1127_v0 = vld [vmem:[%s1440_s3] sm:$0xff] (!%p245_p3)   ;;  %v1161_v1 = vmov (!%p245_p3), 0   ;;  %p301_p4 = scmp.lt.s32.totalorder (!%p245_p3), %s1151_s18, 3  ;;  %v1128_v2 = vld [vmem:[%s1440_s3 + $0x8] sm:$0xff] (!%p245_p3)   ;;  %v1129_v3 = vld [vmem:[%s1440_s3 + $0x10] sm:$0xff] (!%p245_p3)   ;;  %vm550_vm0 = vcmask (!%p245_p3), 261120  }
   0x7   : > { %248 = sbr.rel (%p245_p3) target bundleno = 292 (0x124), region = 40  ;;  %575 = vmatprep.subr.bf16.mxu0 (!%p245_p3), %v1161_v1  ;;  %1080 = vmatprep.subr.bf16.mxu1 (!%p245_p3), %v1161_v1  ;;  %v1130_v4 = vld [vmem:[%s1440_s3 + $0x18] sm:$0xff] (!%p245_p3)   ;;  %v1131_v17 = vld [vmem:[%s1440_s3 + $0x20] sm:$0xff] (!%p245_p3)   ;;  %v1132_v20 = vld [vmem:[%s1440_s3 + $0x28] sm:$0xff] (!%p245_p3)   ;;  %vm848_vm1 = vcmask (!%p245_p3), 257024  }
   0x8   : > { %576 = vmatpush1.bf16.msra.mxu0 (!%p245_p3), %v1127_v0  ;;  %1090 = vmatpush1.bf16.msra.mxu1 (!%p245_p3), %v1127_v0  ;;  %v1133_v23 = vld [vmem:[%s1440_s3 + $0x30] sm:$0xff] (!%p245_p3)   ;;  %v1134_v26 = vld [vmem:[%s1440_s3 + $0x38] sm:$0xff] (!%p245_p3)   ;;  %v1135_v28 = vld [vmem:[%s1440_s3 + $0x40] sm:$0xff] (!%p245_p3)  }
   0x9   : > { %577 = vmatprep.subr.bf16.mxu0 (!%p245_p3), %v1161_v1  ;;  %1081 = vmatprep.subr.bf16.mxu1 (!%p245_p3), %v1161_v1  ;;  %v1136_v41 = vld [vmem:[%s1440_s3 + $0x48] sm:$0xff] (!%p245_p3)  }
   0xa   : > { %1126 = vset.pattern.permute.xlu1 (!%p245_p3), %v1161_v1  ;;  %1125 = vset.pattern.permute.xlu0 (!%p245_p3), %v1161_v1 }
   0xc   : > { %578 = vmatpush1.bf16.msra.mxu0 (!%p245_p3), %v1128_v2  ;;  %1091 = vmatpush1.bf16.msra.mxu1 (!%p245_p3), %v1128_v2 }
   0xd   : > { %579 = vmatprep.subr.bf16.mxu0 (!%p245_p3), %v1161_v1  ;;  %1082 = vmatprep.subr.bf16.mxu1 (!%p245_p3), %v1161_v1 }
   0xe   : > { %s1448_s18 = smov (!%p301_p4, %s1151_s18), 3 }
   0xf   : > { %s1225_s26 = sshll.u32 %s1448_s18, 7  ;;  %s1063_s8 = sshll.u32 %s1448_s18, 6 }
  0x10   : > { %s1236_s6 = scalar_lea.vmem %s1437_s0, %s1225_s26  ;;  %s1242_s9 = scalar_lea.vmem %s1438_s1, %s1225_s26  ;;  %580 = vmatpush1.bf16.msra.mxu0 %v1129_v3  ;;  %1092 = vmatpush1.bf16.msra.mxu1 %v1129_v3 }
  0x11   : > { %v343_v5 = vld [vmem:[%s1236_s6] sm:$0xff]  ;;  %v344_v6 = vld [vmem:[%s1236_s6 + $0x8] sm:$0xff]  ;;  %581 = vmatprep.subr.bf16.mxu0 %v1161_v1  ;;  %1083 = vmatprep.subr.bf16.mxu1 %v1161_v1  ;;  %s1280_s16 = scalar_lea.vmem %s1439_s2, %s1225_s26  ;;  %v345_v29 = vld [vmem:[%s1236_s6 + $0x10] sm:$0xff]  ;;  %s1378_s18 = scalar_lea.vmem %s1442_s5, %s1063_s8 }
  0x12   : > { %v359_v7 = vld [vmem:[%s1242_s9] sm:$0xff]  ;;  %v360_v8 = vld [vmem:[%s1242_s9 + $0x8] sm:$0xff]  ;;  %v674_v21 = vld [vmem:[%s1280_s16 + $0x10] sm:$0xff] }
  0x13   : > { %v1253_v9 = vmul.bf16 %v359_v7, %v343_v5  ;;  %v351_v10 = vld [vmem:[%s1236_s6 + $0x40] sm:$0xff]  ;;  %v352_v11 = vld [vmem:[%s1236_s6 + $0x48] sm:$0xff]  ;;  %v1257_v12 = vmul.bf16 %v360_v8, %v344_v6  ;;  %700 = vperm.xlu1 %1126, %v674_v21   ;;  %v675_v24 = vld [vmem:[%s1280_s16 + $0x18] sm:$0xff] }
  0x14   : > { %v367_v13 = vld [vmem:[%s1242_s9 + $0x40] sm:$0xff]  ;;  %v368_v14 = vld [vmem:[%s1242_s9 + $0x48] sm:$0xff]  ;;  %582 = vmatpush1.bf16.msra.mxu0 %v1130_v4  ;;  %1093 = vmatpush1.bf16.msra.mxu1 %v1130_v4  ;;  %v346_v30 = vld [vmem:[%s1236_s6 + $0x18] sm:$0xff] }
  0x15   : > { %v1261_v15 = vmul.bf16 %v367_v13, %v351_v10  ;;  %v1263_v16 = vmul.bf16 %v368_v14, %v352_v11  ;;  %v1009_v18 = vcombine.high %v1253_v9, %v1257_v12  ;;  %583 = vmatprep.subr.bf16.mxu0 %v1161_v1  ;;  %1084 = vmatprep.subr.bf16.mxu1 %v1161_v1  ;;  %v672_v22 = vld [vmem:[%s1280_s16] sm:$0xff]  ;;  %v673_v25 = vld [vmem:[%s1280_s16 + $0x8] sm:$0xff]  ;;  %v361_v31 = vld [vmem:[%s1242_s9 + $0x10] sm:$0xff] }
  0x16   : > { %690 = vperm.xlu0 %1125, %v672_v22   ;;  %v677_v27 = vld [vmem:[%s1280_s16 + $0x28] sm:$0xff]  ;;  %v676_v32 = vld [vmem:[%s1280_s16 + $0x20] sm:$0xff]  ;;  %v362_v33 = vld [vmem:[%s1242_s9 + $0x18] sm:$0xff]  ;;  %v377_v39 = vmul.bf16 %v361_v31, %v345_v29  ;;  %v1008_v46 = vcombine.low %v1253_v9, %v1257_v12 }
  0x17   : > { %v1017_v19 = vcombine.high %v1261_v15, %v1263_v16  ;;  %1034 = vmatprep.mubr.msk.bf16.mxu0 %vm550_vm0, %v1009_v18  ;;  %705 = vperm.xlu1 %1126, %v675_v24   ;;  %v353_v34 = vld [vmem:[%s1236_s6 + $0x50] sm:$0xff]  ;;  %v679_v35 = vld [vmem:[%s1280_s16 + $0x38] sm:$0xff]  ;;  %v378_v42 = vmul.bf16 %v362_v33, %v346_v30  ;;  %v681_v45 = vld [vmem:[%s1280_s16 + $0x48] sm:$0xff]  ;;  %v1016_v47 = vcombine.low %v1261_v15, %v1263_v16 }
  0x18   : > { %584 = vmatpush1.bf16.msra.mxu0 %v1131_v17  ;;  %1094 = vmatpush1.bf16.msra.mxu1 %v1131_v17  ;;  %v354_v36 = vld [vmem:[%s1236_s6 + $0x58] sm:$0xff]  ;;  %v369_v37 = vld [vmem:[%s1242_s9 + $0x50] sm:$0xff]  ;;  %v347_v48 = vld [vmem:[%s1236_s6 + $0x20] sm:$0xff] }
  0x19   : > { %1038 = vmatprep.mubr.msk.bf16.mxu1 %vm550_vm0, %v1017_v19  ;;  %585 = vmatprep.subr.bf16.mxu0 %v1161_v1  ;;  %v370_v38 = vld [vmem:[%s1242_s9 + $0x58] sm:$0xff]  ;;  %v678_v40 = vld [vmem:[%s1280_s16 + $0x30] sm:$0xff]  ;;  %v385_v43 = vmul.bf16 %v369_v37, %v353_v34  ;;  %v348_v49 = vld [vmem:[%s1236_s6 + $0x28] sm:$0xff]  ;;  %v1011_v51 = vcombine.high %v377_v39, %v378_v42  ;;  %v1010_v2 = vcombine.low %v377_v39, %v378_v42 }
  0x1a   : > { %1085 = vmatprep.subr.bf16.mxu1 %v1161_v1  ;;  %695 = vperm.xlu0 %1125, %v673_v25   ;;  %v386_v44 = vmul.bf16 %v370_v38, %v354_v36  ;;  %v680_v50 = vld [vmem:[%s1280_s16 + $0x40] sm:$0xff]  ;;  %v364_v54 = vld [vmem:[%s1242_s9 + $0x28] sm:$0xff]  ;;  %v683_v59 = vld [vmem:[%s1280_s16 + $0x58] sm:$0xff] }
  0x1b   : > { %715 = vperm.xlu1 %1126, %v677_v27   ;;  %v363_v53 = vld [vmem:[%s1242_s9 + $0x20] sm:$0xff]  ;;  %v356_v56 = vld [vmem:[%s1236_s6 + $0x68] sm:$0xff]  ;;  %v682_v61 = vld [vmem:[%s1280_s16 + $0x50] sm:$0xff]  ;;  %v380_v62 = vmul.bf16 %v364_v54, %v348_v49 }
  0x1c   : > { %586 = vmatpush1.bf16.msra.mxu0 %v1132_v20  ;;  %1095 = vmatpush1.bf16.msra.mxu1 %v1132_v20  ;;  %v1019_v52 = vcombine.high %v385_v43, %v386_v44  ;;  %v355_v55 = vld [vmem:[%s1236_s6 + $0x60] sm:$0xff]  ;;  %v372_v58 = vld [vmem:[%s1242_s9 + $0x68] sm:$0xff]  ;;  %v379_v60 = vmul.bf16 %v363_v53, %v347_v48  ;;  %v1018_v3 = vcombine.low %v385_v43, %v386_v44  ;;  %v349_v4 = vld [vmem:[%s1236_s6 + $0x30] sm:$0xff] }
  0x1d   : > { %587 = vmatprep.subr.bf16.mxu0 %v1161_v1  ;;  %1086 = vmatprep.subr.bf16.mxu1 %v1161_v1  ;;  %v371_v57 = vld [vmem:[%s1242_s9 + $0x60] sm:$0xff]  ;;  %v388_v0 = vmul.bf16 %v372_v58, %v356_v56  ;;  %v350_v5 = vld [vmem:[%s1236_s6 + $0x38] sm:$0xff]  ;;  %v365_v9 = vld [vmem:[%s1242_s9 + $0x30] sm:$0xff] }
  0x1e   : > { %710 = vperm.xlu0 %1125, %v676_v32   ;;  %v387_v63 = vmul.bf16 %v371_v57, %v355_v55  ;;  %v684_v6 = vld [vmem:[%s1280_s16 + $0x60] sm:$0xff]  ;;  %v1013_v7 = vcombine.high %v379_v60, %v380_v62  ;;  %v366_v10 = vld [vmem:[%s1242_s9 + $0x38] sm:$0xff]  ;;  %v357_v11 = vld [vmem:[%s1236_s6 + $0x70] sm:$0xff]  ;;  %v381_v16 = vmul.bf16 %v365_v9, %v349_v4  ;;  %v1012_v21 = vcombine.low %v379_v60, %v380_v62 }
  0x1f   : > { %725 = vperm.xlu1 %1126, %v679_v35   ;;  %v358_v12 = vld [vmem:[%s1236_s6 + $0x78] sm:$0xff]  ;;  %v373_v13 = vld [vmem:[%s1242_s9 + $0x70] sm:$0xff]  ;;  %v382_v18 = vmul.bf16 %v366_v10, %v350_v5  ;;  %v1368_v35 = vld [vmem:[%s1441_s4] ss:$0 sm:$0xff] }
  0x20   : > { %588 = vmatpush1.bf16.msra.mxu0 %v1133_v23  ;;  %1096 = vmatpush1.bf16.msra.mxu1 %v1133_v23  ;;  %v1021_v8 = vcombine.high %v387_v63, %v388_v0  ;;  %v374_v14 = vld [vmem:[%s1242_s9 + $0x78] sm:$0xff]  ;;  %v686_v17 = vld [vmem:[%s1280_s16 + $0x70] sm:$0xff]  ;;  %v389_v19 = vmul.bf16 %v373_v13, %v357_v11  ;;  %v1020_v22 = vcombine.low %v387_v63, %v388_v0 }
  0x21   : > { %589 = vmatprep.subr.bf16.mxu0 %v1161_v1  ;;  %1087 = vmatprep.subr.bf16.mxu1 %v1161_v1  ;;  %v687_v15 = vld [vmem:[%s1280_s16 + $0x78] sm:$0xff]  ;;  %v390_v20 = vmul.bf16 %v374_v14, %v358_v12  ;;  %v1015_v23 = vcombine.high %v381_v16, %v382_v18  ;;  %v1014_v25 = vcombine.low %v381_v16, %v382_v18 }
  0x22   : > { %720 = vperm.xlu0 %1125, %v678_v40  }
  0x23   : > { %735 = vperm.xlu1 %1126, %v681_v45   ;;  %v1023_v24 = vcombine.high %v389_v19, %v390_v20 }
  0x24   : > { %590 = vmatpush1.bf16.msra.mxu0 %v1134_v26  ;;  %1097 = vmatpush1.bf16.msra.mxu1 %v1134_v26  ;;  %v1022_v26 = vcombine.low %v389_v19, %v390_v20 }
  0x25   : > { %591 = vmatprep.subr.bf16.mxu0 %v1161_v1  ;;  %1088 = vmatprep.subr.bf16.mxu1 %v1161_v1 }
  0x26   : > { %730 = vperm.xlu0 %1125, %v680_v50  }
  0x27   : > { %745 = vperm.xlu1 %1126, %v683_v59  }
  0x28   : > { %592 = vmatpush1.bf16.msra.mxu0 %v1135_v28  ;;  %1098 = vmatpush1.bf16.msra.mxu1 %v1135_v28 }
  0x29   : > { %593 = vmatprep.subr.bf16.mxu0 %v1161_v1  ;;  %1089 = vmatprep.subr.bf16.mxu1 %v1161_v1  ;;  %v685_v1 = vld [vmem:[%s1280_s16 + $0x68] sm:$0xff] }
  0x2a   : > { %740 = vperm.xlu0 %1125, %v682_v61  }
  0x2b   : > { %755 = vperm.xlu1 %1126, %v685_v1  }
  0x2c   : > { %594 = vmatpush1.bf16.msra.mxu0 %v1136_v41  ;;  %1099 = vmatpush1.bf16.msra.mxu1 %v1136_v41 }
  0x2e   : > { %750 = vperm.xlu0 %1125, %v684_v6  }
  0x2f   : > { %608 = vmatmul.mubr.bf16.vlgmr.msra.gmra.mrb[0].mxu0 %v1008_v46  ;;  %640 = vmatmul.mubr.bf16.vlgmr.msra.gmra.mrb[0].mxu1 %v1016_v47 }
  0x30   : > { %1035 = vmatprep.mubr.msk.bf16.mxu0 %vm550_vm0, %v1011_v51  ;;  %1039 = vmatprep.mubr.msk.bf16.mxu1 %vm550_vm0, %v1019_v52 }
  0x31   : > { %765 = vperm.xlu1 %1126, %v687_v15  }
  0x32   : > { %760 = vperm.xlu0 %1125, %v686_v17  }
  0x37   : > { %616 = vmatmul.mubr.bf16.gmra.mrb[4].mxu0 %v1010_v2  ;;  %648 = vmatmul.mubr.bf16.gmra.mrb[4].mxu1 %v1018_v3 }
  0x38   : > { %1036 = vmatprep.mubr.msk.bf16.mxu0 %vm550_vm0, %v1013_v7  ;;  %1040 = vmatprep.mubr.msk.bf16.mxu1 %vm550_vm0, %v1021_v8 }
  0x3f   : > { %624 = vmatmul.mubr.bf16.gmra.mrb[8].mxu0 %v1012_v21  ;;  %656 = vmatmul.mubr.bf16.gmra.mrb[8].mxu1 %v1020_v22 }
  0x40   : > { %1037 = vmatprep.mubr.msk.bf16.mxu0 %vm550_vm0, %v1015_v23  ;;  %1041 = vmatprep.mubr.msk.bf16.mxu1 %vm550_vm0, %v1023_v24 }
  0x47   : > { %632 = vmatmul.mubr.bf16.gmra.mrb[12].mxu0 %v1014_v25  ;;  %664 = vmatmul.mubr.bf16.gmra.mrb[12].mxu1 %v1022_v26 }
  0x92   : > { %v701_v28 = vpop.permute.xlu1 %700 }
  0x95   : > { %v691_v27 = vpop.permute.xlu0 %690 }
  0x96   : > { %v706_v30 = vpop.permute.xlu1 %705 }
  0x99   : > { %v696_v29 = vpop.permute.xlu0 %695 }
  0x9a   : > { %v1359_v32 = vpop.permute.xlu1 %715 }
  0x9d   : > { %v1357_v31 = vpop.permute.xlu0 %710 }
  0x9e   : > { %v1363_v34 = vpop.permute.xlu1 %725 }
  0xa1   : > { %v1361_v33 = vpop.permute.xlu0 %720 }
  0xa2   : > { %v736_v51 = vpop.permute.xlu1 %735 }
  0xa5   : > { %v731_v36 = vpop.permute.xlu0 %730 }
  0xa6   : > { %v746_v9 = vpop.permute.xlu1 %745 }
  0xa9   : > { %v741_v56 = vpop.permute.xlu0 %740 }
  0xad   : > { %v751_v14 = vpop.permute.xlu0 %750 }
 0x102   : > { %v609_v37 = vpop.f32.mrb[0].mxu0  ;;  %v641_v38 = vpop.f32.mrb[0].mxu1 }
 0x103   : > { %v610_v39 = vadd.f32 %v1368_v35, %v609_v37  ;;  %v642_v40 = vadd.f32 %v1368_v35, %v641_v38  ;;  %v611_v41 = vpop.f32.mrb[1].mxu0  ;;  %v643_v42 = vpop.f32.mrb[1].mxu1 }
 0x104   : > { %v612_v43 = vpop.f32.mrb[2].mxu0  ;;  %v644_v44 = vpop.f32.mrb[2].mxu1 }
 0x105   : > { %v768_v45 = vmul.f32 %v691_v27, %v610_v39  ;;  %v776_v46 = vmul.f32 %v731_v36, %v642_v40  ;;  %v613_v47 = vadd.f32 %v1368_v35, %v612_v43  ;;  %v645_v48 = vadd.f32 %v1368_v35, %v644_v44  ;;  %v614_v49 = vpop.f32.mrb[3].mxu0  ;;  %v646_v50 = vpop.f32.mrb[3].mxu1 }
 0x106   : > { %v756_v36 = vpop.permute.xlu1 %755  ;;  %v761_v41 = vpop.permute.xlu0 %760 }
 0x107   : > { %v1064_v52 = vpack.c.bf16 %v768_v45, %v768_v45  ;;  %v1072_v53 = vpack.c.bf16 %v776_v46, %v776_v46  ;;  %v769_v54 = vmul.f32 %v696_v29, %v613_v47  ;;  %v777_v55 = vmul.f32 %v736_v51, %v645_v48 }
 0x109   : > { %849 = vst.msk [vmem:[%s1378_s18] sm:$0xf] %vm848_vm1, %v1064_v52  ;;  %857 = vst.msk [vmem:[%s1378_s18 + $0x20] sm:$0xf] %vm848_vm1, %v1072_v53  ;;  %v1065_v57 = vpack.c.bf16 %v769_v54, %v769_v54  ;;  %v1073_v58 = vpack.c.bf16 %v777_v55, %v777_v55 }
 0x10a   : > { %v617_v59 = vpop.f32.mrb[4].mxu0  ;;  %v649_v60 = vpop.f32.mrb[4].mxu1 }
 0x10b   : > { %850 = vst.msk [vmem:[%s1378_s18 + $0x4] sm:$0xf] %vm848_vm1, %v1065_v57  ;;  %858 = vst.msk [vmem:[%s1378_s18 + $0x24] sm:$0xf] %vm848_vm1, %v1073_v58  ;;  %v618_v61 = vadd.f32 %v1368_v35, %v617_v59  ;;  %v650_v62 = vadd.f32 %v1368_v35, %v649_v60  ;;  %v619_v63 = vpop.f32.mrb[5].mxu0  ;;  %v651_v0 = vpop.f32.mrb[5].mxu1 }
 0x10c   : > { %v620_v1 = vpop.f32.mrb[6].mxu0  ;;  %v652_v2 = vpop.f32.mrb[6].mxu1 }
 0x10d   : > { %v770_v3 = vmul.f32 %v701_v28, %v618_v61  ;;  %v778_v4 = vmul.f32 %v741_v56, %v650_v62  ;;  %v621_v5 = vadd.f32 %v1368_v35, %v620_v1  ;;  %v653_v6 = vadd.f32 %v1368_v35, %v652_v2  ;;  %v622_v7 = vpop.f32.mrb[7].mxu0  ;;  %v654_v8 = vpop.f32.mrb[7].mxu1 }
 0x10e   : > { %v766_v56 = vpop.permute.xlu1 %765 }
 0x10f   : > { %v1066_v10 = vpack.c.bf16 %v770_v3, %v770_v3  ;;  %v1074_v11 = vpack.c.bf16 %v778_v4, %v778_v4  ;;  %v771_v12 = vmul.f32 %v706_v30, %v621_v5  ;;  %v779_v13 = vmul.f32 %v746_v9, %v653_v6 }
 0x111   : > { %851 = vst.msk [vmem:[%s1378_s18 + $0x8] sm:$0xf] %vm848_vm1, %v1066_v10  ;;  %859 = vst.msk [vmem:[%s1378_s18 + $0x28] sm:$0xf] %vm848_vm1, %v1074_v11  ;;  %v1067_v15 = vpack.c.bf16 %v771_v12, %v771_v12  ;;  %v1075_v16 = vpack.c.bf16 %v779_v13, %v779_v13 }
 0x112   : > { %v625_v17 = vpop.f32.mrb[8].mxu0  ;;  %v657_v18 = vpop.f32.mrb[8].mxu1 }
 0x113   : > { %852 = vst.msk [vmem:[%s1378_s18 + $0xc] sm:$0xf] %vm848_vm1, %v1067_v15  ;;  %860 = vst.msk [vmem:[%s1378_s18 + $0x2c] sm:$0xf] %vm848_vm1, %v1075_v16  ;;  %v626_v19 = vadd.f32 %v1368_v35, %v625_v17  ;;  %v658_v20 = vadd.f32 %v1368_v35, %v657_v18  ;;  %v627_v21 = vpop.f32.mrb[9].mxu0  ;;  %v659_v22 = vpop.f32.mrb[9].mxu1 }
 0x114   : > { %v628_v23 = vpop.f32.mrb[10].mxu0  ;;  %v660_v24 = vpop.f32.mrb[10].mxu1 }
 0x115   : > { %v772_v25 = vmul.f32 %v1357_v31, %v626_v19  ;;  %v780_v26 = vmul.f32 %v751_v14, %v658_v20  ;;  %v629_v27 = vadd.f32 %v1368_v35, %v628_v23  ;;  %v661_v28 = vadd.f32 %v1368_v35, %v660_v24  ;;  %v630_v29 = vpop.f32.mrb[11].mxu0  ;;  %v662_v30 = vpop.f32.mrb[11].mxu1 }
 0x117   : > { %v1068_v37 = vpack.c.bf16 %v772_v25, %v772_v25  ;;  %v1076_v38 = vpack.c.bf16 %v780_v26, %v780_v26  ;;  %v773_v39 = vmul.f32 %v1359_v32, %v629_v27  ;;  %v781_v40 = vmul.f32 %v756_v36, %v661_v28 }
 0x119   : > { %853 = vst.msk [vmem:[%s1378_s18 + $0x10] sm:$0xf] %vm848_vm1, %v1068_v37  ;;  %861 = vst.msk [vmem:[%s1378_s18 + $0x30] sm:$0xf] %vm848_vm1, %v1076_v38  ;;  %v1069_v31 = vpack.c.bf16 %v773_v39, %v773_v39  ;;  %v1077_v42 = vpack.c.bf16 %v781_v40, %v781_v40 }
 0x11a   : > { %v633_v43 = vpop.f32.mrb[12].mxu0  ;;  %v665_v44 = vpop.f32.mrb[12].mxu1 }
 0x11b   : > { %854 = vst.msk [vmem:[%s1378_s18 + $0x14] sm:$0xf] %vm848_vm1, %v1069_v31  ;;  %862 = vst.msk [vmem:[%s1378_s18 + $0x34] sm:$0xf] %vm848_vm1, %v1077_v42  ;;  %v634_v45 = vadd.f32 %v1368_v35, %v633_v43  ;;  %v666_v46 = vadd.f32 %v1368_v35, %v665_v44  ;;  %v635_v32 = vpop.f32.mrb[13].mxu0  ;;  %v667_v47 = vpop.f32.mrb[13].mxu1 }
 0x11c   : > { %v636_v48 = vpop.f32.mrb[14].mxu0  ;;  %v668_v49 = vpop.f32.mrb[14].mxu1 }
 0x11d   : > { %v774_v50 = vmul.f32 %v1361_v33, %v634_v45  ;;  %v782_v51 = vmul.f32 %v761_v41, %v666_v46  ;;  %v637_v52 = vadd.f32 %v1368_v35, %v636_v48  ;;  %v669_v53 = vadd.f32 %v1368_v35, %v668_v49  ;;  %v638_v54 = vpop.f32.mrb[15].mxu0  ;;  %v670_v55 = vpop.f32.mrb[15].mxu1 }
 0x11f   : > { %v1070_v57 = vpack.c.bf16 %v774_v50, %v774_v50  ;;  %v1078_v58 = vpack.c.bf16 %v782_v51, %v782_v51  ;;  %v775_v59 = vmul.f32 %v1363_v34, %v637_v52  ;;  %v783_v60 = vmul.f32 %v766_v56, %v669_v53 }
 0x121   : > { %855 = vst.msk [vmem:[%s1378_s18 + $0x18] sm:$0xf] %vm848_vm1, %v1070_v57  ;;  %863 = vst.msk [vmem:[%s1378_s18 + $0x38] sm:$0xf] %vm848_vm1, %v1078_v58  ;;  %v1071_v61 = vpack.c.bf16 %v775_v59, %v775_v59  ;;  %v1079_v33 = vpack.c.bf16 %v783_v60, %v783_v60 }
 0x123   : > { %856 = vst.msk [vmem:[%s1378_s18 + $0x1c] sm:$0xf] %vm848_vm1, %v1071_v61  ;;  %864 = vst.msk [vmem:[%s1378_s18 + $0x3c] sm:$0xf] %vm848_vm1, %v1079_v33 }
 0x124 PF: > { %s15_s20 = sadd.s32 1, %s1159_s20   ;;  %s1443_s18 = smov %s1155_s19 }
 0x125   : > { %p12_p5 = scmp.ge.s32.totalorder %s15_s20, 6   ;;  %s1444_s19 = smov %s1446_s21 }
 0x127   :  { %14 = sbr.rel (!%p12_p5) target bundleno = 2 (0x2), region = 76 }

</bundles_post_ra>
